<compile_context>
chip_gen: v6e
topology: v6e:2x2x1
jax: 0.10.0
libtpu: 0.0.40
codegen_flags: <defaults>
</compile_context>

<pallas_src>
import functools

import jax
import jax.numpy as jnp
from jax import lax
from jax.experimental import pallas as pl
from jax.experimental.pallas import tpu as pltpu


def _round_up(x, m):
    return ((x + m - 1) // m) * m


def _lane(n):
    return _round_up(n, 128)


# ---------------------------------------------------------------------------
# Fused kernel: all nconv hops + fused 1x1 conv (+ bias) for one tile of rows.
# ---------------------------------------------------------------------------
def _gcn_fused_kernel(x_ref, a_ref, w_ref, b_ref, o_ref, h_ref, *, precision=None):
    # x_ref: (TB, Cp, Vp)   activation tile (compute dtype), rows are (n, l) pairs
    # a_ref: (S,  Vp, Vp)   graph supports (grid-invariant, VMEM resident)
    # w_ref: (Cout, K*Cp)   packed 1x1-conv weight, hop-k block at cols [k*Cp,(k+1)*Cp)
    # b_ref: (Cout, 1)      bias column (f32)
    # o_ref: (Cout, TB*Vp)  lane-dense output tile
    # h_ref: (TB*Vp, K*Cp)  VMEM scratch: concatenated transposed hop features
    TB, Cp, Vp = x_ref.shape
    S = a_ref.shape[0]
    KCp = h_ref.shape[1]
    K = KCp // Cp
    order = (K - 1) // S if S else 0
    cdt = x_ref.dtype

    def write_hop(k, feat):
        # feat: (TB, Cp, Vp) in compute dtype.  Minor-dims transpose (XLU) done in
        # the narrow dtype, layout-free leading merge (Vp is a sublane multiple),
        # then store into the hop-k column block of the concat scratch.
        g = jnp.swapaxes(feat, 1, 2).reshape(TB * Vp, Cp)
        h_ref[:, k * Cp:(k + 1) * Cp] = g

    x = x_ref[...]                                   # (TB, Cp, Vp)
    write_hop(0, x)                                  # identity hop: no f32 round trip

    k = 1
    for s in range(S):                               # static unroll over supports
        A = a_ref[s]                                 # hoisted: read support once per s
        f = x
        for _ in range(order):
            # nconv 'ncvl,vw->ncwl'  ==  (TB*Cp, Vp) @ A   (rows = (n, l, c))
            f32 = jnp.dot(f.reshape(TB * Cp, Vp), A,
                          preferred_element_type=jnp.float32,
                          precision=precision).reshape(TB, Cp, Vp)
            # NOTE: hop chain carried in compute dtype (one extra rounding per hop
            # vs the f32 reference when compute_dtype=bf16; covered by tolerances).
            f = f32.astype(cdt)
            write_hop(k, f)
            k += 1

    # ONE deep contraction (K*Cp ~ 224) instead of K shallow (Cp=32) matmuls:
    # (Cout, K*Cp) x (TB*Vp, K*Cp)^T -> (Cout, TB*Vp), f32 accumulation on MXU.
    acc = lax.dot_general(w_ref[...], h_ref[...],
                          dimension_numbers=(((1,), (1,)), ((), ())),
                          preferred_element_type=jnp.float32,
                          precision=precision)
    acc = acc + b_ref[...]                           # bias broadcast over lanes
    o_ref[...] = acc.astype(o_ref.dtype)


# ---------------------------------------------------------------------------
# Generation-aware VMEM sizing + lane-padding-aware tile selection.
# ---------------------------------------------------------------------------
@functools.lru_cache(maxsize=1)
def _tpu_config():
    """Returns (vmem_limit_bytes, tiler_budget_bytes, num_tensorcores)."""
    vmem_cap = 128 * 1024 * 1024
    num_cores = 1
    try:
        info = pltpu.get_tpu_info()
        vmem_cap = int(getattr(info, "vmem_capacity_bytes", vmem_cap))
        for attr in ("num_tensorcores", "tensorcore_count", "num_cores"):
            v = getattr(info, attr, None)
            if v:
                num_cores = max(num_cores, int(v))
                break
    except Exception:
        pass
    if vmem_cap <= 64 * 1024 * 1024:
        # v7x-class: 64 MiB VMEM per TensorCore, 2 TCs per chip.
        return 36 * 1024 * 1024, 22 * 1024 * 1024, max(num_cores, 2)
    # v5e / v6e: 128 MiB VMEM, single TensorCore.
    return 96 * 1024 * 1024, 60 * 1024 * 1024, num_cores


def _auto_block_rows(B, Cp, Vp, Cout, KCp, in_isz, out_isz, budget_bytes):
    Coutp = _round_up(Cout, 8)

    def est(tb):
        lv = _lane(Vp)
        x_blk = 2 * tb * Cp * lv * in_isz            # double-buffered input tile
        o_blk = 2 * Coutp * _lane(tb * Vp) * out_isz  # double-buffered output tile
        h_scr = tb * Vp * _lane(KCp) * in_isz         # concat scratch
        hop32 = tb * Cp * lv * 4                      # f32 hop matmul result temp
        hop_c = tb * Cp * lv * in_isz                 # chained hop in compute dtype
        tpose = tb * Vp * _lane(Cp) * in_isz          # transposed hop temp
        acc32 = Coutp * _lane(tb * Vp) * 4            # f32 MLP accumulator
        return x_blk + o_blk + h_scr + hop32 + hop_c + tpose + acc32

    tb = 1024
    while tb > 8 and est(tb) > budget_bytes:
        tb //= 2
    while tb > 8 and tb >= 2 * B:                    # don't over-tile tiny inputs
        tb //= 2
    return tb


def _normalize_block_rows(tb, Vp):
    tb = max(8, _round_up(int(tb), 8))
    while (tb * Vp) % 128 != 0:                      # lane-dense output block
        tb += 8
    return tb


# ---------------------------------------------------------------------------
# Forward wrapper (layout glue once in XLA, in the narrow dtype; heavy traffic fused).
# ---------------------------------------------------------------------------
@functools.partial(jax.jit, static_argnames=("order", "block_rows", "compute_dtype",
                                             "out_dtype", "matmul_precision"))
def gcn_forward(x, supports, weight, bias, order=2, *, block_rows=None,
                compute_dtype=jnp.bfloat16, out_dtype=None, matmul_precision=None):
    """Matches gwnet gcn.forward.

    x: (N, C, V, L), supports: list of (V, V),
    weight: (Cout, (order*len(supports)+1)*C), bias: (Cout,)
    returns (N, Cout, V, L).
    """
    N, C, V, L = x.shape
    S = len(supports)
    assert S >= 1
    K = order * S + 1
    Cout, Ctot = weight.shape
    assert Ctot == K * C, (Ctot, K, C)

    out_dtype = x.dtype if out_dtype is None else jnp.dtype(out_dtype)
    in_isz = jnp.dtype(compute_dtype).itemsize
    out_isz = jnp.dtype(out_dtype).itemsize
    sub = 8 * max(1, 4 // in_isz)        # sublane tile of the compute dtype
    Cp = _round_up(C, sub)               # -> in-kernel reshapes stay layout-free
    Vp = _round_up(V, sub)
    KCp = K * Cp
    B = N * L

    vmem_limit, tiler_budget, num_cores = _tpu_config()

    if block_rows is None:
        resident = (2 * (S * Vp * _lane(Vp) + _round_up(Cout, 8) * _lane(KCp)) * in_isz
                    + 2 * _round_up(Cout, 8) * 128 * 4)
        TB = _auto_block_rows(B, Cp, Vp, Cout, KCp, in_isz, out_isz,
                              max(2 * 1024 * 1024, tiler_budget - resident))
        if num_cores >= 2:
            # keep >= 2 grid tiles so both TensorCores (v7x) stay busy
            TB = min(TB, _round_up(max(8, -(-B // 2)), 8))
    else:
        TB = block_rows
    TB = _normalize_block_rows(TB, Vp)
    Bp = _round_up(B, TB)

    # activations: cast to compute dtype FIRST so the relayout pass moves 2-byte
    # data; (N, C, V, L) -> rows (n, l) -> padded (Bp, Cp, Vp)
    x_r = jnp.transpose(x.astype(compute_dtype), (0, 3, 1, 2)).reshape(B, C, V)
    x_r = jnp.pad(x_r, ((0, Bp - B), (0, Cp - C), (0, Vp - V)))

    a_stack = jnp.stack(supports).astype(compute_dtype)          # (S, V, V)
    a_stack = jnp.pad(a_stack, ((0, 0), (0, Vp - V), (0, Vp - V)))

    # 1x1-conv weight packed as ONE (Cout, K*Cp) matrix; hop-k block occupies
    # columns [k*Cp, (k+1)*Cp) (padded channels zero), matching the torch concat
    # order [x, s0 hop1..order, s1 hop1..order, ...].
    w3 = jnp.pad(weight.reshape(Cout, K, C), ((0, 0), (0, 0), (0, Cp - C)))
    w_packed = w3.reshape(Cout, KCp).astype(compute_dtype)

    b_col = bias.reshape(Cout, 1).astype(jnp.float32)

    grid = (Bp // TB,)
    kernel = functools.partial(_gcn_fused_kernel, precision=matmul_precision)
    out2d = pl.pallas_call(
        kernel,
        out_shape=jax.ShapeDtypeStruct((Cout, Bp * Vp), out_dtype),
        grid_spec=pltpu.PrefetchScalarGridSpec(
            num_scalar_prefetch=0,
            grid=grid,
            in_specs=[
                pl.BlockSpec((TB, Cp, Vp), lambda i: (i, 0, 0)),
                pl.BlockSpec((S, Vp, Vp), lambda i: (0, 0, 0)),
                pl.BlockSpec((Cout, KCp), lambda i: (0, 0)),
                pl.BlockSpec((Cout, 1), lambda i: (0, 0)),
            ],
            out_specs=pl.BlockSpec((Cout, TB * Vp), lambda i: (0, i)),
            scratch_shapes=[pltpu.VMEM((TB * Vp, KCp), compute_dtype)],
        ),
        compiler_params=pltpu.CompilerParams(
            dimension_semantics=("parallel",),
            vmem_limit_bytes=int(vmem_limit),
        ),
    )(x_r, a_stack, w_packed, b_col)

    # (Cout, Bp*Vp) -> (N, Cout, V, L)   (done in out_dtype; pass out_dtype=bf16
    # on bandwidth-bound parts if the consumer tolerates it)
    out = out2d.reshape(Cout, Bp, Vp)[:, :B, :V]
    out = out.reshape(Cout, N, L, V)
    return jnp.transpose(out, (1, 0, 3, 2))


# ---------------------------------------------------------------------------
# Pure-JAX reference (correctness check).
# ---------------------------------------------------------------------------
def gcn_reference(x, supports, weight, bias, order=2):
    hp = jax.lax.Precision.HIGHEST
    out = [x]
    for a in supports:
        x1 = jnp.einsum("ncvl,vw->ncwl", x, a, precision=hp)
        out.append(x1)
        for _ in range(2, order + 1):
            x1 = jnp.einsum("ncvl,vw->ncwl", x1, a, precision=hp)
            out.append(x1)
    h = jnp.concatenate(out, axis=1)
    o = jnp.einsum("oc,ncvl->novl", weight, h, precision=hp)
    return o + bias[None, :, None, None]


# ---------------------------------------------------------------------------
if __name__ == "__main__":
    # small shapes consistent with the module defaults (c_in = c_out = 32,
    # support_len = 3, order = 2)
    N, C, V, L = 2, 32, 16, 8
    SUPPORT_LEN, ORDER = 3, 2
    C_OUT = 32
    C_TOTAL = (ORDER * SUPPORT_LEN + 1) * C    # 224

    key = jax.random.PRNGKey(0)
    kx, ks, kw, kb = jax.random.split(key, 4)

    x = jax.random.normal(kx, (N, C, V, L), dtype=jnp.float32)
    supports = [
        jax.random.uniform(k, (V, V), dtype=jnp.float32) / V
        for k in jax.random.split(ks, SUPPORT_LEN)
    ]
    weight = jax.random.normal(kw, (C_OUT, C_TOTAL), dtype=jnp.float32) * 0.05
    bias = jax.random.normal(kb, (C_OUT,), dtype=jnp.float32) * 0.05

    ref = gcn_reference(x, supports, weight, bias, order=ORDER)

    # Default (performance) path: bf16 MXU inputs, f32 accumulation, fused MLP.
    out_bf16 = jax.block_until_ready(
        gcn_forward(x, supports, weight, bias, order=ORDER))
    assert out_bf16.shape == (N, C_OUT, V, L), out_bf16.shape
    assert jnp.allclose(out_bf16, ref, atol=5e-2, rtol=5e-2), float(
        jnp.max(jnp.abs(out_bf16 - ref)))

    # f32 path with a multi-step grid (exercises the pipeline / index maps).
    out_f32 = jax.block_until_ready(
        gcn_forward(x, supports, weight, bias, order=ORDER,
                    block_rows=8, compute_dtype=jnp.float32))
    assert jnp.allclose(out_f32, ref, atol=2e-3, rtol=2e-3), float(
        jnp.max(jnp.abs(out_f32 - ref)))

    print("KERNEL_OK")
</pallas_src>

<mosaic_0001>
module attributes {stable_mosaic.version = 11 : i64} {
  func.func @_gcn_fused_kernel(%arg0: i32, %arg1: memref<16x32x16xbf16, #tpu.memory_space<vmem>>, %arg2: memref<3x16x16xbf16, #tpu.memory_space<vmem>>, %arg3: memref<32x224xbf16, #tpu.memory_space<vmem>>, %arg4: memref<32x1xf32, #tpu.memory_space<vmem>>, %arg5: memref<32x256xf32, #tpu.memory_space<vmem>>, %arg6: memref<256x224xbf16, #tpu.memory_space<vmem>>) attributes {dimension_semantics = [#tpu.dimension_semantics<parallel>], iteration_bounds = array<i64: 1>, scalar_prefetch = 0 : i64, scratch_operands = 1 : i64, tpu.core_type = #tpu.core_type<tc>, window_params = [{transform_indices = @transform_0, window_bounds = array<i64: 16, 32, 16>}, {pipeline_mode = #tpu.pipeline_mode<synchronous>, transform_indices = @transform_1, window_bounds = array<i64: 3, 16, 16>}, {pipeline_mode = #tpu.pipeline_mode<synchronous>, transform_indices = @transform_2, window_bounds = array<i64: 32, 224>}, {pipeline_mode = #tpu.pipeline_mode<synchronous>, transform_indices = @transform_3, window_bounds = array<i64: 32, 1>}, {transform_indices = @transform_4, window_bounds = array<i64: 32, 256>}]} {
    %c0 = arith.constant 0 : index
    %c0_0 = arith.constant 0 : index
    %c0_1 = arith.constant 0 : index
    %0 = vector.load %arg1[%c0, %c0_0, %c0_1] : memref<16x32x16xbf16, #tpu.memory_space<vmem>>, vector<16x32x16xbf16>
    %1 = tpu.transpose %0, [0, 2, 1] : vector<16x32x16xbf16> -> vector<16x16x32xbf16>
    %2 = vector.shape_cast %1 : vector<16x16x32xbf16> to vector<256x32xbf16>
    %c0_2 = arith.constant 0 : index
    %c0_3 = arith.constant 0 : index
    %3 = vector.load %arg6[%c0_2, %c0_3] : memref<256x224xbf16, #tpu.memory_space<vmem>>, vector<256x32xbf16>
    tpu.vector_store %arg6[%c0_2, %c0_3], %2 {strides = array<i32>} : memref<256x224xbf16, #tpu.memory_space<vmem>>, vector<256x32xbf16>,
    %c0_4 = arith.constant 0 : index
    %c0_5 = arith.constant 0 : index
    %c0_6 = arith.constant 0 : index
    %4 = vector.load %arg2[%c0_4, %c0_5, %c0_6] : memref<3x16x16xbf16, #tpu.memory_space<vmem>>, vector<1x16x16xbf16>
    %5 = vector.shape_cast %4 : vector<1x16x16xbf16> to vector<16x16xbf16>
    %6 = vector.shape_cast %0 : vector<16x32x16xbf16> to vector<512x16xbf16>
    %cst = arith.constant dense<0.000000e+00> : vector<512x16xf32>
    %7 = tpu.matmul %6, %5, %cst {dimension_numbers = #tpu.dot_dimension_numbers<[1], [0], [0], [1], [0, 0, 1, 1], [], []>} : vector<512x16xbf16>, vector<16x16xbf16>, vector<512x16xf32> -> vector<512x16xf32>
    %8 = vector.shape_cast %7 : vector<512x16xf32> to vector<16x32x16xf32>
    %9 = arith.truncf %8 : vector<16x32x16xf32> to vector<16x32x16xbf16>
    %10 = tpu.transpose %9, [0, 2, 1] : vector<16x32x16xbf16> -> vector<16x16x32xbf16>
    %11 = vector.shape_cast %10 : vector<16x16x32xbf16> to vector<256x32xbf16>
    %c0_7 = arith.constant 0 : index
    %c32 = arith.constant 32 : index
    %12 = vector.load %arg6[%c0_7, %c32] : memref<256x224xbf16, #tpu.memory_space<vmem>>, vector<256x32xbf16>
    tpu.vector_store %arg6[%c0_7, %c32], %11 {strides = array<i32>} : memref<256x224xbf16, #tpu.memory_space<vmem>>, vector<256x32xbf16>,
    %13 = vector.shape_cast %9 : vector<16x32x16xbf16> to vector<512x16xbf16>
    %cst_8 = arith.constant dense<0.000000e+00> : vector<512x16xf32>
    %14 = tpu.matmul %13, %5, %cst_8 {dimension_numbers = #tpu.dot_dimension_numbers<[1], [0], [0], [1], [0, 0, 1, 1], [], []>} : vector<512x16xbf16>, vector<16x16xbf16>, vector<512x16xf32> -> vector<512x16xf32>
    %15 = vector.shape_cast %14 : vector<512x16xf32> to vector<16x32x16xf32>
    %16 = arith.truncf %15 : vector<16x32x16xf32> to vector<16x32x16xbf16>
    %17 = tpu.transpose %16, [0, 2, 1] : vector<16x32x16xbf16> -> vector<16x16x32xbf16>
    %18 = vector.shape_cast %17 : vector<16x16x32xbf16> to vector<256x32xbf16>
    %c0_9 = arith.constant 0 : index
    %c64 = arith.constant 64 : index
    %19 = vector.load %arg6[%c0_9, %c64] : memref<256x224xbf16, #tpu.memory_space<vmem>>, vector<256x32xbf16>
    tpu.vector_store %arg6[%c0_9, %c64], %18 {strides = array<i32>} : memref<256x224xbf16, #tpu.memory_space<vmem>>, vector<256x32xbf16>,
    %c1 = arith.constant 1 : index
    %c0_10 = arith.constant 0 : index
    %c0_11 = arith.constant 0 : index
    %20 = vector.load %arg2[%c1, %c0_10, %c0_11] : memref<3x16x16xbf16, #tpu.memory_space<vmem>>, vector<1x16x16xbf16>
    %21 = vector.shape_cast %20 : vector<1x16x16xbf16> to vector<16x16xbf16>
    %22 = vector.shape_cast %0 : vector<16x32x16xbf16> to vector<512x16xbf16>
    %cst_12 = arith.constant dense<0.000000e+00> : vector<512x16xf32>
    %23 = tpu.matmul %22, %21, %cst_12 {dimension_numbers = #tpu.dot_dimension_numbers<[1], [0], [0], [1], [0, 0, 1, 1], [], []>} : vector<512x16xbf16>, vector<16x16xbf16>, vector<512x16xf32> -> vector<512x16xf32>
    %24 = vector.shape_cast %23 : vector<512x16xf32> to vector<16x32x16xf32>
    %25 = arith.truncf %24 : vector<16x32x16xf32> to vector<16x32x16xbf16>
    %26 = tpu.transpose %25, [0, 2, 1] : vector<16x32x16xbf16> -> vector<16x16x32xbf16>
    %27 = vector.shape_cast %26 : vector<16x16x32xbf16> to vector<256x32xbf16>
    %c0_13 = arith.constant 0 : index
    %c96 = arith.constant 96 : index
    %28 = vector.load %arg6[%c0_13, %c96] : memref<256x224xbf16, #tpu.memory_space<vmem>>, vector<256x32xbf16>
    tpu.vector_store %arg6[%c0_13, %c96], %27 {strides = array<i32>} : memref<256x224xbf16, #tpu.memory_space<vmem>>, vector<256x32xbf16>,
    %29 = vector.shape_cast %25 : vector<16x32x16xbf16> to vector<512x16xbf16>
    %cst_14 = arith.constant dense<0.000000e+00> : vector<512x16xf32>
    %30 = tpu.matmul %29, %21, %cst_14 {dimension_numbers = #tpu.dot_dimension_numbers<[1], [0], [0], [1], [0, 0, 1, 1], [], []>} : vector<512x16xbf16>, vector<16x16xbf16>, vector<512x16xf32> -> vector<512x16xf32>
    %31 = vector.shape_cast %30 : vector<512x16xf32> to vector<16x32x16xf32>
    %32 = arith.truncf %31 : vector<16x32x16xf32> to vector<16x32x16xbf16>
    %33 = tpu.transpose %32, [0, 2, 1] : vector<16x32x16xbf16> -> vector<16x16x32xbf16>
    %34 = vector.shape_cast %33 : vector<16x16x32xbf16> to vector<256x32xbf16>
    %c0_15 = arith.constant 0 : index
    %c128 = arith.constant 128 : index
    %35 = vector.load %arg6[%c0_15, %c128] : memref<256x224xbf16, #tpu.memory_space<vmem>>, vector<256x32xbf16>
    tpu.vector_store %arg6[%c0_15, %c128], %34 {strides = array<i32>} : memref<256x224xbf16, #tpu.memory_space<vmem>>, vector<256x32xbf16>,
    %c2 = arith.constant 2 : index
    %c0_16 = arith.constant 0 : index
    %c0_17 = arith.constant 0 : index
    %36 = vector.load %arg2[%c2, %c0_16, %c0_17] : memref<3x16x16xbf16, #tpu.memory_space<vmem>>, vector<1x16x16xbf16>
    %37 = vector.shape_cast %36 : vector<1x16x16xbf16> to vector<16x16xbf16>
    %38 = vector.shape_cast %0 : vector<16x32x16xbf16> to vector<512x16xbf16>
    %cst_18 = arith.constant dense<0.000000e+00> : vector<512x16xf32>
    %39 = tpu.matmul %38, %37, %cst_18 {dimension_numbers = #tpu.dot_dimension_numbers<[1], [0], [0], [1], [0, 0, 1, 1], [], []>} : vector<512x16xbf16>, vector<16x16xbf16>, vector<512x16xf32> -> vector<512x16xf32>
    %40 = vector.shape_cast %39 : vector<512x16xf32> to vector<16x32x16xf32>
    %41 = arith.truncf %40 : vector<16x32x16xf32> to vector<16x32x16xbf16>
    %42 = tpu.transpose %41, [0, 2, 1] : vector<16x32x16xbf16> -> vector<16x16x32xbf16>
    %43 = vector.shape_cast %42 : vector<16x16x32xbf16> to vector<256x32xbf16>
    %c0_19 = arith.constant 0 : index
    %c160 = arith.constant 160 : index
    %44 = vector.load %arg6[%c0_19, %c160] : memref<256x224xbf16, #tpu.memory_space<vmem>>, vector<256x32xbf16>
    tpu.vector_store %arg6[%c0_19, %c160], %43 {strides = array<i32>} : memref<256x224xbf16, #tpu.memory_space<vmem>>, vector<256x32xbf16>,
    %45 = vector.shape_cast %41 : vector<16x32x16xbf16> to vector<512x16xbf16>
    %cst_20 = arith.constant dense<0.000000e+00> : vector<512x16xf32>
    %46 = tpu.matmul %45, %37, %cst_20 {dimension_numbers = #tpu.dot_dimension_numbers<[1], [0], [0], [1], [0, 0, 1, 1], [], []>} : vector<512x16xbf16>, vector<16x16xbf16>, vector<512x16xf32> -> vector<512x16xf32>
    %47 = vector.shape_cast %46 : vector<512x16xf32> to vector<16x32x16xf32>
    %48 = arith.truncf %47 : vector<16x32x16xf32> to vector<16x32x16xbf16>
    %49 = tpu.transpose %48, [0, 2, 1] : vector<16x32x16xbf16> -> vector<16x16x32xbf16>
    %50 = vector.shape_cast %49 : vector<16x16x32xbf16> to vector<256x32xbf16>
    %c0_21 = arith.constant 0 : index
    %c192 = arith.constant 192 : index
    %51 = vector.load %arg6[%c0_21, %c192] : memref<256x224xbf16, #tpu.memory_space<vmem>>, vector<256x32xbf16>
    tpu.vector_store %arg6[%c0_21, %c192], %50 {strides = array<i32>} : memref<256x224xbf16, #tpu.memory_space<vmem>>, vector<256x32xbf16>,
    %c0_22 = arith.constant 0 : index
    %c0_23 = arith.constant 0 : index
    %52 = vector.load %arg3[%c0_22, %c0_23] : memref<32x224xbf16, #tpu.memory_space<vmem>>, vector<32x224xbf16>
    %c0_24 = arith.constant 0 : index
    %c0_25 = arith.constant 0 : index
    %53 = vector.load %arg6[%c0_24, %c0_25] : memref<256x224xbf16, #tpu.memory_space<vmem>>, vector<256x224xbf16>
    %cst_26 = arith.constant dense<0.000000e+00> : vector<32x256xf32>
    %54 = tpu.matmul %52, %53, %cst_26 {dimension_numbers = #tpu.dot_dimension_numbers<[1], [1], [0], [0], [0, 0, 1, 0], [], []>} : vector<32x224xbf16>, vector<256x224xbf16>, vector<32x256xf32> -> vector<32x256xf32>
    %c0_27 = arith.constant 0 : index
    %c0_28 = arith.constant 0 : index
    %55 = vector.load %arg4[%c0_27, %c0_28] : memref<32x1xf32, #tpu.memory_space<vmem>>, vector<32x1xf32>
    %56 = vector.broadcast %55 : vector<32x1xf32> to vector<32x256xf32>
    %57 = arith.addf %54, %56 : vector<32x256xf32>
    %c0_29 = arith.constant 0 : index
    %c0_30 = arith.constant 0 : index
    %58 = vector.load %arg5[%c0_29, %c0_30] : memref<32x256xf32, #tpu.memory_space<vmem>>, vector<32x256xf32>
    tpu.vector_store %arg5[%c0_29, %c0_30], %57 {strides = array<i32>} : memref<32x256xf32, #tpu.memory_space<vmem>>, vector<32x256xf32>,
    return
  }
  func.func @transform_0(%arg0: i32) -> (i32, i32, i32) {
    %c0_i32 = arith.constant 0 : i32
    %c0_i32_0 = arith.constant 0 : i32
    %c0_i32_1 = arith.constant 0 : i32
    return %arg0, %c0_i32, %c0_i32_0 : i32, i32, i32
  }
  func.func @transform_1(%arg0: i32) -> (i32, i32, i32) {
    %c0_i32 = arith.constant 0 : i32
    %c0_i32_0 = arith.constant 0 : i32
    %c0_i32_1 = arith.constant 0 : i32
    %c0_i32_2 = arith.constant 0 : i32
    return %c0_i32, %c0_i32_0, %c0_i32_1 : i32, i32, i32
  }
  func.func @transform_2(%arg0: i32) -> (i32, i32) {
    %c0_i32 = arith.constant 0 : i32
    %c0_i32_0 = arith.constant 0 : i32
    %c0_i32_1 = arith.constant 0 : i32
    return %c0_i32, %c0_i32_0 : i32, i32
  }
  func.func @transform_3(%arg0: i32) -> (i32, i32) {
    %c0_i32 = arith.constant 0 : i32
    %c0_i32_0 = arith.constant 0 : i32
    %c0_i32_1 = arith.constant 0 : i32
    return %c0_i32, %c0_i32_0 : i32, i32
  }
  func.func @transform_4(%arg0: i32) -> (i32, i32) {
    %c0_i32 = arith.constant 0 : i32
    %c0_i32_0 = arith.constant 0 : i32
    return %c0_i32, %arg0 : i32, i32
  }
}

</mosaic_0001>

<bundles_post_ra>
// kernel: gcn_forward.1
= control target key start
LH: loop header
LB: loop body
LE: loop exit
PB: predicated region body
PF: predicated region fallthrough
CT: control target
= control target key end

     0   :  { %vm683_vm0 = vcmask 130048   ;;  %vm642_vm1 = vcmask 257024   ;;  %s7269_s6 = smov 64   ;;  %vm1533_vm2 = vcmask 519424   ;;  %s7270_s7 = smov 96   ;;  %vm2415_vm3 = vcmask 781824   ;;  %s8993_s1 = inlined_call_operand.vmem [shape: bf16[3,16,16], index: 1, kind: input, shape index: {}]   ;;  %s8994_s0 = inlined_call_operand.vmem [shape: bf16[16,32,16], index: 0, kind: input, shape index: {}]   ;;  %s8995_s2 = inlined_call_operand.vmem [shape: bf16[32,224], index: 2, kind: input, shape index: {}]   ;;  %s8996_s3 = inlined_call_operand.vmem [shape: f32[32,1], index: 3, kind: input, shape index: {}]   ;;  %s8997_s4 = inlined_call_operand.vmem [shape: f32[32,256], index: 4, kind: output, shape index: {}]  }
   0x1   :  { %v7188_v0 = vld [vmem:[%s8993_s1] sm:$0xff]   ;;  %v7308_v2 = vld [vmem:[%s8994_s0 + $0xf0] sm:$0xff]   ;;  %v7313_v3 = vld [vmem:[%s8994_s0 + $0x8] sm:$0xff]   ;;  %vm3210_vm4 = vcmask 1044224   ;;  %vm5957_vm5 = vcmask 785408  }
   0x2   :  { %v7303_v1 = vld [vmem:[%s8994_s0] sm:$0xff]   ;;  %6784 = vmatprep.subr.bf16.mxu0 %v7188_v0  ;;  %7180 = vmatprep.subr.bf16.mxu1 %v7188_v0  ;;  %v7322_v4 = vld [vmem:[%s8994_s0 + $0xf8] sm:$0xff]   ;;  %v7327_v5 = vld [vmem:[%s8994_s0 + $0x10] sm:$0xff]  }
   0x3   :  { %6785 = vmatpush3.bf16.msra.mxu0 %v7188_v0  ;;  %7181 = vmatpush3.bf16.msra.mxu1 %v7188_v0  ;;  %v7339_v6 = vld [vmem:[%s8993_s1 + $0x8] sm:$0xff]   ;;  %v7345_v7 = vld [vmem:[%s8994_s0 + $0x18] sm:$0xff]   ;;  %v7354_v8 = vld [vmem:[%s8994_s0 + $0x20] sm:$0xff]  }
   0x4   :  { %6786 = vmatprep.mubr.msk.bf16.mxu0 %vm683_vm0, %v7303_v1  ;;  %6846 = vmatprep.mubr.msk.bf16.mxu1 %vm683_vm0, %v7308_v2  ;;  %v7360_v9 = vld [vmem:[%s8994_s0 + $0x30] sm:$0xff]   ;;  %v7370_v10 = vld [vmem:[%s8994_s0 + $0x28] sm:$0xff]   ;;  %v7376_v11 = vld [vmem:[%s8994_s0 + $0x38] sm:$0xff]  }
   0x5   :  { %274 = vxpose.xlu0.c.b16.start [1/2] (short) (narrow) %v7303_v1, 16  ;;  %6850 = vmatprep.subr.bf16.mxu1 %v7188_v0  ;;  %v7382_v12 = vld [vmem:[%s8994_s0 + $0x40] sm:$0xff]   ;;  %v7388_v13 = vld [vmem:[%s8994_s0 + $0x50] sm:$0xff]   ;;  %v7398_v14 = vld [vmem:[%s8994_s0 + $0x48] sm:$0xff]  }
   0x6   :  { %6787 = vmatmul.mubr.msk.bf16.vlgmr.msra.gmra.mxu0 %vm683_vm0, %v7313_v3  ;;  %6847 = vmatmul.mubr.msk.bf16.vlgmr.msra.gmra.mxu1 %vm683_vm0, %v7322_v4  ;;  %v7404_v15 = vld [vmem:[%s8994_s0 + $0x58] sm:$0xff]   ;;  %v7410_v16 = vld [vmem:[%s8994_s0 + $0x60] sm:$0xff]   ;;  %v7416_v17 = vld [vmem:[%s8994_s0 + $0x70] sm:$0xff]  }
   0x7   :  { %6790 = vmatprep.mubr.msk.bf16.mxu0 %vm683_vm0, %v7327_v5  ;;  %290 = vxpose.xlu1.c.b16.start [1/2] (short) (narrow) %v7327_v5, 16  ;;  %v7426_v18 = vld [vmem:[%s8994_s0 + $0x68] sm:$0xff]   ;;  %v7432_v19 = vld [vmem:[%s8994_s0 + $0x78] sm:$0xff]   ;;  %v7438_v20 = vld [vmem:[%s8993_s1 + $0x10] sm:$0xff]  }
   0x8   :  { %6851 = vmatpush3.bf16.msra.mxu1 %v7188_v0  ;;  %6916 = vmatprep.subr.bf16.mxu0 %v7339_v6  ;;  %v7443_v21 = vld [vmem:[%s8994_s0 + $0x80] sm:$0xff]   ;;  %v7450_v22 = vld [vmem:[%s8994_s0 + $0x90] sm:$0xff]   ;;  %v7460_v23 = vld [vmem:[%s8994_s0 + $0x88] sm:$0xff]  }
   0x9   :  { %275 = vxpose.xlu0.c.b16.end [2/2] (short) (narrow) %v7313_v3, 16  ;;  %6917 = vmatpush3.bf16.msra.mxu0 %v7339_v6  ;;  %v7466_v24 = vld [vmem:[%s8994_s0 + $0x98] sm:$0xff]   ;;  %v7472_v25 = vld [vmem:[%s8994_s0 + $0xa0] sm:$0xff]   ;;  %v7478_v26 = vld [vmem:[%s8994_s0 + $0xb0] sm:$0xff]  }
   0xa   :  { %6982 = vmatprep.subr.bf16.mxu1 %v7339_v6  ;;  %7048 = vmatprep.subr.bf16.mxu0 %v7438_v20  ;;  %v7488_v27 = vld [vmem:[%s8994_s0 + $0xa8] sm:$0xff]   ;;  %v7494_v28 = vld [vmem:[%s8994_s0 + $0xb8] sm:$0xff]   ;;  %v7500_v29 = vld [vmem:[%s8994_s0 + $0xc0] sm:$0xff]  }
   0xb   :  { %291 = vxpose.xlu1.c.b16.end [2/2] (short) (narrow) %v7345_v7, 16  ;;  %v7506_v30 = vld [vmem:[%s8994_s0 + $0xd0] sm:$0xff]   ;;  %v7516_v31 = vld [vmem:[%s8994_s0 + $0xc8] sm:$0xff]   ;;  %v7522_v32 = vld [vmem:[%s8994_s0 + $0xd8] sm:$0xff]  }
   0xc   :  { %v7528_v33 = vld [vmem:[%s8994_s0 + $0xe0] sm:$0xff]   ;;  %v7539_v34 = vld [vmem:[%s8994_s0 + $0xe8] sm:$0xff]   ;;  %s7268_s0 = smov 32  }
   0xd   :  { %306 = vxpose.xlu0.c.b16.start [1/2] (short) (narrow) %v7354_v8, 16 }
   0xe   :  { %6791 = vmatmul.mubr.msk.bf16.gmra.mxu0 %vm683_vm0, %v7345_v7 }
   0xf   :  { %6794 = vmatprep.mubr.msk.bf16.mxu0 %vm683_vm0, %v7354_v8  ;;  %322 = vxpose.xlu1.c.b16.start [1/2] (short) (narrow) %v7360_v9, 16 }
  0x11   :  { %307 = vxpose.xlu0.c.b16.end [2/2] (short) (narrow) %v7370_v10, 16 }
  0x13   :  { %323 = vxpose.xlu1.c.b16.end [2/2] (short) (narrow) %v7376_v11, 16 }
  0x15   :  { %338 = vxpose.xlu0.c.b16.start [1/2] (short) (narrow) %v7382_v12, 16 }
  0x16   :  { %6795 = vmatmul.mubr.msk.bf16.gmra.mxu0 %vm683_vm0, %v7370_v10 }
  0x17   :  { %6798 = vmatprep.mubr.msk.bf16.mxu0 %vm683_vm0, %v7360_v9  ;;  %354 = vxpose.xlu1.c.b16.start [1/2] (short) (narrow) %v7388_v13, 16 }
  0x19   :  { %339 = vxpose.xlu0.c.b16.end [2/2] (short) (narrow) %v7398_v14, 16 }
  0x1b   :  { %355 = vxpose.xlu1.c.b16.end [2/2] (short) (narrow) %v7404_v15, 16 }
  0x1d   :  { %370 = vxpose.xlu0.c.b16.start [1/2] (short) (narrow) %v7410_v16, 16 }
  0x1e   :  { %6799 = vmatmul.mubr.msk.bf16.gmra.mxu0 %vm683_vm0, %v7376_v11 }
  0x1f   :  { %6802 = vmatprep.mubr.msk.bf16.mxu0 %vm683_vm0, %v7382_v12  ;;  %386 = vxpose.xlu1.c.b16.start [1/2] (short) (narrow) %v7416_v17, 16 }
  0x21   :  { %371 = vxpose.xlu0.c.b16.end [2/2] (short) (narrow) %v7426_v18, 16 }
  0x23   :  { %387 = vxpose.xlu1.c.b16.end [2/2] (short) (narrow) %v7432_v19, 16 }
  0x25   :  { %402 = vxpose.xlu0.c.b16.start [1/2] (short) (narrow) %v7443_v21, 16 }
  0x26   :  { %6803 = vmatmul.mubr.msk.bf16.gmra.mxu0 %vm683_vm0, %v7398_v14 }
  0x27   :  { %6806 = vmatprep.mubr.msk.bf16.mxu0 %vm683_vm0, %v7388_v13  ;;  %418 = vxpose.xlu1.c.b16.start [1/2] (short) (narrow) %v7450_v22, 16 }
  0x29   :  { %403 = vxpose.xlu0.c.b16.end [2/2] (short) (narrow) %v7460_v23, 16 }
  0x2b   :  { %419 = vxpose.xlu1.c.b16.end [2/2] (short) (narrow) %v7466_v24, 16 }
  0x2d   :  { %434 = vxpose.xlu0.c.b16.start [1/2] (short) (narrow) %v7472_v25, 16 }
  0x2e   :  { %6807 = vmatmul.mubr.msk.bf16.gmra.mxu0 %vm683_vm0, %v7404_v15 }
  0x2f   :  { %6810 = vmatprep.mubr.msk.bf16.mxu0 %vm683_vm0, %v7410_v16  ;;  %450 = vxpose.xlu1.c.b16.start [1/2] (short) (narrow) %v7478_v26, 16 }
  0x31   :  { %435 = vxpose.xlu0.c.b16.end [2/2] (short) (narrow) %v7488_v27, 16 }
  0x33   :  { %451 = vxpose.xlu1.c.b16.end [2/2] (short) (narrow) %v7494_v28, 16 }
  0x35   :  { %466 = vxpose.xlu0.c.b16.start [1/2] (short) (narrow) %v7500_v29, 16 }
  0x36   :  { %6811 = vmatmul.mubr.msk.bf16.gmra.mxu0 %vm683_vm0, %v7426_v18 }
  0x37   :  { %6814 = vmatprep.mubr.msk.bf16.mxu0 %vm683_vm0, %v7416_v17  ;;  %482 = vxpose.xlu1.c.b16.start [1/2] (short) (narrow) %v7506_v30, 16 }
  0x39   :  { %467 = vxpose.xlu0.c.b16.end [2/2] (short) (narrow) %v7516_v31, 16 }
  0x3b   :  { %483 = vxpose.xlu1.c.b16.end [2/2] (short) (narrow) %v7522_v32, 16 }
  0x3d   :  { %498 = vxpose.xlu0.c.b16.start [1/2] (short) (narrow) %v7528_v33, 16 }
  0x3e   :  { %6815 = vmatmul.mubr.msk.bf16.gmra.mxu0 %vm683_vm0, %v7432_v19 }
  0x3f   :  { %6818 = vmatprep.mubr.msk.bf16.mxu0 %vm683_vm0, %v7443_v21  ;;  %514 = vxpose.xlu1.c.b16.start [1/2] (short) (narrow) %v7308_v2, 16 }
  0x41   :  { %499 = vxpose.xlu0.c.b16.end [2/2] (short) (narrow) %v7539_v34, 16 }
  0x43   :  { %515 = vxpose.xlu1.c.b16.end [2/2] (short) (narrow) %v7322_v4, 16 }
  0x46   :  { %6819 = vmatmul.mubr.msk.bf16.gmra.mxu0 %vm683_vm0, %v7460_v23 }
  0x47   :  { %6822 = vmatprep.mubr.msk.bf16.mxu0 %vm683_vm0, %v7450_v22 }
  0x4e   :  { %6823 = vmatmul.mubr.msk.bf16.gmra.mxu0 %vm683_vm0, %v7466_v24 }
  0x4f   :  { %6826 = vmatprep.mubr.msk.bf16.mxu0 %vm683_vm0, %v7472_v25 }
  0x56   :  { %6827 = vmatmul.mubr.msk.bf16.gmra.mxu0 %vm683_vm0, %v7488_v27 }
  0x57   :  { %6830 = vmatprep.mubr.msk.bf16.mxu0 %vm683_vm0, %v7478_v26 }
  0x5e   :  { %6831 = vmatmul.mubr.msk.bf16.gmra.mxu0 %vm683_vm0, %v7494_v28 }
  0x5f   :  { %6834 = vmatprep.mubr.msk.bf16.mxu0 %vm683_vm0, %v7500_v29 }
  0x66   :  { %6835 = vmatmul.mubr.msk.bf16.gmra.mxu0 %vm683_vm0, %v7516_v31 }
  0x67   :  { %6838 = vmatprep.mubr.msk.bf16.mxu0 %vm683_vm0, %v7506_v30 }
  0x6e   :  { %6839 = vmatmul.mubr.msk.bf16.gmra.mxu0 %vm683_vm0, %v7522_v32 }
  0x6f   :  { %6842 = vmatprep.mubr.msk.bf16.mxu0 %vm683_vm0, %v7528_v33 }
  0x76   :  { %6843 = vmatmul.mubr.msk.bf16.gmra.mxu0 %vm683_vm0, %v7539_v34 }
  0x77   :  { %6918 = vmatprep.mubr.msk.bf16.mxu0 %vm683_vm0, %v7303_v1 }
  0x7e   :  { %6919 = vmatmul.mubr.msk.bf16.vlgmr.msra.gmra.mxu0 %vm683_vm0, %v7313_v3 }
  0x7f   :  { %6922 = vmatprep.mubr.msk.bf16.mxu0 %vm683_vm0, %v7327_v5  ;;  %7049 = vmatpush3.bf16.msra.mxu0 %v7438_v20 }
  0x86   :  { %6923 = vmatmul.mubr.msk.bf16.gmra.mxu0 %vm683_vm0, %v7345_v7 }
  0x87   :  { %6926 = vmatprep.mubr.msk.bf16.mxu0 %vm683_vm0, %v7354_v8 }
  0x8e   :  { %6927 = vmatmul.mubr.msk.bf16.gmra.mxu0 %vm683_vm0, %v7370_v10 }
  0x8f   :  { %6930 = vmatprep.mubr.msk.bf16.mxu0 %vm683_vm0, %v7360_v9 }
  0x96   :  { %6931 = vmatmul.mubr.msk.bf16.gmra.mxu0 %vm683_vm0, %v7376_v11 }
  0x97   :  { %6934 = vmatprep.mubr.msk.bf16.mxu0 %vm683_vm0, %v7382_v12 }
  0x9e   :  { %6935 = vmatmul.mubr.msk.bf16.gmra.mxu0 %vm683_vm0, %v7398_v14 }
  0x9f   :  { %6938 = vmatprep.mubr.msk.bf16.mxu0 %vm683_vm0, %v7388_v13 }
  0xa6   :  { %6939 = vmatmul.mubr.msk.bf16.gmra.mxu0 %vm683_vm0, %v7404_v15 }
  0xa7   :  { %6942 = vmatprep.mubr.msk.bf16.mxu0 %vm683_vm0, %v7410_v16 }
  0xae   :  { %6943 = vmatmul.mubr.msk.bf16.gmra.mxu0 %vm683_vm0, %v7426_v18 }
  0xaf   :  { %6946 = vmatprep.mubr.msk.bf16.mxu0 %vm683_vm0, %v7416_v17 }
  0xb6   :  { %6947 = vmatmul.mubr.msk.bf16.gmra.mxu0 %vm683_vm0, %v7432_v19 }
  0xb7   :  { %6950 = vmatprep.mubr.msk.bf16.mxu0 %vm683_vm0, %v7443_v21 }
  0xbe   :  { %6951 = vmatmul.mubr.msk.bf16.gmra.mxu0 %vm683_vm0, %v7460_v23 }
  0xbf   :  { %6954 = vmatprep.mubr.msk.bf16.mxu0 %vm683_vm0, %v7450_v22 }
  0xc6   :  { %v6788_v35 = vpop.f32.mrf.mxu0  ;;  %v6848_v36 = vpop.f32.mrf.mxu1  ;;  %6955 = vmatmul.mubr.msk.bf16.gmra.mxu0 %vm683_vm0, %v7466_v24 }
  0xc7   :  { %6958 = vmatprep.mubr.msk.bf16.mxu0 %vm683_vm0, %v7472_v25 }
  0xc8   :  { %v814_v37 = vpop.f32.mrf.mxu0  ;;  %v1054_v38 = vpop.f32.mrf.mxu1 }
  0xca   :  { %v6789_v39 = vpop.f32.mrf.mxu0  ;;  %v6849_v40 = vpop.f32.mrf.mxu1 }
  0xcb   :  { %v1070_v46 = vpack.c.bf16 %v6789_v39, %v6788_v35  ;;  %v7617_v47 = vpack.c.bf16 %v6849_v40, %v6848_v36 }
  0xcc   :  { %v817_v41 = vpop.f32.mrf.mxu0  ;;  %v1057_v42 = vpop.f32.mrf.mxu1 }
  0xcd   :  { %v7613_v43 = vpack.c.bf16 %v1057_v42, %v1054_v38  ;;  %v1069_v44 = vpack.c.bf16 %v817_v41, %v814_v37 }
  0xce   :  { %v6792_v45 = vpop.f32.mrf.mxu0  ;;  %6959 = vmatmul.mubr.msk.bf16.gmra.mxu0 %vm683_vm0, %v7488_v27 }
  0xcf   :  { %1341 = vxpose.xlu1.c.b16.start [1/2] (short) (narrow) %v7613_v43, 16  ;;  %1101 = vxpose.xlu0.c.b16.start [1/2] (short) (narrow) %v1069_v44, 16 }
  0xd0   :  { %6852 = vmatprep.mubr.msk.bf16.mxu1 %vm683_vm0, %v1069_v44  ;;  %v830_v48 = vpop.f32.mrf.mxu0  ;;  %6962 = vmatprep.mubr.msk.bf16.mxu0 %vm683_vm0, %v7478_v26 }
  0xd1   :  { %6853 = vmatmul.mubr.msk.bf16.vlgmr.msra.gmra.mxu1 %vm683_vm0, %v1070_v46 }
  0xd2   :  { %6983 = vmatpush3.bf16.msra.mxu1 %v7339_v6  ;;  %v6793_v49 = vpop.f32.mrf.mxu0 }
  0xd3   :  { %1342 = vxpose.xlu1.c.b16.end [2/2] (short) (narrow) %v7617_v47, 16  ;;  %1102 = vxpose.xlu0.c.b16.end [2/2] (short) (narrow) %v1070_v46, 16  ;;  %v1072_v53 = vpack.c.bf16 %v6793_v49, %v6792_v45 }
  0xd4   :  { %v833_v50 = vpop.f32.mrf.mxu0  ;;  %7114 = vmatprep.subr.bf16.mxu1 %v7438_v20 }
  0xd5   :  { %v1071_v51 = vpack.c.bf16 %v833_v50, %v830_v48 }
  0xd6   :  { %v6796_v52 = vpop.f32.mrf.mxu0  ;;  %6963 = vmatmul.mubr.msk.bf16.gmra.mxu0 %vm683_vm0, %v7494_v28 }
  0xd7   :  { %1117 = vxpose.xlu1.c.b16.start [1/2] (short) (narrow) %v1071_v51, 16  ;;  %6856 = vmatprep.mubr.msk.bf16.mxu1 %vm683_vm0, %v1071_v51 }
  0xd8   :  { %v846_v54 = vpop.f32.mrf.mxu0  ;;  %6966 = vmatprep.mubr.msk.bf16.mxu0 %vm683_vm0, %v7500_v29 }
  0xd9   :  { %6857 = vmatmul.mubr.msk.bf16.gmra.mxu1 %vm683_vm0, %v1072_v53 }
  0xda   :  { %v6797_v55 = vpop.f32.mrf.mxu0 }
  0xdb   :  { %1118 = vxpose.xlu1.c.b16.end [2/2] (short) (narrow) %v1072_v53, 16  ;;  %v1074_v59 = vpack.c.bf16 %v6797_v55, %v6796_v52 }
  0xdc   :  { %v849_v56 = vpop.f32.mrf.mxu0 }
  0xdd   :  { %v1073_v57 = vpack.c.bf16 %v849_v56, %v846_v54 }
  0xde   :  { %v6800_v58 = vpop.f32.mrf.mxu0  ;;  %6967 = vmatmul.mubr.msk.bf16.gmra.mxu0 %vm683_vm0, %v7516_v31 }
  0xdf   :  { %1133 = vxpose.xlu0.c.b16.start [1/2] (short) (narrow) %v1073_v57, 16  ;;  %6860 = vmatprep.mubr.msk.bf16.mxu1 %vm683_vm0, %v1073_v57 }
  0xe0   :  { %v862_v60 = vpop.f32.mrf.mxu0  ;;  %6970 = vmatprep.mubr.msk.bf16.mxu0 %vm683_vm0, %v7506_v30 }
  0xe1   :  { %6861 = vmatmul.mubr.msk.bf16.gmra.mxu1 %vm683_vm0, %v1074_v59 }
  0xe2   :  { %v6801_v61 = vpop.f32.mrf.mxu0 }
  0xe3   :  { %1134 = vxpose.xlu0.c.b16.end [2/2] (short) (narrow) %v1074_v59, 16  ;;  %v1076_v6 = vpack.c.bf16 %v6801_v61, %v6800_v58 }
  0xe4   :  { %v865_v62 = vpop.f32.mrf.mxu0 }
  0xe5   :  { %v1075_v63 = vpack.c.bf16 %v865_v62, %v862_v60 }
  0xe6   :  { %v6804_v0 = vpop.f32.mrf.mxu0  ;;  %6971 = vmatmul.mubr.msk.bf16.gmra.mxu0 %vm683_vm0, %v7522_v32 }
  0xe7   :  { %1149 = vxpose.xlu1.c.b16.start [1/2] (short) (narrow) %v1075_v63, 16  ;;  %6864 = vmatprep.mubr.msk.bf16.mxu1 %vm683_vm0, %v1075_v63 }
  0xe8   :  { %v878_v35 = vpop.f32.mrf.mxu0  ;;  %6974 = vmatprep.mubr.msk.bf16.mxu0 %vm683_vm0, %v7528_v33 }
  0xe9   :  { %6865 = vmatmul.mubr.msk.bf16.gmra.mxu1 %vm683_vm0, %v1076_v6 }
  0xea   :  { %v6805_v36 = vpop.f32.mrf.mxu0 }
  0xeb   :  { %1150 = vxpose.xlu1.c.b16.end [2/2] (short) (narrow) %v1076_v6, 16  ;;  %v1078_v40 = vpack.c.bf16 %v6805_v36, %v6804_v0 }
  0xec   :  { %v881_v37 = vpop.f32.mrf.mxu0 }
  0xed   :  { %v1077_v38 = vpack.c.bf16 %v881_v37, %v878_v35 }
  0xee   :  { %v6808_v39 = vpop.f32.mrf.mxu0  ;;  %6975 = vmatmul.mubr.msk.bf16.gmra.mxu0 %vm683_vm0, %v7539_v34 }
  0xef   :  { %1165 = vxpose.xlu0.c.b16.start [1/2] (short) (narrow) %v1077_v38, 16  ;;  %6868 = vmatprep.mubr.msk.bf16.mxu1 %vm683_vm0, %v1077_v38 }
  0xf0   :  { %v894_v41 = vpop.f32.mrf.mxu0  ;;  %6978 = vmatprep.mubr.msk.bf16.mxu0 %vm683_vm0, %v7308_v2 }
  0xf1   :  { %6869 = vmatmul.mubr.msk.bf16.gmra.mxu1 %vm683_vm0, %v1078_v40 }
  0xf2   :  { %v6809_v42 = vpop.f32.mrf.mxu0 }
  0xf3   :  { %1166 = vxpose.xlu0.c.b16.end [2/2] (short) (narrow) %v1078_v40, 16  ;;  %v1080_v48 = vpack.c.bf16 %v6809_v42, %v6808_v39 }
  0xf4   :  { %v897_v44 = vpop.f32.mrf.mxu0 }
  0xf5   :  { %v1079_v45 = vpack.c.bf16 %v897_v44, %v894_v41 }
  0xf6   :  { %v6812_v46 = vpop.f32.mrf.mxu0  ;;  %6979 = vmatmul.mubr.msk.bf16.gmra.mxu0 %vm683_vm0, %v7322_v4 }
  0xf7   :  { %1181 = vxpose.xlu1.c.b16.start [1/2] (short) (narrow) %v1079_v45, 16  ;;  %6872 = vmatprep.mubr.msk.bf16.mxu1 %vm683_vm0, %v1079_v45 }
  0xf8   :  { %v910_v49 = vpop.f32.mrf.mxu0  ;;  %7050 = vmatprep.mubr.msk.bf16.mxu0 %vm683_vm0, %v7303_v1 }
  0xf9   :  { %6873 = vmatmul.mubr.msk.bf16.gmra.mxu1 %vm683_vm0, %v1080_v48 }
  0xfa   :  { %v6813_v50 = vpop.f32.mrf.mxu0 }
  0xfb   :  { %1182 = vxpose.xlu1.c.b16.end [2/2] (short) (narrow) %v1080_v48, 16  ;;  %v1082_v54 = vpack.c.bf16 %v6813_v50, %v6812_v46 }
  0xfc   :  { %v913_v51 = vpop.f32.mrf.mxu0 }
  0xfd   :  { %v1081_v52 = vpack.c.bf16 %v913_v51, %v910_v49 }
  0xfe   :  { %v6816_v53 = vpop.f32.mrf.mxu0  ;;  %7051 = vmatmul.mubr.msk.bf16.vlgmr.msra.gmra.mxu0 %vm683_vm0, %v7313_v3 }
  0xff   :  { %1197 = vxpose.xlu0.c.b16.start [1/2] (short) (narrow) %v1081_v52, 16  ;;  %6876 = vmatprep.mubr.msk.bf16.mxu1 %vm683_vm0, %v1081_v52 }
 0x100   :  { %v926_v55 = vpop.f32.mrf.mxu0  ;;  %7054 = vmatprep.mubr.msk.bf16.mxu0 %vm683_vm0, %v7327_v5 }
 0x101   :  { %6877 = vmatmul.mubr.msk.bf16.gmra.mxu1 %vm683_vm0, %v1082_v54 }
 0x102   :  { %v6817_v1 = vpop.f32.mrf.mxu0 }
 0x103   :  { %1198 = vxpose.xlu0.c.b16.end [2/2] (short) (narrow) %v1082_v54, 16  ;;  %v1084_v59 = vpack.c.bf16 %v6817_v1, %v6816_v53 }
 0x104   :  { %v929_v56 = vpop.f32.mrf.mxu0 }
 0x105   :  { %v1083_v57 = vpack.c.bf16 %v929_v56, %v926_v55 }
 0x106   :  { %v6820_v58 = vpop.f32.mrf.mxu0  ;;  %7055 = vmatmul.mubr.msk.bf16.gmra.mxu0 %vm683_vm0, %v7345_v7 }
 0x107   :  { %1213 = vxpose.xlu1.c.b16.start [1/2] (short) (narrow) %v1083_v57, 16  ;;  %6880 = vmatprep.mubr.msk.bf16.mxu1 %vm683_vm0, %v1083_v57 }
 0x108   :  { %v942_v3 = vpop.f32.mrf.mxu0  ;;  %7058 = vmatprep.mubr.msk.bf16.mxu0 %vm683_vm0, %v7354_v8 }
 0x109   :  { %6881 = vmatmul.mubr.msk.bf16.gmra.mxu1 %vm683_vm0, %v1084_v59 }
 0x10a   :  { %v6821_v5 = vpop.f32.mrf.mxu0 }
 0x10b   :  { %1214 = vxpose.xlu1.c.b16.end [2/2] (short) (narrow) %v1084_v59, 16  ;;  %v1086_v63 = vpack.c.bf16 %v6821_v5, %v6820_v58 }
 0x10c   :  { %v945_v60 = vpop.f32.mrf.mxu0 }
 0x10d   :  { %v1085_v61 = vpack.c.bf16 %v945_v60, %v942_v3 }
 0x10e   :  { %v6824_v62 = vpop.f32.mrf.mxu0  ;;  %7059 = vmatmul.mubr.msk.bf16.gmra.mxu0 %vm683_vm0, %v7370_v10 }
 0x10f   :  { %1229 = vxpose.xlu0.c.b16.start [1/2] (short) (narrow) %v1085_v61, 16  ;;  %6884 = vmatprep.mubr.msk.bf16.mxu1 %vm683_vm0, %v1085_v61 }
 0x110   :  { %v958_v7 = vpop.f32.mrf.mxu0  ;;  %7062 = vmatprep.mubr.msk.bf16.mxu0 %vm683_vm0, %v7360_v9 }
 0x111   :  { %6885 = vmatmul.mubr.msk.bf16.gmra.mxu1 %vm683_vm0, %v1086_v63 }
 0x112   :  { %v6825_v8 = vpop.f32.mrf.mxu0 }
 0x113   :  { %1230 = vxpose.xlu0.c.b16.end [2/2] (short) (narrow) %v1086_v63, 16  ;;  %v1088_v36 = vpack.c.bf16 %v6825_v8, %v6824_v62 }
 0x114   :  { %v961_v0 = vpop.f32.mrf.mxu0 }
 0x115   :  { %v1087_v6 = vpack.c.bf16 %v961_v0, %v958_v7 }
 0x116   :  { %v6828_v35 = vpop.f32.mrf.mxu0  ;;  %7063 = vmatmul.mubr.msk.bf16.gmra.mxu0 %vm683_vm0, %v7376_v11 }
 0x117   :  { %1245 = vxpose.xlu1.c.b16.start [1/2] (short) (narrow) %v1087_v6, 16  ;;  %6888 = vmatprep.mubr.msk.bf16.mxu1 %vm683_vm0, %v1087_v6 }
 0x118   :  { %v974_v10 = vpop.f32.mrf.mxu0  ;;  %7066 = vmatprep.mubr.msk.bf16.mxu0 %vm683_vm0, %v7382_v12 }
 0x119   :  { %6889 = vmatmul.mubr.msk.bf16.gmra.mxu1 %vm683_vm0, %v1088_v36 }
 0x11a   :  { %v6829_v9 = vpop.f32.mrf.mxu0 }
 0x11b   :  { %1246 = vxpose.xlu1.c.b16.end [2/2] (short) (narrow) %v1088_v36, 16  ;;  %v1090_v40 = vpack.c.bf16 %v6829_v9, %v6828_v35 }
 0x11c   :  { %v977_v37 = vpop.f32.mrf.mxu0 }
 0x11d   :  { %v1089_v38 = vpack.c.bf16 %v977_v37, %v974_v10 }
 0x11e   :  { %v6832_v39 = vpop.f32.mrf.mxu0  ;;  %7067 = vmatmul.mubr.msk.bf16.gmra.mxu0 %vm683_vm0, %v7398_v14 }
 0x11f   :  { %1261 = vxpose.xlu0.c.b16.start [1/2] (short) (narrow) %v1089_v38, 16  ;;  %6892 = vmatprep.mubr.msk.bf16.mxu1 %vm683_vm0, %v1089_v38 }
 0x120   :  { %v990_v11 = vpop.f32.mrf.mxu0  ;;  %7070 = vmatprep.mubr.msk.bf16.mxu0 %vm683_vm0, %v7388_v13 }
 0x121   :  { %6893 = vmatmul.mubr.msk.bf16.gmra.mxu1 %vm683_vm0, %v1090_v40 }
 0x122   :  { %v6833_v12 = vpop.f32.mrf.mxu0 }
 0x123   :  { %1262 = vxpose.xlu0.c.b16.end [2/2] (short) (narrow) %v1090_v40, 16  ;;  %v1092_v45 = vpack.c.bf16 %v6833_v12, %v6832_v39 }
 0x124   :  { %v993_v41 = vpop.f32.mrf.mxu0 }
 0x125   :  { %v1091_v42 = vpack.c.bf16 %v993_v41, %v990_v11 }
 0x126   :  { %v6836_v44 = vpop.f32.mrf.mxu0  ;;  %7071 = vmatmul.mubr.msk.bf16.gmra.mxu0 %vm683_vm0, %v7404_v15 }
 0x127   :  { %1277 = vxpose.xlu1.c.b16.start [1/2] (short) (narrow) %v1091_v42, 16  ;;  %6896 = vmatprep.mubr.msk.bf16.mxu1 %vm683_vm0, %v1091_v42 }
 0x128   :  { %v1006_v14 = vpop.f32.mrf.mxu0  ;;  %7074 = vmatprep.mubr.msk.bf16.mxu0 %vm683_vm0, %v7410_v16 }
 0x129   :  { %6897 = vmatmul.mubr.msk.bf16.gmra.mxu1 %vm683_vm0, %v1092_v45 }
 0x12a   :  { %v6837_v13 = vpop.f32.mrf.mxu0 }
 0x12b   :  { %1278 = vxpose.xlu1.c.b16.end [2/2] (short) (narrow) %v1092_v45, 16  ;;  %v1094_v50 = vpack.c.bf16 %v6837_v13, %v6836_v44 }
 0x12c   :  { %v1009_v46 = vpop.f32.mrf.mxu0 }
 0x12d   :  { %v1093_v48 = vpack.c.bf16 %v1009_v46, %v1006_v14 }
 0x12e   :  { %v6840_v49 = vpop.f32.mrf.mxu0  ;;  %7075 = vmatmul.mubr.msk.bf16.gmra.mxu0 %vm683_vm0, %v7426_v18 }
 0x12f   :  { %1293 = vxpose.xlu0.c.b16.start [1/2] (short) (narrow) %v1093_v48, 16  ;;  %6900 = vmatprep.mubr.msk.bf16.mxu1 %vm683_vm0, %v1093_v48 }
 0x130   :  { %v1022_v15 = vpop.f32.mrf.mxu0  ;;  %7078 = vmatprep.mubr.msk.bf16.mxu0 %vm683_vm0, %v7416_v17 }
 0x131   :  { %6901 = vmatmul.mubr.msk.bf16.gmra.mxu1 %vm683_vm0, %v1094_v50 }
 0x132   :  { %v6841_v16 = vpop.f32.mrf.mxu0 }
 0x133   :  { %1294 = vxpose.xlu0.c.b16.end [2/2] (short) (narrow) %v1094_v50, 16  ;;  %v1096_v54 = vpack.c.bf16 %v6841_v16, %v6840_v49 }
 0x134   :  { %v1025_v51 = vpop.f32.mrf.mxu0 }
 0x135   :  { %v1095_v52 = vpack.c.bf16 %v1025_v51, %v1022_v15 }
 0x136   :  { %v6844_v53 = vpop.f32.mrf.mxu0  ;;  %7079 = vmatmul.mubr.msk.bf16.gmra.mxu0 %vm683_vm0, %v7432_v19 }
 0x137   :  { %1309 = vxpose.xlu1.c.b16.start [1/2] (short) (narrow) %v1095_v52, 16  ;;  %6904 = vmatprep.mubr.msk.bf16.mxu1 %vm683_vm0, %v1095_v52 }
 0x138   :  { %v1038_v18 = vpop.f32.mrf.mxu0  ;;  %7082 = vmatprep.mubr.msk.bf16.mxu0 %vm683_vm0, %v7443_v21 }
 0x139   :  { %6905 = vmatmul.mubr.msk.bf16.gmra.mxu1 %vm683_vm0, %v1096_v54 }
 0x13a   :  { %v6845_v17 = vpop.f32.mrf.mxu0 }
 0x13b   :  { %1310 = vxpose.xlu1.c.b16.end [2/2] (short) (narrow) %v1096_v54, 16  ;;  %v1098_v57 = vpack.c.bf16 %v6845_v17, %v6844_v53 }
 0x13c   :  { %v1041_v55 = vpop.f32.mrf.mxu0 }
 0x13d   :  { %v1097_v1 = vpack.c.bf16 %v1041_v55, %v1038_v18 }
 0x13e   :  { %v6920_v56 = vpop.f32.mrf.mxu0  ;;  %7083 = vmatmul.mubr.msk.bf16.gmra.mxu0 %vm683_vm0, %v7460_v23 }
 0x13f   :  { %1325 = vxpose.xlu0.c.b16.start [1/2] (short) (narrow) %v1097_v1, 16  ;;  %6908 = vmatprep.mubr.msk.bf16.mxu1 %vm683_vm0, %v1097_v1 }
 0x140   :  { %v2491_v19 = vpop.f32.mrf.mxu0  ;;  %7086 = vmatprep.mubr.msk.bf16.mxu0 %vm683_vm0, %v7450_v22 }
 0x141   :  { %6909 = vmatmul.mubr.msk.bf16.gmra.mxu1 %vm683_vm0, %v1098_v57 }
 0x142   :  { %6912 = vmatprep.mubr.msk.bf16.mxu1 %vm683_vm0, %v7613_v43  ;;  %v6921_v21 = vpop.f32.mrf.mxu0 }
 0x143   :  { %1326 = vxpose.xlu0.c.b16.end [2/2] (short) (narrow) %v1098_v57, 16  ;;  %v2747_v5 = vpack.c.bf16 %v6921_v21, %v6920_v56 }
 0x144   :  { %v2494_v58 = vpop.f32.mrf.mxu0 }
 0x145   :  { %v2746_v59 = vpack.c.bf16 %v2494_v58, %v2491_v19 }
 0x146   :  { %v6924_v3 = vpop.f32.mrf.mxu0  ;;  %7087 = vmatmul.mubr.msk.bf16.gmra.mxu0 %vm683_vm0, %v7466_v24 }
 0x147   :  { %2778 = vxpose.xlu0.c.b16.start [1/2] (short) (narrow) %v2746_v59, 16  ;;  %7090 = vmatprep.mubr.msk.bf16.mxu0 %vm683_vm0, %v7472_v25 }
 0x148   :  { %v2507_v23 = vpop.f32.mrf.mxu0 }
 0x149   :  { %6913 = vmatmul.mubr.msk.bf16.gmra.mxu1 %vm683_vm0, %v7617_v47 }
 0x14a   :  { %6984 = vmatprep.mubr.msk.bf16.mxu1 %vm683_vm0, %v2746_v59  ;;  %v6925_v22 = vpop.f32.mrf.mxu0 }
 0x14b   :  { %2779 = vxpose.xlu0.c.b16.end [2/2] (short) (narrow) %v2747_v5, 16  ;;  %v2749_v25 = vpack.c.bf16 %v6925_v22, %v6924_v3 }
 0x14c   :  { %v2510_v43 = vpop.f32.mrf.mxu0 }
 0x14d   :  { %v2748_v60 = vpack.c.bf16 %v2510_v43, %v2507_v23 }
 0x14e   :  { %v6928_v61 = vpop.f32.mrf.mxu0  ;;  %7091 = vmatmul.mubr.msk.bf16.gmra.mxu0 %vm683_vm0, %v7488_v27 }
 0x14f   :  { %2794 = vxpose.xlu1.c.b16.start [1/2] (short) (narrow) %v2748_v60, 16  ;;  %7094 = vmatprep.mubr.msk.bf16.mxu0 %vm683_vm0, %v7478_v26 }
 0x150   :  { %v2523_v24 = vpop.f32.mrf.mxu0 }
 0x151   :  { %6985 = vmatmul.mubr.msk.bf16.vlgmr.msra.gmra.mxu1 %vm683_vm0, %v2747_v5 }
 0x152   :  { %6988 = vmatprep.mubr.msk.bf16.mxu1 %vm683_vm0, %v2748_v60  ;;  %7115 = vmatpush3.bf16.msra.mxu1 %v7438_v20  ;;  %v6929_v47 = vpop.f32.mrf.mxu0 }
 0x153   :  { %2795 = vxpose.xlu1.c.b16.end [2/2] (short) (narrow) %v2749_v25, 16  ;;  %v2751_v27 = vpack.c.bf16 %v6929_v47, %v6928_v61 }
 0x154   :  { %v2526_v62 = vpop.f32.mrf.mxu0 }
 0x155   :  { %v2750_v63 = vpack.c.bf16 %v2526_v62, %v2523_v24 }
 0x156   :  { %v6932_v7 = vpop.f32.mrf.mxu0  ;;  %7095 = vmatmul.mubr.msk.bf16.gmra.mxu0 %vm683_vm0, %v7494_v28 }
 0x157   :  { %2810 = vxpose.xlu0.c.b16.start [1/2] (short) (narrow) %v2750_v63, 16  ;;  %7098 = vmatprep.mubr.msk.bf16.mxu0 %vm683_vm0, %v7500_v29 }
 0x158   :  { %v2539_v26 = vpop.f32.mrf.mxu0 }
 0x159   :  { %6989 = vmatmul.mubr.msk.bf16.gmra.mxu1 %vm683_vm0, %v2749_v25 }
 0x15a   :  { %6992 = vmatprep.mubr.msk.bf16.mxu1 %vm683_vm0, %v2750_v63  ;;  %v6933_v8 = vpop.f32.mrf.mxu0 }
 0x15b   :  { %2811 = vxpose.xlu0.c.b16.end [2/2] (short) (narrow) %v2751_v27, 16  ;;  %v2753_v29 = vpack.c.bf16 %v6933_v8, %v6932_v7 }
 0x15c   :  { %v2542_v20 = vpop.f32.mrf.mxu0 }
 0x15d   :  { %v2752_v0 = vpack.c.bf16 %v2542_v20, %v2539_v26 }
 0x15e   :  { %v6936_v6 = vpop.f32.mrf.mxu0  ;;  %7099 = vmatmul.mubr.msk.bf16.gmra.mxu0 %vm683_vm0, %v7516_v31 }
 0x15f   :  { %2826 = vxpose.xlu0.c.b16.start [1/2] (short) (narrow) %v2752_v0, 16  ;;  %7102 = vmatprep.mubr.msk.bf16.mxu0 %vm683_vm0, %v7506_v30 }
 0x160   :  { %v2555_v28 = vpop.f32.mrf.mxu0 }
 0x161   :  { %6993 = vmatmul.mubr.msk.bf16.gmra.mxu1 %vm683_vm0, %v2751_v27 }
 0x162   :  { %6996 = vmatprep.mubr.msk.bf16.mxu1 %vm683_vm0, %v2752_v0  ;;  %v6937_v35 = vpop.f32.mrf.mxu0 }
 0x163   :  { %2827 = vxpose.xlu0.c.b16.end [2/2] (short) (narrow) %v2753_v29, 16  ;;  %v2755_v30 = vpack.c.bf16 %v6937_v35, %v6936_v6 }
 0x164   :  { %v2558_v36 = vpop.f32.mrf.mxu0 }
 0x165   :  { %v2754_v10 = vpack.c.bf16 %v2558_v36, %v2555_v28 }
 0x166   :  { %v6940_v9 = vpop.f32.mrf.mxu0  ;;  %7103 = vmatmul.mubr.msk.bf16.gmra.mxu0 %vm683_vm0, %v7522_v32 }
 0x167   :  { %2842 = vxpose.xlu1.c.b16.start [1/2] (short) (narrow) %v2754_v10, 16  ;;  %7106 = vmatprep.mubr.msk.bf16.mxu0 %vm683_vm0, %v7528_v33 }
 0x168   :  { %v2571_v31 = vpop.f32.mrf.mxu0 }
 0x169   :  { %6997 = vmatmul.mubr.msk.bf16.gmra.mxu1 %vm683_vm0, %v2753_v29 }
 0x16a   :  { %7000 = vmatprep.mubr.msk.bf16.mxu1 %vm683_vm0, %v2754_v10  ;;  %v6941_v37 = vpop.f32.mrf.mxu0 }
 0x16b   :  { %2843 = vxpose.xlu1.c.b16.end [2/2] (short) (narrow) %v2755_v30, 16  ;;  %v2757_v33 = vpack.c.bf16 %v6941_v37, %v6940_v9 }
 0x16c   :  { %v2574_v38 = vpop.f32.mrf.mxu0 }
 0x16d   :  { %v2756_v39 = vpack.c.bf16 %v2574_v38, %v2571_v31 }
 0x16e   :  { %v6944_v40 = vpop.f32.mrf.mxu0  ;;  %7107 = vmatmul.mubr.msk.bf16.gmra.mxu0 %vm683_vm0, %v7539_v34 }
 0x16f   :  { %2858 = vxpose.xlu0.c.b16.start [1/2] (short) (narrow) %v2756_v39, 16  ;;  %7110 = vmatprep.mubr.msk.bf16.mxu0 %vm683_vm0, %v7308_v2 }
 0x170   :  { %v2587_v32 = vpop.f32.mrf.mxu0 }
 0x171   :  { %7001 = vmatmul.mubr.msk.bf16.gmra.mxu1 %vm683_vm0, %v2755_v30 }
 0x172   :  { %7004 = vmatprep.mubr.msk.bf16.mxu1 %vm683_vm0, %v2756_v39  ;;  %v6945_v11 = vpop.f32.mrf.mxu0 }
 0x173   :  { %2859 = vxpose.xlu0.c.b16.end [2/2] (short) (narrow) %v2757_v33, 16  ;;  %v2759_v44 = vpack.c.bf16 %v6945_v11, %v6944_v40 }
 0x174   :  { %v2590_v12 = vpop.f32.mrf.mxu0 }
 0x175   :  { %v2758_v41 = vpack.c.bf16 %v2590_v12, %v2587_v32 }
 0x176   :  { %v6948_v42 = vpop.f32.mrf.mxu0  ;;  %7111 = vmatmul.mubr.msk.bf16.gmra.mxu0 %vm683_vm0, %v7322_v4 }
 0x177   :  { %2874 = vxpose.xlu1.c.b16.start [1/2] (short) (narrow) %v2758_v41, 16 }
 0x178   :  { %v2603_v34 = vpop.f32.mrf.mxu0 }
 0x179   :  { %7005 = vmatmul.mubr.msk.bf16.gmra.mxu1 %vm683_vm0, %v2757_v33 }
 0x17a   :  { %7008 = vmatprep.mubr.msk.bf16.mxu1 %vm683_vm0, %v2758_v41  ;;  %v6949_v2 = vpop.f32.mrf.mxu0 }
 0x17b   :  { %2875 = vxpose.xlu1.c.b16.end [2/2] (short) (narrow) %v2759_v44, 16  ;;  %v2761_v48 = vpack.c.bf16 %v6949_v2, %v6948_v42 }
 0x17c   :  { %v2606_v45 = vpop.f32.mrf.mxu0 }
 0x17d   :  { %v2760_v14 = vpack.c.bf16 %v2606_v45, %v2603_v34 }
 0x17e   :  { %v6952_v13 = vpop.f32.mrf.mxu0 }
 0x17f   :  { %2890 = vxpose.xlu0.c.b16.start [1/2] (short) (narrow) %v2760_v14, 16 }
 0x180   :  { %v2619_v46 = vpop.f32.mrf.mxu0 }
 0x181   :  { %7009 = vmatmul.mubr.msk.bf16.gmra.mxu1 %vm683_vm0, %v2759_v44 }
 0x182   :  { %7012 = vmatprep.mubr.msk.bf16.mxu1 %vm683_vm0, %v2760_v14  ;;  %v6953_v4 = vpop.f32.mrf.mxu0 }
 0x183   :  { %2891 = vxpose.xlu0.c.b16.end [2/2] (short) (narrow) %v2761_v48, 16  ;;  %v2763_v51 = vpack.c.bf16 %v6953_v4, %v6952_v13 }
 0x184   :  { %v2622_v49 = vpop.f32.mrf.mxu0 }
 0x185   :  { %v2762_v50 = vpack.c.bf16 %v2622_v49, %v2619_v46 }
 0x186   :  { %v6956_v15 = vpop.f32.mrf.mxu0 }
 0x187   :  { %2906 = vxpose.xlu1.c.b16.start [1/2] (short) (narrow) %v2762_v50, 16 }
 0x188   :  { %v2635_v16 = vpop.f32.mrf.mxu0 }
 0x189   :  { %7013 = vmatmul.mubr.msk.bf16.gmra.mxu1 %vm683_vm0, %v2761_v48 }
 0x18a   :  { %7016 = vmatprep.mubr.msk.bf16.mxu1 %vm683_vm0, %v2762_v50  ;;  %v6957_v52 = vpop.f32.mrf.mxu0 }
 0x18b   :  { %2907 = vxpose.xlu1.c.b16.end [2/2] (short) (narrow) %v2763_v51, 16  ;;  %v2765_v55 = vpack.c.bf16 %v6957_v52, %v6956_v15 }
 0x18c   :  { %v2638_v53 = vpop.f32.mrf.mxu0 }
 0x18d   :  { %v2764_v54 = vpack.c.bf16 %v2638_v53, %v2635_v16 }
 0x18e   :  { %v6960_v18 = vpop.f32.mrf.mxu0 }
 0x18f   :  { %2922 = vxpose.xlu0.c.b16.start [1/2] (short) (narrow) %v2764_v54, 16 }
 0x190   :  { %v2651_v17 = vpop.f32.mrf.mxu0 }
 0x191   :  { %v6854_v1 = vpop.f32.mrf.mxu1  ;;  %7017 = vmatmul.mubr.msk.bf16.gmra.mxu1 %vm683_vm0, %v2763_v51 }
 0x192   :  { %7020 = vmatprep.mubr.msk.bf16.mxu1 %vm683_vm0, %v2764_v54  ;;  %v6961_v56 = vpop.f32.mrf.mxu0 }
 0x193   :  { %v1696_v57 = vpop.f32.mrf.mxu1  ;;  %2923 = vxpose.xlu0.c.b16.end [2/2] (short) (narrow) %v2765_v55, 16  ;;  %v2767_v22 = vpack.c.bf16 %v6961_v56, %v6960_v18 }
 0x194   :  { %v2654_v19 = vpop.f32.mrf.mxu0 }
 0x195   :  { %v6855_v21 = vpop.f32.mrf.mxu1  ;;  %v2766_v58 = vpack.c.bf16 %v2654_v19, %v2651_v17 }
 0x196   :  { %v6964_v59 = vpop.f32.mrf.mxu0  ;;  %v1952_v24 = vpack.c.bf16 %v6855_v21, %v6854_v1 }
 0x197   :  { %v1699_v3 = vpop.f32.mrf.mxu1  ;;  %2938 = vxpose.xlu1.c.b16.start [1/2] (short) (narrow) %v2766_v58, 16 }
 0x198   :  { %v2667_v23 = vpop.f32.mrf.mxu0  ;;  %v1951_v5 = vpack.c.bf16 %v1699_v3, %v1696_v57 }
 0x199   :  { %v6858_v43 = vpop.f32.mrf.mxu1  ;;  %7021 = vmatmul.mubr.msk.bf16.gmra.mxu1 %vm683_vm0, %v2765_v55 }
 0x19a   :  { %1983 = vxpose.xlu0.c.b16.start [1/2] (short) (narrow) %v1951_v5, 16  ;;  %7024 = vmatprep.mubr.msk.bf16.mxu1 %vm683_vm0, %v2766_v58  ;;  %v6965_v60 = vpop.f32.mrf.mxu0 }
 0x19b   :  { %v1712_v61 = vpop.f32.mrf.mxu1  ;;  %2939 = vxpose.xlu1.c.b16.end [2/2] (short) (narrow) %v2767_v22, 16  ;;  %v2769_v6 = vpack.c.bf16 %v6965_v60, %v6964_v59 }
 0x19c   :  { %v2670_v25 = vpop.f32.mrf.mxu0 }
 0x19d   :  { %v6859_v47 = vpop.f32.mrf.mxu1  ;;  %v2768_v62 = vpack.c.bf16 %v2670_v25, %v2667_v23 }
 0x19e   :  { %1984 = vxpose.xlu0.c.b16.end [2/2] (short) (narrow) %v1952_v24, 16  ;;  %v6968_v63 = vpop.f32.mrf.mxu0  ;;  %v1954_v28 = vpack.c.bf16 %v6859_v47, %v6858_v43 }
 0x19f   :  { %v1715_v7 = vpop.f32.mrf.mxu1 }
 0x1a0   :  { %v2683_v26 = vpop.f32.mrf.mxu0  ;;  %v1953_v27 = vpack.c.bf16 %v1715_v7, %v1712_v61 }
 0x1a1   :  { %v6862_v8 = vpop.f32.mrf.mxu1  ;;  %7025 = vmatmul.mubr.msk.bf16.gmra.mxu1 %vm683_vm0, %v2767_v22 }
 0x1a2   :  { %1999 = vxpose.xlu1.c.b16.start [1/2] (short) (narrow) %v1953_v27, 16  ;;  %2954 = vxpose.xlu0.c.b16.start [1/2] (short) (narrow) %v2768_v62, 16  ;;  %v6969_v20 = vpop.f32.mrf.mxu0 }
 0x1a3   :  { %7028 = vmatprep.mubr.msk.bf16.mxu1 %vm683_vm0, %v2768_v62  ;;  %v1728_v0 = vpop.f32.mrf.mxu1  ;;  %v2771_v40 = vpack.c.bf16 %v6969_v20, %v6968_v63 }
 0x1a4   :  { %v2686_v29 = vpop.f32.mrf.mxu0 }
 0x1a5   :  { %v6863_v35 = vpop.f32.mrf.mxu1  ;;  %v2770_v36 = vpack.c.bf16 %v2686_v29, %v2683_v26 }
 0x1a6   :  { %2000 = vxpose.xlu1.c.b16.end [2/2] (short) (narrow) %v1954_v28, 16  ;;  %2955 = vxpose.xlu0.c.b16.end [2/2] (short) (narrow) %v2769_v6, 16  ;;  %v6972_v10 = vpop.f32.mrf.mxu0  ;;  %v1956_v32 = vpack.c.bf16 %v6863_v35, %v6862_v8 }
 0x1a7   :  { %v1731_v9 = vpop.f32.mrf.mxu1 }
 0x1a8   :  { %v2699_v31 = vpop.f32.mrf.mxu0  ;;  %v1955_v30 = vpack.c.bf16 %v1731_v9, %v1728_v0 }
 0x1a9   :  { %v6866_v37 = vpop.f32.mrf.mxu1  ;;  %7029 = vmatmul.mubr.msk.bf16.gmra.mxu1 %vm683_vm0, %v2769_v6 }
 0x1aa   :  { %2970 = vxpose.xlu1.c.b16.start [1/2] (short) (narrow) %v2770_v36, 16  ;;  %2015 = vxpose.xlu0.c.b16.start [1/2] (short) (narrow) %v1955_v30, 16  ;;  %v6973_v38 = vpop.f32.mrf.mxu0 }
 0x1ab   :  { %7032 = vmatprep.mubr.msk.bf16.mxu1 %vm683_vm0, %v2770_v36  ;;  %v1744_v39 = vpop.f32.mrf.mxu1  ;;  %v2773_v14 = vpack.c.bf16 %v6973_v38, %v6972_v10 }
 0x1ac   :  { %v2702_v33 = vpop.f32.mrf.mxu0 }
 0x1ad   :  { %v6867_v11 = vpop.f32.mrf.mxu1  ;;  %v2772_v12 = vpack.c.bf16 %v2702_v33, %v2699_v31 }
 0x1ae   :  { %2971 = vxpose.xlu1.c.b16.end [2/2] (short) (narrow) %v2771_v40, 16  ;;  %2016 = vxpose.xlu0.c.b16.end [2/2] (short) (narrow) %v1956_v32, 16  ;;  %v6976_v41 = vpop.f32.mrf.mxu0  ;;  %v1958_v54 = vpack.c.bf16 %v6867_v11, %v6866_v37 }
 0x1af   :  { %v1747_v42 = vpop.f32.mrf.mxu1 }
 0x1b0   :  { %v2715_v34 = vpop.f32.mrf.mxu0  ;;  %v1957_v15 = vpack.c.bf16 %v1747_v42, %v1744_v39 }
 0x1b1   :  { %v6870_v44 = vpop.f32.mrf.mxu1  ;;  %7033 = vmatmul.mubr.msk.bf16.gmra.mxu1 %vm683_vm0, %v2771_v40 }
 0x1b2   :  { %2986 = vxpose.xlu0.c.b16.start [1/2] (short) (narrow) %v2772_v12, 16  ;;  %7036 = vmatprep.mubr.msk.bf16.mxu1 %vm683_vm0, %v2772_v12  ;;  %v6977_v2 = vpop.f32.mrf.mxu0 }
 0x1b3   :  { %v1760_v45 = vpop.f32.mrf.mxu1  ;;  %v2775_v16 = vpack.c.bf16 %v6977_v2, %v6976_v41 }
 0x1b4   :  { %v2718_v13 = vpop.f32.mrf.mxu0 }
 0x1b5   :  { %v6871_v46 = vpop.f32.mrf.mxu1  ;;  %v2774_v48 = vpack.c.bf16 %v2718_v13, %v2715_v34 }
 0x1b6   :  { %2987 = vxpose.xlu0.c.b16.end [2/2] (short) (narrow) %v2773_v14, 16  ;;  %v6980_v4 = vpop.f32.mrf.mxu0  ;;  %v1960_v58 = vpack.c.bf16 %v6871_v46, %v6870_v44 }
 0x1b7   :  { %v1763_v49 = vpop.f32.mrf.mxu1  ;;  %3002 = vxpose.xlu1.c.b16.start [1/2] (short) (narrow) %v2774_v48, 16 }
 0x1b8   :  { %v2731_v50 = vpop.f32.mrf.mxu0  ;;  %v1959_v55 = vpack.c.bf16 %v1763_v49, %v1760_v45 }
 0x1b9   :  { %v6874_v51 = vpop.f32.mrf.mxu1  ;;  %7037 = vmatmul.mubr.msk.bf16.gmra.mxu1 %vm683_vm0, %v2773_v14 }
 0x1ba   :  { %2031 = vxpose.xlu0.c.b16.start [1/2] (short) (narrow) %v1957_v15, 16  ;;  %7040 = vmatprep.mubr.msk.bf16.mxu1 %vm683_vm0, %v2774_v48  ;;  %v6981_v52 = vpop.f32.mrf.mxu0 }
 0x1bb   :  { %v1776_v53 = vpop.f32.mrf.mxu1  ;;  %3003 = vxpose.xlu1.c.b16.end [2/2] (short) (narrow) %v2775_v16, 16  ;;  %v2777_v24 = vpack.c.bf16 %v6981_v52, %v6980_v4 }
 0x1bc   :  { %v2734_v18 = vpop.f32.mrf.mxu0 }
 0x1bd   :  { %v6875_v17 = vpop.f32.mrf.mxu1  ;;  %v2776_v1 = vpack.c.bf16 %v2734_v18, %v2731_v50 }
 0x1be   :  { %2032 = vxpose.xlu0.c.b16.end [2/2] (short) (narrow) %v1958_v54, 16  ;;  %v7052_v56 = vpop.f32.mrf.mxu0  ;;  %v1962_v5 = vpack.c.bf16 %v6875_v17, %v6874_v51 }
 0x1bf   :  { %v1779_v57 = vpop.f32.mrf.mxu1  ;;  %2047 = vxpose.xlu1.c.b16.start [1/2] (short) (narrow) %v1959_v55, 16 }
 0x1c0   :  { %v4103_v19 = vpop.f32.mrf.mxu0  ;;  %v1961_v21 = vpack.c.bf16 %v1779_v57, %v1776_v53 }
 0x1c1   :  { %v6878_v59 = vpop.f32.mrf.mxu1  ;;  %7041 = vmatmul.mubr.msk.bf16.gmra.mxu1 %vm683_vm0, %v2775_v16 }
 0x1c2   :  { %2063 = vxpose.xlu0.c.b16.start [1/2] (short) (narrow) %v1961_v21, 16  ;;  %7044 = vmatprep.mubr.msk.bf16.mxu1 %vm683_vm0, %v2776_v1  ;;  %v7053_v3 = vpop.f32.mrf.mxu0 }
 0x1c3   :  { %v1792_v23 = vpop.f32.mrf.mxu1  ;;  %2048 = vxpose.xlu1.c.b16.end [2/2] (short) (narrow) %v1960_v58, 16  ;;  %v4359_v26 = vpack.c.bf16 %v7053_v3, %v7052_v56 }
 0x1c4   :  { %v4106_v22 = vpop.f32.mrf.mxu0 }
 0x1c5   :  { %v6879_v43 = vpop.f32.mrf.mxu1  ;;  %v4358_v60 = vpack.c.bf16 %v4106_v22, %v4103_v19 }
 0x1c6   :  { %2064 = vxpose.xlu0.c.b16.end [2/2] (short) (narrow) %v1962_v5, 16  ;;  %v7056_v61 = vpop.f32.mrf.mxu0  ;;  %v1964_v35 = vpack.c.bf16 %v6879_v43, %v6878_v59 }
 0x1c7   :  { %v1795_v25 = vpop.f32.mrf.mxu1  ;;  %3018 = vxpose.xlu1.c.b16.start [1/2] (short) (narrow) %v2776_v1, 16 }
 0x1c8   :  { %v4119_v47 = vpop.f32.mrf.mxu0  ;;  %v1963_v20 = vpack.c.bf16 %v1795_v25, %v1792_v23 }
 0x1c9   :  { %v6882_v62 = vpop.f32.mrf.mxu1  ;;  %7045 = vmatmul.mubr.msk.bf16.gmra.mxu1 %vm683_vm0, %v2777_v24 }
 0x1ca   :  { %4390 = vxpose.xlu0.c.b16.start [1/2] (short) (narrow) %v4358_v60, 16  ;;  %7116 = vmatprep.mubr.msk.bf16.mxu1 %vm683_vm0, %v4358_v60  ;;  %v7057_v63 = vpop.f32.mrf.mxu0 }
 0x1cb   :  { %v1808_v7 = vpop.f32.mrf.mxu1  ;;  %3019 = vxpose.xlu1.c.b16.end [2/2] (short) (narrow) %v2777_v24, 16  ;;  %v4361_v31 = vpack.c.bf16 %v7057_v63, %v7056_v61 }
 0x1cc   :  { %v4122_v27 = vpop.f32.mrf.mxu0 }
 0x1cd   :  { %v6883_v8 = vpop.f32.mrf.mxu1  ;;  %v4360_v0 = vpack.c.bf16 %v4122_v27, %v4119_v47 }
 0x1ce   :  { %4391 = vxpose.xlu0.c.b16.end [2/2] (short) (narrow) %v4359_v26, 16  ;;  %v7060_v6 = vpop.f32.mrf.mxu0  ;;  %v1966_v34 = vpack.c.bf16 %v6883_v8, %v6882_v62 }
 0x1cf   :  { %v1811_v28 = vpop.f32.mrf.mxu1  ;;  %2079 = vxpose.xlu1.c.b16.start [1/2] (short) (narrow) %v1963_v20, 16 }
 0x1d0   :  { %v4135_v29 = vpop.f32.mrf.mxu0  ;;  %v1965_v11 = vpack.c.bf16 %v1811_v28, %v1808_v7 }
 0x1d1   :  { %v6886_v36 = vpop.f32.mrf.mxu1  ;;  %7117 = vmatmul.mubr.msk.bf16.vlgmr.msra.gmra.mxu1 %vm683_vm0, %v4359_v26 }
 0x1d2   :  { %4406 = vxpose.xlu0.c.b16.start [1/2] (short) (narrow) %v4360_v0, 16  ;;  %7120 = vmatprep.mubr.msk.bf16.mxu1 %vm683_vm0, %v4360_v0  ;;  %v7061_v10 = vpop.f32.mrf.mxu0 }
 0x1d3   :  { %v1824_v9 = vpop.f32.mrf.mxu1  ;;  %2080 = vxpose.xlu1.c.b16.end [2/2] (short) (narrow) %v1964_v35, 16  ;;  %v4363_v46 = vpack.c.bf16 %v7061_v10, %v7060_v6 }
 0x1d4   :  { %v4138_v30 = vpop.f32.mrf.mxu0 }
 0x1d5   :  { %v6887_v37 = vpop.f32.mrf.mxu1  ;;  %v4362_v39 = vpack.c.bf16 %v4138_v30, %v4135_v29 }
 0x1d6   :  { %4407 = vxpose.xlu0.c.b16.end [2/2] (short) (narrow) %v4361_v31, 16  ;;  %v7064_v38 = vpop.f32.mrf.mxu0  ;;  %v1968_v44 = vpack.c.bf16 %v6887_v37, %v6886_v36 }
 0x1d7   :  { %v1827_v40 = vpop.f32.mrf.mxu1 }
 0x1d8   :  { %v4151_v32 = vpop.f32.mrf.mxu0  ;;  %v1967_v33 = vpack.c.bf16 %v1827_v40, %v1824_v9 }
 0x1d9   :  { %v6890_v12 = vpop.f32.mrf.mxu1  ;;  %7121 = vmatmul.mubr.msk.bf16.gmra.mxu1 %vm683_vm0, %v4361_v31 }
 0x1da   :  { %2111 = vxpose.xlu1.c.b16.start [1/2] (short) (narrow) %v1967_v33, 16  ;;  %2095 = vxpose.xlu0.c.b16.start [1/2] (short) (narrow) %v1965_v11, 16  ;;  %v7065_v41 = vpop.f32.mrf.mxu0  ;;  %v7795_v33 = vpop.trf.xlu1 }
 0x1db   :  { %7124 = vmatprep.mubr.msk.bf16.mxu1 %vm683_vm0, %v4362_v39  ;;  %v1840_v42 = vpop.f32.mrf.mxu1  ;;  %v4365_v50 = vpack.c.bf16 %v7065_v41, %v7064_v38 }
 0x1dc   :  { %v4154_v2 = vpop.f32.mrf.mxu0 }
 0x1dd   :  { %v6891_v45 = vpop.f32.mrf.mxu1  ;;  %v4364_v14 = vpack.c.bf16 %v4154_v2, %v4151_v32 }
 0x1de   :  { %2112 = vxpose.xlu1.c.b16.end [2/2] (short) (narrow) %v1968_v44, 16  ;;  %2096 = vxpose.xlu0.c.b16.end [2/2] (short) (narrow) %v1966_v34, 16  ;;  %v7068_v13 = vpop.f32.mrf.mxu0  ;;  %v1970_v21 = vpack.c.bf16 %v6891_v45, %v6890_v12 }
 0x1df   :  { %v1843_v48 = vpop.f32.mrf.mxu1 }
 0x1e0   :  { %v4167_v4 = vpop.f32.mrf.mxu0  ;;  %v1969_v55 = vpack.c.bf16 %v1843_v48, %v1840_v42 }
 0x1e1   :  { %v6894_v49 = vpop.f32.mrf.mxu1  ;;  %7125 = vmatmul.mubr.msk.bf16.gmra.mxu1 %vm683_vm0, %v4363_v46 }
 0x1e2   :  { %4438 = vxpose.xlu1.c.b16.start [1/2] (short) (narrow) %v4364_v14, 16  ;;  %4422 = vxpose.xlu0.c.b16.start [1/2] (short) (narrow) %v4362_v39, 16  ;;  %v7069_v15 = vpop.f32.mrf.mxu0 }
 0x1e3   :  { %v1856_v16 = vpop.f32.mrf.mxu1  ;;  %7128 = vmatprep.mubr.msk.bf16.mxu1 %vm683_vm0, %v4364_v14  ;;  %v4367_v56 = vpack.c.bf16 %v7069_v15, %v7068_v13  ;;  %v330_v13 = vpop.trf.xlu1 }
 0x1e4   :  { %v4170_v51 = vpop.f32.mrf.mxu0 }
 0x1e5   :  { %v6895_v52 = vpop.f32.mrf.mxu1  ;;  %v4366_v53 = vpack.c.bf16 %v4170_v51, %v4167_v4 }
 0x1e6   :  { %4439 = vxpose.xlu1.c.b16.end [2/2] (short) (narrow) %v4365_v50, 16  ;;  %4423 = vxpose.xlu0.c.b16.end [2/2] (short) (narrow) %v4363_v46, 16  ;;  %v7072_v54 = vpop.f32.mrf.mxu0  ;;  %v1972_v47 = vpack.c.bf16 %v6895_v52, %v6894_v49 }
 0x1e7   :  { %v1859_v18 = vpop.f32.mrf.mxu1  ;;  %v362_v15 = vpop.trf.xlu1 }
 0x1e8   :  { %v4183_v17 = vpop.f32.mrf.mxu0  ;;  %v1971_v43 = vpack.c.bf16 %v1859_v18, %v1856_v16 }
 0x1e9   :  { %v6898_v1 = vpop.f32.mrf.mxu1  ;;  %7129 = vmatmul.mubr.msk.bf16.gmra.mxu1 %vm683_vm0, %v4365_v50 }
 0x1ea   :  { %4454 = vxpose.xlu1.c.b16.start [1/2] (short) (narrow) %v4366_v53, 16  ;;  %2127 = vxpose.xlu0.c.b16.start [1/2] (short) (narrow) %v1969_v55, 16  ;;  %v7073_v57 = vpop.f32.mrf.mxu0 }
 0x1eb   :  { %v1872_v19 = vpop.f32.mrf.mxu1  ;;  %7132 = vmatprep.mubr.msk.bf16.mxu1 %vm683_vm0, %v4366_v53  ;;  %v4369_v7 = vpack.c.bf16 %v7073_v57, %v7072_v54  ;;  %v394_v55 = vpop.trf.xlu1 }
 0x1ec   :  { %v4186_v58 = vpop.f32.mrf.mxu0 }
 0x1ed   :  { %v6899_v59 = vpop.f32.mrf.mxu1  ;;  %v4368_v23 = vpack.c.bf16 %v4186_v58, %v4183_v17  ;;  %v6116_v58 = vcombine.high %v330_v13, %v330_v13 }
 0x1ee   :  { %4455 = vxpose.xlu1.c.b16.end [2/2] (short) (narrow) %v4367_v56, 16  ;;  %2128 = vxpose.xlu0.c.b16.end [2/2] (short) (narrow) %v1970_v21, 16  ;;  %v7076_v3 = vpop.f32.mrf.mxu0  ;;  %v1974_v62 = vpack.c.bf16 %v6899_v59, %v6898_v1  ;;  %v6115_v21 = vcombine.low %v330_v13, %v330_v13 }
 0x1ef   :  { %v1875_v5 = vpop.f32.mrf.mxu1  ;;  %650 = vst.msk [vmem:[#allocation2 + $0x38] sm:$0xf] %vm642_vm1, %v6116_v58 }
 0x1f0   :  { %v4199_v22 = vpop.f32.mrf.mxu0  ;;  %v1973_v60 = vpack.c.bf16 %v1875_v5, %v1872_v19  ;;  %v6112_v19 = vcombine.high %v7795_v33, %v7795_v33  ;;  %v6123_v5 = vcombine.low %v394_v55, %v394_v55  ;;  %649 = vst.msk [vmem:[#allocation2 + $0x30] sm:$0xf] %vm642_vm1, %v6115_v21 }
 0x1f1   :  { %v7783_v61 = vpop.f32.mrf.mxu1  ;;  %7133 = vmatmul.mubr.msk.bf16.gmra.mxu1 %vm683_vm0, %v4367_v56  ;;  %v6111_v56 = vcombine.low %v7795_v33, %v7795_v33 }
 0x1f2   :  { %2143 = vxpose.xlu1.c.b16.start [1/2] (short) (narrow) %v1971_v43, 16  ;;  %2159 = vxpose.xlu0.c.b16.start [1/2] (short) (narrow) %v1973_v60, 16  ;;  %v7077_v24 = vpop.f32.mrf.mxu0  ;;  %646 = vst.msk [vmem:[#allocation2 + $0x18] sm:$0xf] %vm642_vm1, %v6112_v19  ;;  %657 = vst.msk [vmem:[#allocation2 + $0x70] sm:$0xf] %vm642_vm1, %v6123_v5 }
 0x1f3   :  { %v1888_v25 = vpop.f32.mrf.mxu1  ;;  %7136 = vmatprep.mubr.msk.bf16.mxu1 %vm683_vm0, %v4368_v23  ;;  %v4371_v36 = vpack.c.bf16 %v7077_v24, %v7076_v3  ;;  %v6119_v3 = vcombine.low %v362_v15, %v362_v15  ;;  %645 = vst.msk [vmem:[#allocation2 + $0x10] sm:$0xf] %vm642_vm1, %v6111_v56 }
 0x1f4   :  { %v4202_v63 = vpop.f32.mrf.mxu0 }
 0x1f5   :  { %v6903_v26 = vpop.f32.mrf.mxu1  ;;  %v4370_v27 = vpack.c.bf16 %v4202_v63, %v4199_v22  ;;  %v6124_v22 = vcombine.high %v394_v55, %v394_v55  ;;  %653 = vst.msk [vmem:[#allocation2 + $0x50] sm:$0xf] %vm642_vm1, %v6119_v3 }
 0x1f6   :  { %2144 = vxpose.xlu1.c.b16.end [2/2] (short) (narrow) %v1972_v47, 16  ;;  %2160 = vxpose.xlu0.c.b16.end [2/2] (short) (narrow) %v1974_v62, 16  ;;  %v7080_v8 = vpop.f32.mrf.mxu0  ;;  %v1976_v49 = vpack.c.bf16 %v6903_v26, %v7783_v61  ;;  %v426_v61 = vpop.trf.xlu1 }
 0x1f7   :  { %v1891_v20 = vpop.f32.mrf.mxu1  ;;  %v6127_v47 = vcombine.low %v426_v61, %v426_v61  ;;  %v6128_v62 = vcombine.high %v426_v61, %v426_v61  ;;  %658 = vst.msk [vmem:[#allocation2 + $0x78] sm:$0xf] %vm642_vm1, %v6124_v22 }
 0x1f8   :  { %v4215_v0 = vpop.f32.mrf.mxu0  ;;  %v1975_v14 = vpack.c.bf16 %v1891_v20, %v1888_v25 }
 0x1f9   :  { %v6906_v6 = vpop.f32.mrf.mxu1  ;;  %7137 = vmatmul.mubr.msk.bf16.gmra.mxu1 %vm683_vm0, %v4369_v7  ;;  %661 = vst.msk [vmem:[#allocation2 + $0x90] sm:$0xf] %vm642_vm1, %v6127_v47  ;;  %662 = vst.msk [vmem:[#allocation2 + $0x98] sm:$0xf] %vm642_vm1, %v6128_v62 }
 0x1fa   :  { %4470 = vxpose.xlu1.c.b16.start [1/2] (short) (narrow) %v4368_v23, 16  ;;  %v7081_v28 = vpop.f32.mrf.mxu0  ;;  %7140 = vmatprep.mubr.msk.bf16.mxu1 %vm683_vm0, %v4370_v27  ;;  %v6120_v23 = vcombine.high %v362_v15, %v362_v15 }
 0x1fb   :  { %v1904_v29 = vpop.f32.mrf.mxu1  ;;  %v4373_v41 = vpack.c.bf16 %v7081_v28, %v7080_v8 }
 0x1fc   :  { %v4218_v35 = vpop.f32.mrf.mxu0  ;;  %654 = vst.msk [vmem:[#allocation2 + $0x58] sm:$0xf] %vm642_vm1, %v6120_v23 }
 0x1fd   :  { %v6907_v10 = vpop.f32.mrf.mxu1  ;;  %v4372_v31 = vpack.c.bf16 %v4218_v35, %v4215_v0 }
 0x1fe   :  { %4471 = vxpose.xlu1.c.b16.end [2/2] (short) (narrow) %v4369_v7, 16  ;;  %v7084_v9 = vpop.f32.mrf.mxu0  ;;  %v1978_v11 = vpack.c.bf16 %v6907_v10, %v6906_v6 }
 0x1ff   :  { %v1907_v30 = vpop.f32.mrf.mxu1 }
 0x200   :  { %v4231_v37 = vpop.f32.mrf.mxu0  ;;  %v1977_v38 = vpack.c.bf16 %v1907_v30, %v1904_v29  ;;  %v458_v29 = vpop.trf.xlu1 }
 0x201   :  { %v7789_v39 = vpop.f32.mrf.mxu1  ;;  %7141 = vmatmul.mubr.msk.bf16.gmra.mxu1 %vm683_vm0, %v4371_v36  ;;  %v6131_v10 = vcombine.low %v458_v29, %v458_v29 }
 0x202   :  { %4486 = vxpose.xlu1.c.b16.start [1/2] (short) (narrow) %v4370_v27, 16  ;;  %2191 = vxpose.xlu0.c.b16.start [1/2] (short) (narrow) %v1977_v38, 16  ;;  %v7085_v40 = vpop.f32.mrf.mxu0  ;;  %v282_v27 = vpop.trf.xlu0 }
 0x203   :  { %v7792_v32 = vpop.f32.mrf.mxu1  ;;  %7144 = vmatprep.mubr.msk.bf16.mxu1 %vm683_vm0, %v4372_v31  ;;  %v7807_v16 = vpack.c.bf16 %v7085_v40, %v7084_v9  ;;  %v6109_v20 = vcombine.low %v282_v27, %v282_v27  ;;  %v6110_v0 = vcombine.high %v282_v27, %v282_v27  ;;  %v6132_v9 = vcombine.high %v458_v29, %v458_v29 }
 0x204   :  { %v4234_v12 = vpop.f32.mrf.mxu0  ;;  %665 = vst.msk [vmem:[#allocation2 + $0xb0] sm:$0xf] %vm642_vm1, %v6131_v10 }
 0x205   :  { %v7797_v42 = vpop.f32.mrf.mxu1  ;;  %v7799_v34 = vpack.c.bf16 %v4234_v12, %v4231_v37  ;;  %644 = vst.msk [vmem:[#allocation2 + $0x8] sm:$0xf] %vm642_vm1, %v6110_v0  ;;  %643 = vst.msk [vmem:[#allocation2] sm:$0xf] %vm642_vm1, %v6109_v20 }
 0x206   :  { %4487 = vxpose.xlu1.c.b16.end [2/2] (short) (narrow) %v4371_v36, 16  ;;  %2192 = vxpose.xlu0.c.b16.end [2/2] (short) (narrow) %v1978_v11, 16  ;;  %v7088_v44 = vpop.f32.mrf.mxu0  ;;  %v314_v30 = vpop.trf.xlu0  ;;  %666 = vst.msk [vmem:[#allocation2 + $0xb8] sm:$0xf] %vm642_vm1, %v6132_v9 }
 0x207   :  { %v7801_v2 = vpop.f32.mrf.mxu1  ;;  %v6113_v38 = vcombine.low %v314_v30, %v314_v30  ;;  %v6114_v40 = vcombine.high %v314_v30, %v314_v30  ;;  %v490_v11 = vpop.trf.xlu1 }
 0x208   :  { %v4247_v45 = vpop.f32.mrf.mxu0  ;;  %v1979_v28 = vpack.c.bf16 %v7801_v2, %v7792_v32  ;;  %v1980_v32 = vpack.c.bf16 %v7797_v42, %v7789_v39  ;;  %v6136_v2 = vcombine.high %v490_v11, %v490_v11 }
 0x209   :  { %v6914_v46 = vpop.f32.mrf.mxu1  ;;  %7145 = vmatmul.mubr.msk.bf16.gmra.mxu1 %vm683_vm0, %v4373_v41  ;;  %647 = vst.msk [vmem:[#allocation2 + $0x20] sm:$0xf] %vm642_vm1, %v6113_v38  ;;  %648 = vst.msk [vmem:[#allocation2 + $0x28] sm:$0xf] %vm642_vm1, %v6114_v40 }
 0x20a   :  { %2175 = vxpose.xlu1.c.b16.start [1/2] (short) (narrow) %v1975_v14, 16  ;;  %v7089_v48 = vpop.f32.mrf.mxu0  ;;  %7148 = vmatprep.mubr.msk.bf16.mxu1 %vm683_vm0, %v7799_v34  ;;  %v346_v13 = vpop.trf.xlu0  ;;  %670 = vst.msk [vmem:[#allocation2 + $0xd8] sm:$0xf] %vm642_vm1, %v6136_v2 }
 0x20b   :  { %v1936_v4 = vpop.f32.mrf.mxu1  ;;  %v7825_v24 = vpack.c.bf16 %v7089_v48, %v7088_v44  ;;  %v6135_v44 = vcombine.low %v490_v11, %v490_v11  ;;  %v6117_v39 = vcombine.low %v346_v13, %v346_v13  ;;  %v6118_v42 = vcombine.high %v346_v13, %v346_v13 }
 0x20c   :  { %v4250_v50 = vpop.f32.mrf.mxu0 }
 0x20d   :  { %v6915_v51 = vpop.f32.mrf.mxu1  ;;  %v7811_v53 = vpack.c.bf16 %v4250_v50, %v4247_v45  ;;  %669 = vst.msk [vmem:[#allocation2 + $0xd0] sm:$0xf] %vm642_vm1, %v6135_v44  ;;  %651 = vst.msk [vmem:[#allocation2 + $0x40] sm:$0xf] %vm642_vm1, %v6117_v39 }
 0x20e   :  { %2176 = vxpose.xlu1.c.b16.end [2/2] (short) (narrow) %v1976_v49, 16  ;;  %v7809_v52 = vpop.f32.mrf.mxu0  ;;  %v1982_v43 = vpack.c.bf16 %v6915_v51, %v6914_v46  ;;  %652 = vst.msk [vmem:[#allocation2 + $0x48] sm:$0xf] %vm642_vm1, %v6118_v42 }
 0x20f   :  { %v1939_v54 = vpop.f32.mrf.mxu1 }
 0x210   :  { %v4263_v18 = vpop.f32.mrf.mxu0  ;;  %v1981_v17 = vpack.c.bf16 %v1939_v54, %v1936_v4  ;;  %v522_v4 = vpop.trf.xlu1 }
 0x211   :  { %v7813_v1 = vpop.f32.mrf.mxu1  ;;  %7149 = vmatmul.mubr.msk.bf16.gmra.mxu1 %vm683_vm0, %v7807_v16  ;;  %v6139_v50 = vcombine.low %v522_v4, %v522_v4  ;;  %v6140_v15 = vcombine.high %v522_v4, %v522_v4 }
 0x212   :  { %4502 = vxpose.xlu1.c.b16.start [1/2] (short) (narrow) %v4372_v31, 16  ;;  %2223 = vxpose.xlu0.c.b16.start [1/2] (short) (narrow) %v1981_v17, 16  ;;  %v7093_v57 = vpop.f32.mrf.mxu0 }
 0x213   :  { %v7821_v59 = vpop.f32.mrf.mxu1  ;;  %7152 = vmatprep.mubr.msk.bf16.mxu1 %vm683_vm0, %v7811_v53  ;;  %v7866_v12 = vpack.c.bf16 %v7093_v57, %v7809_v52  ;;  %v378_v52 = vpop.trf.xlu0  ;;  %673 = vst.msk [vmem:[#allocation2 + $0xf0] sm:$0xf] %vm642_vm1, %v6139_v50  ;;  %674 = vst.msk [vmem:[#allocation2 + $0xf8] sm:$0xf] %vm642_vm1, %v6140_v15 }
 0x214   :  { %v4266_v60 = vpop.f32.mrf.mxu0  ;;  %v6122_v17 = vcombine.high %v378_v52, %v378_v52  ;;  %v7890_v56 = vpop.trf.xlu1 }
 0x215   :  { %v7827_v25 = vpop.f32.mrf.mxu1  ;;  %v7831_v7 = vpack.c.bf16 %v4266_v60, %v4263_v18  ;;  %v6121_v18 = vcombine.low %v378_v52, %v378_v52 }
 0x216   :  { %4503 = vxpose.xlu1.c.b16.end [2/2] (short) (narrow) %v4373_v41, 16  ;;  %2224 = vxpose.xlu0.c.b16.end [2/2] (short) (narrow) %v1982_v43, 16  ;;  %v7833_v26 = vpop.f32.mrf.mxu0  ;;  %656 = vst.msk [vmem:[#allocation2 + $0x68] sm:$0xf] %vm642_vm1, %v6122_v17 }
 0x217   :  { %v7835_v8 = vpop.f32.mrf.mxu1  ;;  %655 = vst.msk [vmem:[#allocation2 + $0x60] sm:$0xf] %vm642_vm1, %v6121_v18  ;;  %v410_v3 = vpop.trf.xlu0 }
 0x218   :  { %v4279_v6 = vpop.f32.mrf.mxu0  ;;  %v6125_v22 = vcombine.low %v410_v3, %v410_v3  ;;  %v6126_v43 = vcombine.high %v410_v3, %v410_v3  ;;  %v7901_v61 = vpop.trf.xlu1 }
 0x219   :  { %v7851_v36 = vpop.f32.mrf.mxu1  ;;  %7153 = vmatmul.mubr.msk.bf16.gmra.mxu1 %vm683_vm0, %v7825_v24 }
 0x21a   :  { %2207 = vxpose.xlu1.c.b16.start [1/2] (short) (narrow) %v1979_v28, 16  ;;  %v7097_v31 = vpop.f32.mrf.mxu0  ;;  %7156 = vmatprep.mubr.msk.bf16.mxu1 %vm683_vm0, %v7831_v7  ;;  %659 = vst.msk [vmem:[#allocation2 + $0x80] sm:$0xf] %vm642_vm1, %v6125_v22  ;;  %660 = vst.msk [vmem:[#allocation2 + $0x88] sm:$0xf] %vm642_vm1, %v6126_v43 }
 0x21b   :  { %v7859_v37 = vpop.f32.mrf.mxu1  ;;  %v7893_v57 = vpack.c.bf16 %v7097_v31, %v7833_v26  ;;  %v442_v26 = vpop.trf.xlu0 }
 0x21c   :  { %v4282_v33 = vpop.f32.mrf.mxu0  ;;  %v6129_v20 = vcombine.low %v442_v26, %v442_v26  ;;  %v6130_v0 = vcombine.high %v442_v26, %v442_v26  ;;  %v7908_v28 = vpop.trf.xlu1 }
 0x21d   :  { %v7868_v41 = vpop.f32.mrf.mxu1  ;;  %v7872_v45 = vpack.c.bf16 %v4282_v33, %v4279_v6 }
 0x21e   :  { %2208 = vxpose.xlu1.c.b16.end [2/2] (short) (narrow) %v1980_v32, 16  ;;  %v7100_v14 = vpop.f32.mrf.mxu0  ;;  %663 = vst.msk [vmem:[#allocation2 + $0xa0] sm:$0xf] %vm642_vm1, %v6129_v20  ;;  %664 = vst.msk [vmem:[#allocation2 + $0xa8] sm:$0xf] %vm642_vm1, %v6130_v0 }
 0x21f   :  { %v7874_v46 = vpop.f32.mrf.mxu1  ;;  %v474_v31 = vpop.trf.xlu0 }
 0x220   :  { %v4295_v48 = vpop.f32.mrf.mxu0  ;;  %v6133_v40 = vcombine.low %v474_v31, %v474_v31  ;;  %v6134_v32 = vcombine.high %v474_v31, %v474_v31  ;;  %v7912_v44 = vpop.trf.xlu1 }
 0x221   :  { %v7878_v49 = vpop.f32.mrf.mxu1  ;;  %7157 = vmatmul.mubr.msk.bf16.gmra.mxu1 %vm683_vm0, %v7866_v12 }
 0x222   :  { %v7101_v51 = vpop.f32.mrf.mxu0  ;;  %7160 = vmatprep.mubr.msk.bf16.mxu1 %vm683_vm0, %v7872_v45  ;;  %667 = vst.msk [vmem:[#allocation2 + $0xc0] sm:$0xf] %vm642_vm1, %v6133_v40  ;;  %668 = vst.msk [vmem:[#allocation2 + $0xc8] sm:$0xf] %vm642_vm1, %v6134_v32 }
 0x223   :  { %v7886_v54 = vpop.f32.mrf.mxu1  ;;  %v4383_v23 = vpack.c.bf16 %v7101_v51, %v7100_v14  ;;  %v506_v13 = vpop.trf.xlu0 }
 0x224   :  { %v4298_v55 = vpop.f32.mrf.mxu0  ;;  %v6137_v42 = vcombine.low %v506_v13, %v506_v13  ;;  %v7918_v15 = vpop.trf.xlu1 }
 0x225   :  { %v7895_v19 = vpop.f32.mrf.mxu1  ;;  %v4382_v21 = vpack.c.bf16 %v4298_v55, %v4295_v48  ;;  %v6138_v48 = vcombine.high %v506_v13, %v506_v13 }
 0x226   :  { %v7104_v58 = vpop.f32.mrf.mxu0  ;;  %671 = vst.msk [vmem:[#allocation2 + $0xe0] sm:$0xf] %vm642_vm1, %v6137_v42  ;;  %v3633_v32 = vpack.c.bf16 %v7895_v19, %v7878_v49 }
 0x227   :  { %v7899_v5 = vpop.f32.mrf.mxu1  ;;  %4582 = vxpose.xlu0.c.b16.start [1/2] (short) (narrow) %v4382_v21, 16  ;;  %672 = vst.msk [vmem:[#allocation2 + $0xe8] sm:$0xf] %vm642_vm1, %v6138_v48  ;;  %v7922_v17 = vpop.trf.xlu0 }
 0x228   :  { %v4311_v60 = vpop.f32.mrf.mxu0 }
 0x229   :  { %v6998_v47 = vpop.f32.mrf.mxu1  ;;  %7161 = vmatmul.mubr.msk.bf16.gmra.mxu1 %vm683_vm0, %v7893_v57 }
 0x22a   :  { %v7105_v62 = vpop.f32.mrf.mxu0  ;;  %7164 = vmatprep.mubr.msk.bf16.mxu1 %vm683_vm0, %v4382_v21 }
 0x22b   :  { %v3421_v27 = vpop.f32.mrf.mxu1  ;;  %4583 = vxpose.xlu0.c.b16.end [2/2] (short) (narrow) %v4383_v23, 16  ;;  %v4385_v30 = vpack.c.bf16 %v7105_v62, %v7104_v58 }
 0x22c   :  { %v4314_v6 = vpop.f32.mrf.mxu0 }
 0x22d   :  { %v6999_v29 = vpop.f32.mrf.mxu1  ;;  %v4384_v10 = vpack.c.bf16 %v4314_v6, %v4311_v60  ;;  %v7928_v60 = vpop.trf.xlu0 }
 0x22e   :  { %v7108_v9 = vpop.f32.mrf.mxu0  ;;  %v3635_v4 = vpack.c.bf16 %v6999_v29, %v6998_v47 }
 0x22f   :  { %v3424_v38 = vpop.f32.mrf.mxu1  ;;  %4598 = vxpose.xlu0.c.b16.start [1/2] (short) (narrow) %v4384_v10, 16 }
 0x230   :  { %v4327_v33 = vpop.f32.mrf.mxu0  ;;  %v3634_v11 = vpack.c.bf16 %v3424_v38, %v3421_v27 }
 0x231   :  { %v7002_v2 = vpop.f32.mrf.mxu1  ;;  %7165 = vmatmul.mubr.msk.bf16.gmra.mxu1 %vm683_vm0, %v4383_v23  ;;  %v7924_v23 = vpop.trf.xlu1 }
 0x232   :  { %3708 = vxpose.xlu1.c.b16.start [1/2] (short) (narrow) %v3634_v11, 16  ;;  %v7109_v14 = vpop.f32.mrf.mxu0  ;;  %7168 = vmatprep.mubr.msk.bf16.mxu1 %vm683_vm0, %v4384_v10  ;;  %v7932_v6 = vpop.trf.xlu0 }
 0x233   :  { %v3437_v39 = vpop.f32.mrf.mxu1  ;;  %4599 = vxpose.xlu0.c.b16.end [2/2] (short) (narrow) %v4385_v30, 16  ;;  %v4387_v55 = vpack.c.bf16 %v7109_v14, %v7108_v9  ;;  %v3632_v9 = vpack.c.bf16 %v7899_v5, %v7886_v54 }
 0x234   :  { %v4330_v50 = vpop.f32.mrf.mxu0 }
 0x235   :  { %v7003_v51 = vpop.f32.mrf.mxu1  ;;  %v4386_v52 = vpack.c.bf16 %v4330_v50, %v4327_v33  ;;  %v7930_v27 = vpop.trf.xlu1 }
 0x236   :  { %3709 = vxpose.xlu1.c.b16.end [2/2] (short) (narrow) %v3635_v4, 16  ;;  %v7112_v18 = vpop.f32.mrf.mxu0  ;;  %v3637_v62 = vpack.c.bf16 %v7003_v51, %v7002_v2  ;;  %v7940_v38 = vpop.trf.xlu0 }
 0x237   :  { %v3440_v21 = vpop.f32.mrf.mxu1  ;;  %4614 = vxpose.xlu0.c.b16.start [1/2] (short) (narrow) %v4386_v52, 16 }
 0x238   :  { %v3636_v58 = vpack.c.bf16 %v3440_v21, %v3437_v39  ;;  %v4343_v3 = vpop.f32.mrf.mxu0 }
 0x239   :  { %v7006_v22 = vpop.f32.mrf.mxu1  ;;  %7169 = vmatmul.mubr.msk.bf16.gmra.mxu1 %vm683_vm0, %v4385_v30  ;;  %v7936_v31 = vpop.trf.xlu1 }
 0x23a   :  { %3724 = vxpose.xlu1.c.b16.start [1/2] (short) (narrow) %v3636_v58, 16  ;;  %v7113_v43 = vpop.f32.mrf.mxu0  ;;  %7172 = vmatprep.mubr.msk.bf16.mxu1 %vm683_vm0, %v4386_v52  ;;  %v7946_v54 = vpop.trf.xlu0 }
 0x23b   :  { %v3453_v47 = vpop.f32.mrf.mxu1  ;;  %4615 = vxpose.xlu0.c.b16.end [2/2] (short) (narrow) %v4387_v55, 16  ;;  %v4389_v29 = vpack.c.bf16 %v7113_v43, %v7112_v18 }
 0x23c   :  { %v4346_v26 = vpop.f32.mrf.mxu0 }
 0x23d   :  { %v7007_v20 = vpop.f32.mrf.mxu1  ;;  %v4388_v0 = vpack.c.bf16 %v4346_v26, %v4343_v3  ;;  %v7944_v33 = vpop.trf.xlu1 }
 0x23e   :  { %3725 = vxpose.xlu1.c.b16.end [2/2] (short) (narrow) %v3637_v62, 16  ;;  %9047 = vst [vmem:[#allocation3_spill] sm:$0xff] %v7944_v33  ;;  %v3639_v13 = vpack.c.bf16 %v7007_v20, %v7006_v22  ;;  %v7951_v42 = vpop.trf.xlu0 }
 0x23f   :  { %v3456_v10 = vpop.f32.mrf.mxu1  ;;  %4630 = vxpose.xlu0.c.b16.start [1/2] (short) (narrow) %v4388_v0, 16 }
 0x240   :  { %v3638_v11 = vpack.c.bf16 %v3456_v10, %v3453_v47 }
 0x241   :  { %v7010_v30 = vpop.f32.mrf.mxu1  ;;  %7173 = vmatmul.mubr.msk.bf16.gmra.mxu1 %vm683_vm0, %v4387_v55  ;;  %v7948_v14 = vpop.trf.xlu1 }
 0x242   :  { %3692 = vxpose.xlu1.c.b16.start [1/2] (short) (narrow) %v3632_v9, 16  ;;  %7176 = vmatprep.mubr.msk.bf16.mxu1 %vm683_vm0, %v4388_v0  ;;  %9048 = vst [vmem:[#allocation4_spill] sm:$0xff] %v7948_v14  ;;  %v7955_v50 = vpop.trf.xlu0 }
 0x243   :  { %v3469_v40 = vpop.f32.mrf.mxu1  ;;  %4631 = vxpose.xlu0.c.b16.end [2/2] (short) (narrow) %v4389_v29, 16 }
 0x245   :  { %v7011_v2 = vpop.f32.mrf.mxu1  ;;  %v7953_v49 = vpop.trf.xlu1 }
 0x246   :  { %3693 = vxpose.xlu1.c.b16.end [2/2] (short) (narrow) %v3633_v32, 16  ;;  %9049 = vst [vmem:[#allocation5_spill] sm:$0xff] %v7953_v49  ;;  %v3641_v55 = vpack.c.bf16 %v7011_v2, %v7010_v30  ;;  %v7961_v58 = vpop.trf.xlu0 }
 0x247   :  { %v3472_v5 = vpop.f32.mrf.mxu1  ;;  %3740 = vxpose.xlu0.c.b16.start [1/2] (short) (narrow) %v3638_v11, 16 }
 0x248   :  { %v3640_v19 = vpack.c.bf16 %v3472_v5, %v3469_v40 }
 0x249   :  { %v7014_v39 = vpop.f32.mrf.mxu1  ;;  %7177 = vmatmul.mubr.msk.bf16.gmra.mxu1 %vm683_vm0, %v4389_v29  ;;  %v7957_v18 = vpop.trf.xlu1  ;;  %v3630_v29 = vpack.c.bf16 %v7874_v46, %v7859_v37 }
 0x24a   :  { %9050 = vst [vmem:[#allocation6_spill] sm:$0xff] %v7957_v18  ;;  %v7971_v26 = vpop.trf.xlu0 }
 0x24b   :  { %v3485_v48 = vpop.f32.mrf.mxu1  ;;  %3741 = vxpose.xlu0.c.b16.end [2/2] (short) (narrow) %v3639_v13, 16  ;;  %9055 = vst [vmem:[#allocation11_spill] sm:$0xff] %v7971_v26 }
 0x24d   :  { %v7015_v4 = vpop.f32.mrf.mxu1  ;;  %v7965_v43 = vpop.trf.xlu1 }
 0x24e   :  { %v3643_v22 = vpack.c.bf16 %v7015_v4, %v7014_v39  ;;  %9053 = vst [vmem:[#allocation9_spill] sm:$0xff] %v7965_v43  ;;  %v7984_v30 = vpop.trf.xlu0 }
 0x24f   :  { %v3488_v51 = vpop.f32.mrf.mxu1  ;;  %3756 = vxpose.xlu0.c.b16.start [1/2] (short) (narrow) %v3640_v19, 16  ;;  %9058 = vst [vmem:[#allocation14_spill] sm:$0xff] %v7984_v30 }
 0x250   :  { %v3642_v52 = vpack.c.bf16 %v3488_v51, %v3485_v48 }
 0x251   :  { %v7959_v21 = vpop.f32.mrf.mxu1  ;;  %v7980_v10 = vpop.trf.xlu1 }
 0x252   :  { %9051 = vst [vmem:[#allocation7_spill] sm:$0xff] %v7959_v21  ;;  %3772 = vxpose.xlu1.c.b16.start [1/2] (short) (narrow) %v3642_v52, 16  ;;  %v7997_v46 = vpop.trf.xlu0 }
 0x253   :  { %v7963_v3 = vpop.f32.mrf.mxu1  ;;  %3757 = vxpose.xlu0.c.b16.end [2/2] (short) (narrow) %v3641_v55, 16  ;;  %9062 = vst [vmem:[#allocation18_spill] sm:$0xff] %v7997_v46 }
 0x254   :  { %9052 = vst [vmem:[#allocation8_spill] sm:$0xff] %v7963_v3 }
 0x255   :  { %v7967_v47 = vpop.f32.mrf.mxu1  ;;  %v7991_v32 = vpop.trf.xlu1 }
 0x256   :  { %9054 = vst [vmem:[#allocation10_spill] sm:$0xff] %v7967_v47  ;;  %3773 = vxpose.xlu1.c.b16.end [2/2] (short) (narrow) %v3643_v22, 16  ;;  %9060 = vst [vmem:[#allocation16_spill] sm:$0xff] %v7991_v32 }
 0x257   :  { %v7973_v20 = vpop.f32.mrf.mxu1  ;;  %4566 = vxpose.xlu0.c.b16.start [1/2] (short) (narrow) %v7872_v45, 16  ;;  %v3631_v45 = vpack.c.bf16 %v7868_v41, %v7851_v36  ;;  %v8008_v41 = vpop.trf.xlu0 }
 0x258   :  { %9056 = vst [vmem:[#allocation12_spill] sm:$0xff] %v7973_v20  ;;  %9066 = vst [vmem:[#allocation22_spill] sm:$0xff] %v8008_v41 }
 0x259   :  { %v7982_v9 = vpop.f32.mrf.mxu1  ;;  %v8004_v5 = vpop.trf.xlu1 }
 0x25a   :  { %9057 = vst [vmem:[#allocation13_spill] sm:$0xff] %v7982_v9  ;;  %3676 = vxpose.xlu1.c.b16.start [1/2] (short) (narrow) %v3630_v29, 16  ;;  %9064 = vst [vmem:[#allocation20_spill] sm:$0xff] %v8004_v5 }
 0x25b   :  { %v7986_v40 = vpop.f32.mrf.mxu1  ;;  %4567 = vxpose.xlu0.c.b16.end [2/2] (short) (narrow) %v7893_v57, 16  ;;  %v8019_v19 = vpop.trf.xlu0 }
 0x25c   :  { %9059 = vst [vmem:[#allocation15_spill] sm:$0xff] %v7986_v40  ;;  %9069 = vst [vmem:[#allocation25_spill] sm:$0xff] %v8019_v19 }
 0x25d   :  { %v7993_v11 = vpop.f32.mrf.mxu1  ;;  %v8013_v39 = vpop.trf.xlu1 }
 0x25e   :  { %9061 = vst [vmem:[#allocation17_spill] sm:$0xff] %v7993_v11  ;;  %3677 = vxpose.xlu1.c.b16.end [2/2] (short) (narrow) %v3631_v45, 16 }
 0x25f   :  { %v7999_v2 = vpop.f32.mrf.mxu1  ;;  %4550 = vxpose.xlu0.c.b16.start [1/2] (short) (narrow) %v7831_v7, 16  ;;  %v8029_v22 = vpop.trf.xlu0 }
 0x260   :  { %9063 = vst [vmem:[#allocation19_spill] sm:$0xff] %v7999_v2  ;;  %9073 = vst [vmem:[#allocation29_spill] sm:$0xff] %v8029_v22 }
 0x261   :  { %v8006_v36 = vpop.f32.mrf.mxu1  ;;  %v8025_v52 = vpop.trf.xlu1 }
 0x262   :  { %9065 = vst [vmem:[#allocation21_spill] sm:$0xff] %v8006_v36  ;;  %9071 = vst [vmem:[#allocation27_spill] sm:$0xff] %v8025_v52 }
 0x263   :  { %v8010_v13 = vpop.f32.mrf.mxu1  ;;  %4551 = vxpose.xlu0.c.b16.end [2/2] (short) (narrow) %v7866_v12, 16  ;;  %v8039_v0 = vpop.trf.xlu0 }
 0x264   :  { %9067 = vst [vmem:[#allocation23_spill] sm:$0xff] %v8010_v13 }
 0x265   :  { %v8015_v48 = vpop.f32.mrf.mxu1  ;;  %v8033_v29 = vpop.trf.xlu1 }
 0x266   :  { %9068 = vst [vmem:[#allocation24_spill] sm:$0xff] %v8015_v48 }
 0x267   :  { %v8021_v4 = vpop.f32.mrf.mxu1  ;;  %v8049_v63 = vpop.trf.xlu0 }
 0x268   :  { %9070 = vst [vmem:[#allocation26_spill] sm:$0xff] %v8021_v4  ;;  %9078 = vst [vmem:[#allocation34_spill] sm:$0xff] %v8049_v63 }
 0x269   :  { %v8027_v55 = vpop.f32.mrf.mxu1  ;;  %v8045_v7 = vpop.trf.xlu1 }
 0x26a   :  { %9072 = vst [vmem:[#allocation28_spill] sm:$0xff] %v8027_v55 }
 0x26b   :  { %v8031_v12 = vpop.f32.mrf.mxu1  ;;  %v8059_v3 = vpop.trf.xlu0 }
 0x26c   :  { %9074 = vst [vmem:[#allocation30_spill] sm:$0xff] %v8031_v12 }
 0x26d   :  { %v8035_v45 = vpop.f32.mrf.mxu1  ;;  %v8053_v21 = vpop.trf.xlu1 }
 0x26e   :  { %9075 = vst [vmem:[#allocation31_spill] sm:$0xff] %v8035_v45  ;;  %9079 = vst [vmem:[#allocation35_spill] sm:$0xff] %v8053_v21 }
 0x26f   :  { %v8041_v37 = vpop.f32.mrf.mxu1  ;;  %v8069_v40 = vpop.trf.xlu0 }
 0x270   :  { %9076 = vst [vmem:[#allocation32_spill] sm:$0xff] %v8041_v37  ;;  %9082 = vst [vmem:[#allocation38_spill] sm:$0xff] %v8069_v40 }
 0x271   :  { %v8047_v51 = vpop.f32.mrf.mxu1  ;;  %v8065_v9 = vpop.trf.xlu1 }
 0x272   :  { %9077 = vst [vmem:[#allocation33_spill] sm:$0xff] %v8047_v51  ;;  %9081 = vst [vmem:[#allocation37_spill] sm:$0xff] %v8065_v9 }
 0x273   :  { %v8051_v35 = vpop.f32.mrf.mxu1  ;;  %v8079_v12 = vpop.trf.xlu0 }
 0x275   :  { %v8055_v47 = vpop.f32.mrf.mxu1  ;;  %v8073_v55 = vpop.trf.xlu1 }
 0x276   :  { %9080 = vst [vmem:[#allocation36_spill] sm:$0xff] %v8055_v47  ;;  %9083 = vst [vmem:[#allocation39_spill] sm:$0xff] %v8073_v55 }
 0x277   :  { %v8061_v20 = vpop.f32.mrf.mxu1  ;;  %v8089_v13 = vpop.trf.xlu0 }
 0x279   :  { %v8067_v11 = vpop.f32.mrf.mxu1  ;;  %v8085_v36 = vpop.trf.xlu1 }
 0x27a   :  { %9084 = vst [vmem:[#allocation40_spill] sm:$0xff] %v8085_v36 }
 0x27b   :  { %v8071_v2 = vpop.f32.mrf.mxu1  ;;  %v8099_v63 = vpop.trf.xlu0 }
 0x27c   :  { %9086 = vst [vmem:[#allocation42_spill] sm:$0xff] %v8099_v63 }
 0x27d   :  { %v8075_v45 = vpop.f32.mrf.mxu1  ;;  %v8093_v22 = vpop.trf.xlu1 }
 0x27e   :  { %9085 = vst [vmem:[#allocation41_spill] sm:$0xff] %v8093_v22 }
 0x27f   :  { %v8081_v37 = vpop.f32.mrf.mxu1  ;;  %v8109_v5 = vpop.trf.xlu0 }
 0x280   :  { %9088 = vst [vmem:[#allocation44_spill] sm:$0xff] %v8109_v5 }
 0x281   :  { %v8087_v48 = vpop.f32.mrf.mxu1  ;;  %v8105_v32 = vpop.trf.xlu1 }
 0x282   :  { %9087 = vst [vmem:[#allocation43_spill] sm:$0xff] %v8105_v32 }
 0x283   :  { %v8091_v4 = vpop.f32.mrf.mxu1  ;;  %v8117_v62 = vpop.trf.xlu0 }
 0x285   :  { %v8095_v18 = vpop.f32.mrf.mxu1  ;;  %v8113_v26 = vpop.trf.xlu1 }
 0x286   :  { %9089 = vst [vmem:[#allocation45_spill] sm:$0xff] %v8113_v26 }
 0x287   :  { %v8101_v43 = vpop.f32.mrf.mxu1  ;;  %v8123_v57 = vpop.trf.xlu0 }
 0x288   :  { %9091 = vst [vmem:[#allocation47_spill] sm:$0xff] %v8123_v57 }
 0x289   :  { %v8107_v40 = vpop.f32.mrf.mxu1  ;;  %v8121_v30 = vpop.trf.xlu1 }
 0x28a   :  { %9090 = vst [vmem:[#allocation46_spill] sm:$0xff] %v8121_v30 }
 0x28b   :  { %v8111_v52 = vpop.f32.mrf.mxu1  ;;  %v8125_v36 = vpop.trf.xlu0 }
 0x28c   :  { %9092 = vst [vmem:[#allocation48_spill] sm:$0xff] %v8125_v36 }
 0x28d   :  { %v8115_v33 = vpop.f32.mrf.mxu1 }
 0x28f   :  { %v8119_v63 = vpop.f32.mrf.mxu1  ;;  %v8129_v26 = vpop.trf.xlu0 }
 0x291   :  { %v7118_v46 = vpop.f32.mrf.mxu1 }
 0x293   :  { %v4984_v21 = vpop.f32.mrf.mxu1 }
 0x294   :  { %v3716_v14 = vpop.trf.xlu1 }
 0x295   :  { %v7119_v9 = vpop.f32.mrf.mxu1  ;;  %v6375_v41 = vcombine.low %v3716_v14, %v3716_v14  ;;  %v6376_v5 = vcombine.high %v3716_v14, %v3716_v14  ;;  %v8131_v14 = vpop.trf.xlu0 }
 0x296   :  { %v5240_v32 = vpack.c.bf16 %v7119_v9, %v7118_v46  ;;  %9093 = vst [vmem:[#allocation49_spill] sm:$0xff] %v8131_v14 }
 0x297   :  { %v4987_v49 = vpop.f32.mrf.mxu1  ;;  %4034 = vst.msk [vmem:[#allocation2 + $0x34] sm:$0xf] %vm642_vm1, %v6375_v41  ;;  %4035 = vst.msk [vmem:[#allocation2 + $0x3c] sm:$0xf] %vm642_vm1, %v6376_v5 }
 0x298   :  { %v5239_v22 = vpack.c.bf16 %v4987_v49, %v4984_v21 }
 0x299   :  { %v7122_v19 = vpop.f32.mrf.mxu1  ;;  %v8136_v21 = vpop.trf.xlu0 }
 0x29a   :  { %5271 = vxpose.xlu0.c.b16.start [1/2] (short) (narrow) %v5239_v22, 16 }
 0x29b   :  { %v5000_v30 = vpop.f32.mrf.mxu1 }
 0x29c   :  { %v3732_v57 = vpop.trf.xlu1 }
 0x29d   :  { %v7123_v55 = vpop.f32.mrf.mxu1  ;;  %v6377_v51 = vcombine.low %v3732_v57, %v3732_v57  ;;  %v6378_v47 = vcombine.high %v3732_v57, %v3732_v57  ;;  %v8139_v14 = vpop.trf.xlu0 }
 0x29e   :  { %5272 = vxpose.xlu0.c.b16.end [2/2] (short) (narrow) %v5240_v32, 16  ;;  %v5242_v46 = vpack.c.bf16 %v7123_v55, %v7122_v19  ;;  %9094 = vst [vmem:[#allocation50_spill] sm:$0xff] %v8139_v14 }
 0x29f   :  { %v5003_v36 = vpop.f32.mrf.mxu1  ;;  %4036 = vst.msk [vmem:[#allocation2 + $0x44] sm:$0xf] %vm642_vm1, %v6377_v51  ;;  %4037 = vst.msk [vmem:[#allocation2 + $0x4c] sm:$0xf] %vm642_vm1, %v6378_v47 }
 0x2a0   :  { %v5241_v5 = vpack.c.bf16 %v5003_v36, %v5000_v30 }
 0x2a1   :  { %v7126_v49 = vpop.f32.mrf.mxu1  ;;  %v8143_v30 = vpop.trf.xlu0 }
 0x2a2   :  { %5287 = vxpose.xlu1.c.b16.start [1/2] (short) (narrow) %v5241_v5, 16  ;;  %4534 = vxpose.xlu0.c.b16.start [1/2] (short) (narrow) %v7811_v53, 16  ;;  %9095 = vst [vmem:[#allocation51_spill] sm:$0xff] %v8143_v30 }
 0x2a3   :  { %v5016_v9 = vpop.f32.mrf.mxu1 }
 0x2a4   :  { %v3700_v41 = vpop.trf.xlu1 }
 0x2a5   :  { %v7127_v22 = vpop.f32.mrf.mxu1  ;;  %v6373_v57 = vcombine.low %v3700_v41, %v3700_v41  ;;  %v6374_v32 = vcombine.high %v3700_v41, %v3700_v41  ;;  %v8145_v5 = vpop.trf.xlu0 }
 0x2a6   :  { %5288 = vxpose.xlu1.c.b16.end [2/2] (short) (narrow) %v5242_v46, 16  ;;  %4535 = vxpose.xlu0.c.b16.end [2/2] (short) (narrow) %v7825_v24, 16  ;;  %v5244_v19 = vpack.c.bf16 %v7127_v22, %v7126_v49  ;;  %v9097_v22 = vpack.c.bf16 %v7827_v25, %v7813_v1 }
 0x2a7   :  { %v5019_v51 = vpop.f32.mrf.mxu1  ;;  %4032 = vst.msk [vmem:[#allocation2 + $0x24] sm:$0xf] %vm642_vm1, %v6373_v57  ;;  %4033 = vst.msk [vmem:[#allocation2 + $0x2c] sm:$0xf] %vm642_vm1, %v6374_v32  ;;  %v9096_v57 = vpack.c.bf16 %v7835_v8, %v7821_v59  ;;  %v3658_v59 = vpack.c.bf16 %v8119_v63, %v8111_v52 }
 0x2a8   :  { %v5243_v47 = vpack.c.bf16 %v5019_v51, %v5016_v9 }
 0x2a9   :  { %v7130_v53 = vpop.f32.mrf.mxu1  ;;  %v8150_v9 = vpop.trf.xlu0 }
 0x2aa   :  { %5303 = vxpose.xlu1.c.b16.start [1/2] (short) (narrow) %v5243_v47, 16 }
 0x2ab   :  { %v5032_v36 = vpop.f32.mrf.mxu1 }
 0x2ad   :  { %v7131_v55 = vpop.f32.mrf.mxu1 }
 0x2ae   :  { %5304 = vxpose.xlu1.c.b16.end [2/2] (short) (narrow) %v5244_v19, 16  ;;  %v5246_v14 = vpack.c.bf16 %v7131_v55, %v7130_v53 }
 0x2af   :  { %v5035_v46 = vpop.f32.mrf.mxu1 }
 0x2b0   :  { %v5245_v24 = vpack.c.bf16 %v5035_v46, %v5032_v36  ;;  %v3748_v36 = vpop.trf.xlu0 }
 0x2b1   :  { %v7134_v41 = vpop.f32.mrf.mxu1  ;;  %v6379_v53 = vcombine.low %v3748_v36, %v3748_v36  ;;  %v6380_v55 = vcombine.high %v3748_v36, %v3748_v36 }
 0x2b2   :  { %3660 = vxpose.xlu1.c.b16.start [1/2] (short) (narrow) %v9096_v57, 16  ;;  %5319 = vxpose.xlu0.c.b16.start [1/2] (short) (narrow) %v5245_v24, 16 }
 0x2b3   :  { %v5048_v32 = vpop.f32.mrf.mxu1  ;;  %4038 = vst.msk [vmem:[#allocation2 + $0x54] sm:$0xf] %vm642_vm1, %v6379_v53  ;;  %4039 = vst.msk [vmem:[#allocation2 + $0x5c] sm:$0xf] %vm642_vm1, %v6380_v55  ;;  %v6175_v55 = vcombine.high %v7922_v17, %v7922_v17 }
 0x2b4   :  { %v3780_v51 = vpop.trf.xlu1  ;;  %v3764_v25 = vpop.trf.xlu0 }
 0x2b5   :  { %v7135_v47 = vpop.f32.mrf.mxu1  ;;  %v6383_v30 = vcombine.low %v3780_v51, %v3780_v51  ;;  %v6384_v49 = vcombine.high %v3780_v51, %v3780_v51  ;;  %v6381_v24 = vcombine.low %v3764_v25, %v3764_v25  ;;  %v6382_v57 = vcombine.high %v3764_v25, %v3764_v25 }
 0x2b6   :  { %3661 = vxpose.xlu1.c.b16.end [2/2] (short) (narrow) %v9097_v22, 16  ;;  %5320 = vxpose.xlu0.c.b16.end [2/2] (short) (narrow) %v5246_v14, 16  ;;  %v5248_v1 = vpack.c.bf16 %v7135_v47, %v7134_v41 }
 0x2b7   :  { %v5051_v19 = vpop.f32.mrf.mxu1  ;;  %4042 = vst.msk [vmem:[#allocation2 + $0x74] sm:$0xf] %vm642_vm1, %v6383_v30  ;;  %4043 = vst.msk [vmem:[#allocation2 + $0x7c] sm:$0xf] %vm642_vm1, %v6384_v49  ;;  %v3659_v30 = vpack.c.bf16 %v8115_v33, %v8107_v40  ;;  %v9098_v33 = vpack.c.bf16 %v8081_v37, %v8071_v2  ;;  %v6176_v2 = vcombine.low %v7901_v61, %v7901_v61 }
 0x2b8   :  { %v5247_v8 = vpack.c.bf16 %v5051_v19, %v5048_v32  ;;  %4040 = vst.msk [vmem:[#allocation2 + $0x64] sm:$0xf] %vm642_vm1, %v6381_v24  ;;  %4041 = vst.msk [vmem:[#allocation2 + $0x6c] sm:$0xf] %vm642_vm1, %v6382_v57  ;;  %v9099_v19 = vpack.c.bf16 %v8075_v45, %v8067_v11  ;;  %v6177_v45 = vcombine.high %v7901_v61, %v7901_v61 }
 0x2b9   :  { %v7138_v46 = vpop.f32.mrf.mxu1 }
 0x2ba   :  { %3900 = vxpose.xlu1.c.b16.start [1/2] (short) (narrow) %v3658_v59, 16  ;;  %5335 = vxpose.xlu0.c.b16.start [1/2] (short) (narrow) %v5247_v8, 16 }
 0x2bb   :  { %v5064_v14 = vpop.f32.mrf.mxu1 }
 0x2bc   :  { %v3684_v51 = vpop.trf.xlu1 }
 0x2bd   :  { %v7139_v49 = vpop.f32.mrf.mxu1  ;;  %v6371_v22 = vcombine.low %v3684_v51, %v3684_v51  ;;  %v6372_v63 = vcombine.high %v3684_v51, %v3684_v51 }
 0x2be   :  { %3901 = vxpose.xlu1.c.b16.end [2/2] (short) (narrow) %v3659_v30, 16  ;;  %5336 = vxpose.xlu0.c.b16.end [2/2] (short) (narrow) %v5248_v1, 16  ;;  %v5250_v47 = vpack.c.bf16 %v7139_v49, %v7138_v46  ;;  %v6179_v30 = vcombine.high %v7928_v60, %v7928_v60 }
 0x2bf   :  { %v5067_v52 = vpop.f32.mrf.mxu1  ;;  %4030 = vst.msk [vmem:[#allocation2 + $0x14] sm:$0xf] %vm642_vm1, %v6371_v22  ;;  %4031 = vst.msk [vmem:[#allocation2 + $0x1c] sm:$0xf] %vm642_vm1, %v6372_v63  ;;  %v6181_v22 = vcombine.high %v7908_v28, %v7908_v28 }
 0x2c0   :  { %v5249_v41 = vpack.c.bf16 %v5067_v52, %v5064_v14 }
 0x2c1   :  { %v7142_v32 = vpop.f32.mrf.mxu1 }
 0x2c2   :  { %3868 = vxpose.xlu1.c.b16.start [1/2] (short) (narrow) %v9098_v33, 16  ;;  %5351 = vxpose.xlu0.c.b16.start [1/2] (short) (narrow) %v5249_v41, 16 }
 0x2c3   :  { %v5080_v40 = vpop.f32.mrf.mxu1 }
 0x2c5   :  { %v7143_v36 = vpop.f32.mrf.mxu1 }
 0x2c6   :  { %3869 = vxpose.xlu1.c.b16.end [2/2] (short) (narrow) %v9099_v19, 16  ;;  %5352 = vxpose.xlu0.c.b16.end [2/2] (short) (narrow) %v5250_v47, 16  ;;  %v5252_v1 = vpack.c.bf16 %v7143_v36, %v7142_v32  ;;  %v6183_v32 = vcombine.high %v7932_v6, %v7932_v6 }
 0x2c7   :  { %v5083_v53 = vpop.f32.mrf.mxu1 }
 0x2c8   :  { %v5251_v59 = vpack.c.bf16 %v5083_v53, %v5080_v40  ;;  %v6185_v40 = vcombine.high %v7912_v44, %v7912_v44 }
 0x2c9   :  { %v7146_v8 = vpop.f32.mrf.mxu1 }
 0x2ca   :  { %1439 = vrot.lane.b32.xlu1 %v6175_v55, %s7268_s0  ;;  %5367 = vxpose.xlu0.c.b16.start [1/2] (short) (narrow) %v5251_v59, 16  ;;  %v6187_v59 = vcombine.high %v7940_v38, %v7940_v38 }
 0x2cb   :  { %v5096_v37 = vpop.f32.mrf.mxu1 }
 0x2cd   :  { %v7147_v46 = vpop.f32.mrf.mxu1 }
 0x2ce   :  { %1441 = vrot.lane.b32.xlu1 %v6176_v2, %s7268_s0  ;;  %5368 = vxpose.xlu0.c.b16.end [2/2] (short) (narrow) %v5252_v1, 16  ;;  %v5254_v24 = vpack.c.bf16 %v7147_v46, %v7146_v8 }
 0x2cf   :  { %v5099_v11 = vpop.f32.mrf.mxu1 }
 0x2d0   :  { %v5253_v25 = vpack.c.bf16 %v5099_v11, %v5096_v37  ;;  %v6189_v37 = vcombine.high %v7918_v15, %v7918_v15 }
 0x2d1   :  { %v8181_v14 = vpop.f32.mrf.mxu1 }
 0x2d2   :  { %1443 = vrot.lane.b32.xlu1 %v6177_v45, %s7268_s0  ;;  %5383 = vxpose.xlu0.c.b16.start [1/2] (short) (narrow) %v5253_v25, 16  ;;  %v6191_v25 = vcombine.high %v7946_v54, %v7946_v54 }
 0x2d3   :  { %v8184_v57 = vpop.f32.mrf.mxu1 }
 0x2d5   :  { %v8188_v51 = vpop.f32.mrf.mxu1 }
 0x2d6   :  { %v5256_v49 = vpack.c.bf16 %v8188_v51, %v8181_v14  ;;  %1447 = vrot.lane.b32.xlu1 %v6179_v30, %s7268_s0  ;;  %5384 = vxpose.xlu0.c.b16.end [2/2] (short) (narrow) %v5254_v24, 16  ;;  %v9101_v14 = vpack.c.bf16 %v8095_v18, %v8087_v48  ;;  %v9103_v18 = vld [vmem:[#allocation36_spill] sm:$0xff]  ;;  %v9104_v48 = vld [vmem:[#allocation33_spill] sm:$0xff] }
 0x2d7   :  { %v8193_v61 = vpop.f32.mrf.mxu1 }
 0x2d8   :  { %v5255_v63 = vpack.c.bf16 %v8193_v61, %v8184_v57  ;;  %v6249_v57 = vcombine.high %v8089_v13, %v8089_v13 }
 0x2d9   :  { %v7154_v52 = vpop.f32.mrf.mxu1 }
 0x2da   :  { %1451 = vrot.lane.b32.xlu1 %v6181_v22, %s7268_s0  ;;  %v6193_v22 = vcombine.high %v7924_v23, %v7924_v23 }
 0x2db   :  { %v5128_v41 = vpop.f32.mrf.mxu1 }
 0x2dd   :  { %v7155_v47 = vpop.f32.mrf.mxu1 }
 0x2de   :  { %1455 = vrot.lane.b32.xlu1 %v6183_v32, %s7268_s0  ;;  %v5258_v53 = vpack.c.bf16 %v7155_v47, %v7154_v52 }
 0x2df   :  { %v5131_v33 = vpop.f32.mrf.mxu1 }
 0x2e0   :  { %v5257_v36 = vpack.c.bf16 %v5131_v33, %v5128_v41  ;;  %v6195_v33 = vcombine.high %v7951_v42, %v7951_v42 }
 0x2e1   :  { %v7158_v19 = vpop.f32.mrf.mxu1 }
 0x2e2   :  { %1459 = vrot.lane.b32.xlu1 %v6185_v40, %s7268_s0  ;;  %5415 = vxpose.xlu0.c.b16.start [1/2] (short) (narrow) %v5257_v36, 16 }
 0x2e3   :  { %v5144_v55 = vpop.f32.mrf.mxu1 }
 0x2e5   :  { %v7159_v8 = vpop.f32.mrf.mxu1 }
 0x2e6   :  { %1463 = vrot.lane.b32.xlu1 %v6187_v59, %s7268_s0  ;;  %5416 = vxpose.xlu0.c.b16.end [2/2] (short) (narrow) %v5258_v53, 16  ;;  %v5260_v11 = vpack.c.bf16 %v7159_v8, %v7158_v19  ;;  %v6197_v19 = vcombine.high %v7930_v27, %v7930_v27 }
 0x2e7   :  { %v5147_v1 = vpop.f32.mrf.mxu1 }
 0x2e8   :  { %v5259_v2 = vpack.c.bf16 %v5147_v1, %v5144_v55  ;;  %v6199_v1 = vcombine.high %v7955_v50, %v7955_v50 }
 0x2e9   :  { %v7162_v46 = vpop.f32.mrf.mxu1 }
 0x2ea   :  { %1467 = vrot.lane.b32.xlu1 %v6189_v37, %s7268_s0  ;;  %5431 = vxpose.xlu0.c.b16.start [1/2] (short) (narrow) %v5259_v2, 16 }
 0x2eb   :  { %v5160_v45 = vpop.f32.mrf.mxu1 }
 0x2ed   :  { %v7163_v24 = vpop.f32.mrf.mxu1 }
 0x2ee   :  { %1471 = vrot.lane.b32.xlu1 %v6191_v25, %s7268_s0  ;;  %5432 = vxpose.xlu0.c.b16.end [2/2] (short) (narrow) %v5260_v11, 16  ;;  %v5262_v32 = vpack.c.bf16 %v7163_v24, %v7162_v46  ;;  %v6201_v46 = vcombine.high %v7936_v31, %v7936_v31 }
 0x2ef   :  { %v5163_v30 = vpop.f32.mrf.mxu1 }
 0x2f0   :  { %v5261_v52 = vpack.c.bf16 %v5163_v30, %v5160_v45  ;;  %v6203_v30 = vcombine.high %v7961_v58, %v7961_v58 }
 0x2f1   :  { %v7166_v41 = vpop.f32.mrf.mxu1 }
 0x2f2   :  { %1475 = vrot.lane.b32.xlu1 %v6193_v22, %s7268_s0  ;;  %5447 = vxpose.xlu0.c.b16.start [1/2] (short) (narrow) %v5261_v52, 16 }
 0x2f3   :  { %v5176_v47 = vpop.f32.mrf.mxu1 }
 0x2f5   :  { %v7167_v40 = vpop.f32.mrf.mxu1 }
 0x2f6   :  { %1479 = vrot.lane.b32.xlu1 %v6195_v33, %s7268_s0  ;;  %5448 = vxpose.xlu0.c.b16.end [2/2] (short) (narrow) %v5262_v32, 16  ;;  %v5264_v59 = vpack.c.bf16 %v7167_v40, %v7166_v41  ;;  %v6205_v41 = vcombine.high %v7890_v56, %v7890_v56 }
 0x2f7   :  { %v5179_v36 = vpop.f32.mrf.mxu1 }
 0x2f8   :  { %v5263_v53 = vpack.c.bf16 %v5179_v36, %v5176_v47 }
 0x2f9   :  { %v7170_v55 = vpop.f32.mrf.mxu1 }
 0x2fa   :  { %1483 = vrot.lane.b32.xlu1 %v6197_v19, %s7268_s0  ;;  %5463 = vxpose.xlu0.c.b16.start [1/2] (short) (narrow) %v5263_v53, 16  ;;  %v6238_v19 = vcombine.low %v8039_v0, %v8039_v0 }
 0x2fb   :  { %v5192_v8 = vpop.f32.mrf.mxu1 }
 0x2fd   :  { %v7171_v37 = vpop.f32.mrf.mxu1 }
 0x2fe   :  { %1487 = vrot.lane.b32.xlu1 %v6199_v1, %s7268_s0  ;;  %5464 = vxpose.xlu0.c.b16.end [2/2] (short) (narrow) %v5264_v59, 16  ;;  %v5266_v25 = vpack.c.bf16 %v7171_v37, %v7170_v55 }
 0x2ff   :  { %v5195_v2 = vpop.f32.mrf.mxu1 }
 0x300   :  { %v5265_v11 = vpack.c.bf16 %v5195_v2, %v5192_v8  ;;  %v6239_v8 = vcombine.high %v8039_v0, %v8039_v0  ;;  %v6241_v2 = vcombine.high %v7980_v10, %v7980_v10  ;;  %v6242_v0 = vcombine.low %v8059_v3, %v8059_v3 }
 0x301   :  { %v7174_v45 = vpop.f32.mrf.mxu1 }
 0x302   :  { %1491 = vrot.lane.b32.xlu1 %v6201_v46, %s7268_s0  ;;  %5479 = vxpose.xlu0.c.b16.start [1/2] (short) (narrow) %v5265_v11, 16 }
 0x303   :  { %v5208_v24 = vpop.f32.mrf.mxu1 }
 0x304   :  { %v8235_v47 = vpop.trf.xlu1 }
 0x305   :  { %v7175_v22 = vpop.f32.mrf.mxu1 }
 0x306   :  { %1495 = vrot.lane.b32.xlu1 %v6203_v30, %s7268_s0  ;;  %5480 = vxpose.xlu0.c.b16.end [2/2] (short) (narrow) %v5266_v25, 16  ;;  %v5268_v40 = vpack.c.bf16 %v7175_v22, %v7174_v45  ;;  %v6243_v25 = vcombine.high %v8059_v3, %v8059_v3  ;;  %v6247_v3 = vcombine.high %v8013_v39, %v8013_v39 }
 0x307   :  { %v5211_v52 = vpop.f32.mrf.mxu1 }
 0x308   :  { %v5267_v32 = vpack.c.bf16 %v5211_v52, %v5208_v24  ;;  %v6245_v52 = vcombine.high %v8079_v12, %v8079_v12 }
 0x309   :  { %v7178_v33 = vpop.f32.mrf.mxu1 }
 0x30a   :  { %1499 = vrot.lane.b32.xlu1 %v6205_v41, %s7268_s0  ;;  %5495 = vxpose.xlu0.c.b16.start [1/2] (short) (narrow) %v5267_v32, 16 }
 0x30b   :  { %v5224_v36 = vpop.f32.mrf.mxu1 }
 0x30c   :  { %v8241_v55 = vpop.trf.xlu1 }
 0x30d   :  { %v7179_v53 = vpop.f32.mrf.mxu1 }
 0x30e   :  { %2319 = vrot.lane.b32.xlu1 %v6238_v19, %s7269_s6  ;;  %5496 = vxpose.xlu0.c.b16.end [2/2] (short) (narrow) %v5268_v40, 16  ;;  %v5270_v37 = vpack.c.bf16 %v7179_v53, %v7178_v33  ;;  %v6251_v33 = vcombine.high %v8033_v29, %v8033_v29  ;;  %v9106_v19 = vld [vmem:[#allocation48_spill] sm:$0xff] }
 0x30f   :  { %v5227_v59 = vpop.f32.mrf.mxu1  ;;  %v6257_v53 = vcombine.high %v9106_v19, %v9106_v19 }
 0x310   :  { %v5269_v1 = vpack.c.bf16 %v5227_v59, %v5224_v36  ;;  %v9105_v36 = vpack.c.bf16 %v9103_v18, %v9104_v48  ;;  %v6190_v48 = vcombine.low %v7946_v54, %v7946_v54 }
 0x312   :  { %2321 = vrot.lane.b32.xlu1 %v6239_v8, %s7269_s6  ;;  %5511 = vxpose.xlu0.c.b16.start [1/2] (short) (narrow) %v5269_v1, 16  ;;  %v6174_v1 = vcombine.low %v7922_v17, %v7922_v17  ;;  %v9108_v17 = vld [vmem:[#allocation43_spill] sm:$0xff] }
 0x314   :  { %v3668_v46 = vpop.trf.xlu1 }
 0x315   :  { %v6369_v11 = vcombine.low %v3668_v46, %v3668_v46  ;;  %v6370_v45 = vcombine.high %v3668_v46, %v3668_v46 }
 0x316   :  { %2325 = vrot.lane.b32.xlu1 %v6241_v2, %s7269_s6  ;;  %5512 = vxpose.xlu0.c.b16.end [2/2] (short) (narrow) %v5270_v37, 16  ;;  %v6261_v37 = vcombine.high %v8129_v26, %v8129_v26 }
 0x317   :  { %4028 = vst.msk [vmem:[#allocation2 + $0x4] sm:$0xf] %vm642_vm1, %v6369_v11  ;;  %4029 = vst.msk [vmem:[#allocation2 + $0xc] sm:$0xf] %vm642_vm1, %v6370_v45  ;;  %v6178_v11 = vcombine.low %v7928_v60, %v7928_v60  ;;  %v6263_v45 = vcombine.high %v9108_v17, %v9108_v17  ;;  %v9109_v60 = vld [vmem:[#allocation49_spill] sm:$0xff] }
 0x31a   :  { %2327 = vrot.lane.b32.xlu1 %v6242_v0, %s7269_s6  ;;  %4518 = vxpose.xlu0.c.b16.start [1/2] (short) (narrow) %v7799_v34, 16  ;;  %v8267_v34 = vpop.trf.xlu0 }
 0x31c   :  { %v3908_v24 = vpop.trf.xlu1 }
 0x31d   :  { %v6399_v30 = vcombine.low %v3908_v24, %v3908_v24  ;;  %v6400_v22 = vcombine.high %v3908_v24, %v3908_v24 }
 0x31e   :  { %2329 = vrot.lane.b32.xlu1 %v6243_v25, %s7269_s6  ;;  %4519 = vxpose.xlu0.c.b16.end [2/2] (short) (narrow) %v7807_v16, 16  ;;  %v8279_v61 = vpop.trf.xlu0  ;;  %v6180_v25 = vcombine.low %v7908_v28, %v7908_v28  ;;  %v9110_v28 = vld [vmem:[#allocation46_spill] sm:$0xff] }
 0x31f   :  { %4058 = vst.msk [vmem:[#allocation2 + $0xf4] sm:$0xf] %vm642_vm1, %v6399_v30  ;;  %4059 = vst.msk [vmem:[#allocation2 + $0xfc] sm:$0xf] %vm642_vm1, %v6400_v22  ;;  %v6265_v30 = vcombine.high %v9109_v60, %v9109_v60 }
 0x322   :  { %2333 = vrot.lane.b32.xlu1 %v6245_v52, %s7269_s6  ;;  %5399 = vxpose.xlu0.c.b16.start [1/2] (short) (narrow) %v5255_v63, 16  ;;  %v9100_v63 = vpack.c.bf16 %v8101_v43, %v8091_v4  ;;  %v8291_v51 = vpop.trf.xlu0  ;;  %v9102_v43 = vpack.c.bf16 %v8061_v20, %v8051_v35  ;;  %v6255_v4 = vcombine.high %v8045_v7, %v8045_v7  ;;  %v9107_v35 = vld [vmem:[#allocation39_spill] sm:$0xff] }
 0x323   :  { %v6259_v20 = vcombine.high %v9107_v35, %v9107_v35  ;;  %v6182_v52 = vcombine.low %v7932_v6, %v7932_v6  ;;  %v6269_v6 = vcombine.high %v8136_v21, %v8136_v21 }
 0x324   :  { %v3876_v41 = vpop.trf.xlu1 }
 0x325   :  { %v6395_v16 = vcombine.low %v3876_v41, %v3876_v41  ;;  %v6396_v32 = vcombine.high %v3876_v41, %v3876_v41 }
 0x326   :  { %2337 = vrot.lane.b32.xlu1 %v6247_v3, %s7269_s6  ;;  %5400 = vxpose.xlu0.c.b16.end [2/2] (short) (narrow) %v5256_v49, 16  ;;  %v6253_v49 = vcombine.high %v8117_v62, %v8117_v62  ;;  %v8301_v40 = vpop.trf.xlu0  ;;  %v6267_v3 = vcombine.high %v9110_v28, %v9110_v28 }
 0x327   :  { %4054 = vst.msk [vmem:[#allocation2 + $0xd4] sm:$0xf] %vm642_vm1, %v6395_v16  ;;  %4055 = vst.msk [vmem:[#allocation2 + $0xdc] sm:$0xf] %vm642_vm1, %v6396_v32  ;;  %v6184_v32 = vcombine.low %v7912_v44, %v7912_v44  ;;  %v9111_v44 = vld [vmem:[#allocation45_spill] sm:$0xff] }
 0x32a   :  { %2341 = vrot.lane.b32.xlu1 %v6249_v57, %s7269_s6  ;;  %3884 = vxpose.xlu0.c.b16.start [1/2] (short) (narrow) %v9100_v63, 16  ;;  %v8310_v59 = vpop.trf.xlu0  ;;  %v6186_v63 = vcombine.low %v7940_v38, %v7940_v38  ;;  %v6451_v38 = vcombine.high %v9111_v44, %v9111_v44 }
 0x32e   :  { %2345 = vrot.lane.b32.xlu1 %v6251_v33, %s7269_s6  ;;  %3885 = vxpose.xlu0.c.b16.end [2/2] (short) (narrow) %v9101_v14, 16  ;;  %v8321_v46 = vpop.trf.xlu0  ;;  %v6450_v14 = vcombine.low %v9111_v44, %v9111_v44 }
 0x332   :  { %2349 = vrot.lane.b32.xlu1 %v6253_v49, %s7269_s6  ;;  %3852 = vxpose.xlu0.c.b16.start [1/2] (short) (narrow) %v9102_v43, 16  ;;  %v8334_v24 = vpop.trf.xlu0  ;;  %v6188_v43 = vcombine.low %v7918_v15, %v7918_v15  ;;  %v9112_v15 = vld [vmem:[#allocation25_spill] sm:$0xff] }
 0x336   :  { %2353 = vrot.lane.b32.xlu1 %v6255_v4, %s7269_s6  ;;  %3853 = vxpose.xlu0.c.b16.end [2/2] (short) (narrow) %v9105_v36, 16  ;;  %v8346_v16 = vpop.trf.xlu0  ;;  %v6320_v36 = vcombine.high %v9112_v15, %v9112_v15 }
 0x33a   :  { %2357 = vrot.lane.b32.xlu1 %v6257_v53, %s7269_s6  ;;  %v5391_v33 = vpop.trf.xlu0 }
 0x33b   :  { %v6514_v54 = vcombine.low %v5391_v33, %v5391_v33 }
 0x33c   :  { %v1440_v8 = vpop.permute.xlu1 %1439 }
 0x33d   :  { %1535 = vst.msk [vmem:[#allocation2 + $0x8] sm:$0xf] %vm1533_vm2, %v1440_v8  ;;  %v6192_v8 = vcombine.low %v7924_v23, %v7924_v23  ;;  %v6515_v23 = vcombine.high %v5391_v33, %v5391_v33 }
 0x33e   :  { %2361 = vrot.lane.b32.xlu1 %v6259_v20, %s7269_s6 }
 0x33f   :  { %1437 = vrot.lane.b32.xlu0 %v6174_v1, %s7268_s0 }
 0x340   :  { %v1442_v2 = vpop.permute.xlu1 %1441 }
 0x341   :  { %1536 = vst.msk [vmem:[#allocation2 + $0x10] sm:$0xf] %vm1533_vm2, %v1442_v2 }
 0x342   :  { %2365 = vrot.lane.b32.xlu1 %v6261_v37, %s7269_s6  ;;  %v6194_v37 = vcombine.low %v7951_v42, %v7951_v42  ;;  %v9113_v42 = vld [vmem:[#allocation41_spill] sm:$0xff] }
 0x343   :  { %1445 = vrot.lane.b32.xlu0 %v6178_v11, %s7268_s0 }
 0x344   :  { %v1444_v0 = vpop.permute.xlu1 %1443  ;;  %v8366_v4 = vpop.trf.xlu0 }
 0x345   :  { %1537 = vst.msk [vmem:[#allocation2 + $0x18] sm:$0xf] %vm1533_vm2, %v1444_v0  ;;  %v6449_v0 = vcombine.high %v9113_v42, %v9113_v42 }
 0x346   :  { %2369 = vrot.lane.b32.xlu1 %v6263_v45, %s7269_s6  ;;  %v6196_v45 = vcombine.low %v7930_v27, %v7930_v27  ;;  %v9114_v27 = vld [vmem:[#allocation5_spill] sm:$0xff] }
 0x347   :  { %1449 = vrot.lane.b32.xlu0 %v6180_v25, %s7268_s0 }
 0x348   :  { %v1448_v22 = vpop.permute.xlu1 %1447 }
 0x349   :  { %1539 = vst.msk [vmem:[#allocation2 + $0x28] sm:$0xf] %vm1533_vm2, %v1448_v22  ;;  %v6198_v22 = vcombine.low %v7955_v50, %v7955_v50  ;;  %v6513_v50 = vcombine.high %v8346_v16, %v8346_v16 }
 0x34a   :  { %2373 = vrot.lane.b32.xlu1 %v6265_v30, %s7269_s6 }
 0x34b   :  { %1453 = vrot.lane.b32.xlu0 %v6182_v52, %s7268_s0  ;;  %v6318_v52 = vcombine.high %v9114_v27, %v9114_v27 }
 0x34c   :  { %v1452_v41 = vpop.permute.xlu1 %1451  ;;  %v8378_v20 = vpop.trf.xlu0 }
 0x34d   :  { %1541 = vst.msk [vmem:[#allocation2 + $0x38] sm:$0xf] %vm1533_vm2, %v1452_v41  ;;  %v6200_v41 = vcombine.low %v7936_v31, %v7936_v31  ;;  %v9115_v31 = vld [vmem:[#allocation40_spill] sm:$0xff] }
 0x34e   :  { %2377 = vrot.lane.b32.xlu1 %v6267_v3, %s7269_s6 }
 0x34f   :  { %1457 = vrot.lane.b32.xlu0 %v6184_v32, %s7268_s0 }
 0x350   :  { %v1456_v57 = vpop.permute.xlu1 %1455 }
 0x351   :  { %1543 = vst.msk [vmem:[#allocation2 + $0x48] sm:$0xf] %vm1533_vm2, %v1456_v57  ;;  %v6202_v57 = vcombine.low %v7961_v58, %v7961_v58  ;;  %v9116_v58 = vld [vmem:[#allocation22_spill] sm:$0xff] }
 0x352   :  { %2381 = vrot.lane.b32.xlu1 %v6269_v6, %s7269_s6 }
 0x353   :  { %1461 = vrot.lane.b32.xlu0 %v6186_v63, %s7268_s0  ;;  %v6447_v63 = vcombine.high %v9115_v31, %v9115_v31 }
 0x354   :  { %v1460_v49 = vpop.permute.xlu1 %1459  ;;  %v8389_v2 = vpop.trf.xlu0 }
 0x355   :  { %1545 = vst.msk [vmem:[#allocation2 + $0x58] sm:$0xf] %vm1533_vm2, %v1460_v49  ;;  %v6316_v49 = vcombine.high %v9116_v58, %v9116_v58 }
 0x356   :  { %4754 = vrot.lane.b32.xlu1 %v6450_v14, %s7268_s0  ;;  %v6204_v14 = vcombine.low %v7890_v56, %v7890_v56  ;;  %v6511_v56 = vcombine.high %v8334_v24, %v8334_v24 }
 0x357   :  { %1465 = vrot.lane.b32.xlu0 %v6188_v43, %s7268_s0 }
 0x358   :  { %v1464_v18 = vpop.permute.xlu1 %1463 }
 0x359   :  { %1547 = vst.msk [vmem:[#allocation2 + $0x68] sm:$0xf] %vm1533_vm2, %v1464_v18 }
 0x35a   :  { %4756 = vrot.lane.b32.xlu1 %v6451_v38, %s7268_s0  ;;  %v6240_v38 = vcombine.low %v7980_v10, %v7980_v10  ;;  %v9117_v10 = vld [vmem:[#allocation37_spill] sm:$0xff] }
 0x35b   :  { %1469 = vrot.lane.b32.xlu0 %v6190_v48, %s7268_s0 }
 0x35c   :  { %v1468_v53 = vpop.permute.xlu1 %1467  ;;  %v8399_v30 = vpop.trf.xlu0 }
 0x35d   :  { %1549 = vst.msk [vmem:[#allocation2 + $0x78] sm:$0xf] %vm1533_vm2, %v1468_v53  ;;  %v6445_v53 = vcombine.high %v9117_v10, %v9117_v10 }
 0x35e   :  { %3144 = vrot.lane.b32.xlu1 %v6320_v36, %s7270_s7  ;;  %v6244_v36 = vcombine.low %v8079_v12, %v8079_v12  ;;  %v9118_v12 = vld [vmem:[#allocation4_spill] sm:$0xff] }
 0x35f   :  { %1473 = vrot.lane.b32.xlu0 %v6192_v8, %s7268_s0 }
 0x360   :  { %v1472_v1 = vpop.permute.xlu1 %1471 }
 0x361   :  { %1551 = vst.msk [vmem:[#allocation2 + $0x88] sm:$0xf] %vm1533_vm2, %v1472_v1  ;;  %v6246_v1 = vcombine.low %v8013_v39, %v8013_v39  ;;  %v6314_v39 = vcombine.high %v9118_v12, %v9118_v12 }
 0x362   :  { %5635 = vrot.lane.b32.xlu1 %v6514_v54, %s7269_s6 }
 0x363   :  { %1477 = vrot.lane.b32.xlu0 %v6194_v37, %s7268_s0  ;;  %v6313_v37 = vcombine.low %v9118_v12, %v9118_v12 }
 0x364   :  { %v1476_v11 = vpop.permute.xlu1 %1475  ;;  %v8412_v32 = vpop.trf.xlu0 }
 0x365   :  { %1553 = vst.msk [vmem:[#allocation2 + $0x98] sm:$0xf] %vm1533_vm2, %v1476_v11  ;;  %v6248_v11 = vcombine.low %v8089_v13, %v8089_v13  ;;  %v6509_v13 = vcombine.high %v8321_v46, %v8321_v46 }
 0x366   :  { %5637 = vrot.lane.b32.xlu1 %v6515_v23, %s7269_s6 }
 0x367   :  { %1481 = vrot.lane.b32.xlu0 %v6196_v45, %s7268_s0 }
 0x368   :  { %v1480_v25 = vpop.permute.xlu1 %1479 }
 0x369   :  { %1555 = vst.msk [vmem:[#allocation2 + $0xa8] sm:$0xf] %vm1533_vm2, %v1480_v25  ;;  %v6250_v25 = vcombine.low %v8033_v29, %v8033_v29  ;;  %v9119_v29 = vld [vmem:[#allocation35_spill] sm:$0xff] }
 0x36a   :  { %4752 = vrot.lane.b32.xlu1 %v6449_v0, %s7268_s0 }
 0x36b   :  { %1485 = vrot.lane.b32.xlu0 %v6198_v22, %s7268_s0 }
 0x36c   :  { %v1484_v3 = vpop.permute.xlu1 %1483  ;;  %v8424_v44 = vpop.trf.xlu0 }
 0x36d   :  { %1557 = vst.msk [vmem:[#allocation2 + $0xb8] sm:$0xf] %vm1533_vm2, %v1484_v3  ;;  %v6252_v3 = vcombine.low %v8117_v62, %v8117_v62  ;;  %v6443_v62 = vcombine.high %v9119_v29, %v9119_v29 }
 0x36e   :  { %3140 = vrot.lane.b32.xlu1 %v6318_v52, %s7270_s7 }
 0x36f   :  { %1489 = vrot.lane.b32.xlu0 %v6200_v41, %s7268_s0 }
 0x370   :  { %v1488_v6 = vpop.permute.xlu1 %1487 }
 0x371   :  { %1559 = vst.msk [vmem:[#allocation2 + $0xc8] sm:$0xf] %vm1533_vm2, %v1488_v6  ;;  %v6442_v6 = vcombine.low %v9119_v29, %v9119_v29 }
 0x372   :  { %5633 = vrot.lane.b32.xlu1 %v6513_v50, %s7269_s6 }
 0x373   :  { %1493 = vrot.lane.b32.xlu0 %v6202_v57, %s7268_s0 }
 0x374   :  { %v1492_v33 = vpop.permute.xlu1 %1491  ;;  %v8437_v18 = vpop.trf.xlu0 }
 0x375   :  { %1561 = vst.msk [vmem:[#allocation2 + $0xd8] sm:$0xf] %vm1533_vm2, %v1492_v33 }
 0x376   :  { %4748 = vrot.lane.b32.xlu1 %v6447_v63, %s7268_s0  ;;  %v6254_v63 = vcombine.low %v8045_v7, %v8045_v7  ;;  %v9120_v7 = vld [vmem:[#allocation18_spill] sm:$0xff] }
 0x377   :  { %1497 = vrot.lane.b32.xlu0 %v6204_v14, %s7268_s0 }
 0x378   :  { %v1496_v43 = vpop.permute.xlu1 %1495 }
 0x379   :  { %1563 = vst.msk [vmem:[#allocation2 + $0xe8] sm:$0xf] %vm1533_vm2, %v1496_v43 }
 0x37a   :  { %3136 = vrot.lane.b32.xlu1 %v6316_v49, %s7270_s7  ;;  %v6256_v49 = vcombine.low %v9106_v19, %v9106_v19  ;;  %v6506_v19 = vcombine.low %v8310_v59, %v8310_v59 }
 0x37b   :  { %2323 = vrot.lane.b32.xlu0 %v6240_v38, %s7269_s6 }
 0x37c   :  { %v1500_v48 = vpop.permute.xlu1 %1499  ;;  %v8451_v54 = vpop.trf.xlu0 }
 0x37d   :  { %1565 = vst.msk [vmem:[#allocation2 + $0xf8] sm:$0xf] %vm1533_vm2, %v1500_v48 }
 0x37e   :  { %5629 = vrot.lane.b32.xlu1 %v6511_v56, %s7269_s6  ;;  %v6312_v56 = vcombine.high %v9120_v7, %v9120_v7 }
 0x37f   :  { %2331 = vrot.lane.b32.xlu0 %v6244_v36, %s7269_s6  ;;  %v6258_v36 = vcombine.low %v9107_v35, %v9107_v35  ;;  %v6507_v35 = vcombine.high %v8310_v59, %v8310_v59 }
 0x380   :  { %v8449_v8 = vpop.permute.xlu1 %2319 }
 0x382   :  { %4744 = vrot.lane.b32.xlu1 %v6445_v53, %s7268_s0 }
 0x383   :  { %2335 = vrot.lane.b32.xlu0 %v6246_v1, %s7269_s6  ;;  %v6260_v1 = vcombine.low %v8129_v26, %v8129_v26  ;;  %v9121_v26 = vld [vmem:[#allocation47_spill] sm:$0xff] }
 0x384   :  { %v2322_v23 = vpop.permute.xlu1 %2321  ;;  %v8463_v45 = vpop.trf.xlu0  ;;  %v6441_v59 = vcombine.high %v9121_v26, %v9121_v26 }
 0x385   :  { %2417 = vst.msk [vmem:[#allocation2 + $0x8] sm:$0xf] %vm2415_vm3, %v2322_v23  ;;  %v6440_v23 = vcombine.low %v9121_v26, %v9121_v26 }
 0x386   :  { %3130 = vrot.lane.b32.xlu1 %v6313_v37, %s7270_s7  ;;  %v6262_v37 = vcombine.low %v9108_v17, %v9108_v17 }
 0x387   :  { %2339 = vrot.lane.b32.xlu0 %v6248_v11, %s7269_s6 }
 0x388   :  { %v2326_v0 = vpop.permute.xlu1 %2325 }
 0x389   :  { %2419 = vst.msk [vmem:[#allocation2 + $0x18] sm:$0xf] %vm2415_vm3, %v2326_v0  ;;  %v6266_v0 = vcombine.low %v9110_v28, %v9110_v28  ;;  %v6504_v28 = vcombine.low %v8241_v55, %v8241_v55 }
 0x38a   :  { %3132 = vrot.lane.b32.xlu1 %v6314_v39, %s7270_s7  ;;  %v6264_v39 = vcombine.low %v9109_v60, %v9109_v60  ;;  %v9122_v60 = vld [vmem:[#allocation14_spill] sm:$0xff] }
 0x38b   :  { %2343 = vrot.lane.b32.xlu0 %v6250_v25, %s7269_s6  ;;  %v6310_v25 = vcombine.high %v9122_v60, %v9122_v60 }
 0x38c   :  { %v8475_v22 = vpop.permute.xlu1 %2327  ;;  %v3892_v52 = vpop.trf.xlu0 }
 0x38d   :  { %v6397_v41 = vcombine.low %v3892_v52, %v3892_v52  ;;  %v6398_v50 = vcombine.high %v3892_v52, %v3892_v52  ;;  %v6268_v52 = vcombine.low %v8136_v21, %v8136_v21  ;;  %v6505_v21 = vcombine.high %v8241_v55, %v8241_v55 }
 0x38e   :  { %5625 = vrot.lane.b32.xlu1 %v6509_v13, %s7269_s6 }
 0x38f   :  { %2347 = vrot.lane.b32.xlu0 %v6252_v3, %s7269_s6  ;;  %4056 = vst.msk [vmem:[#allocation2 + $0xe4] sm:$0xf] %vm642_vm1, %v6397_v41  ;;  %4057 = vst.msk [vmem:[#allocation2 + $0xec] sm:$0xf] %vm642_vm1, %v6398_v50  ;;  %v6319_v41 = vcombine.low %v9112_v15, %v9112_v15 }
 0x390   :  { %v2330_v57 = vpop.permute.xlu1 %2329 }
 0x391   :  { %2421 = vst.msk [vmem:[#allocation2 + $0x28] sm:$0xf] %vm2415_vm3, %v2330_v57 }
 0x392   :  { %4738 = vrot.lane.b32.xlu1 %v6442_v6, %s7268_s0  ;;  %v6448_v6 = vcombine.low %v9113_v42, %v9113_v42 }
 0x393   :  { %2351 = vrot.lane.b32.xlu0 %v6254_v63, %s7269_s6  ;;  %v6317_v63 = vcombine.low %v9114_v27, %v9114_v27 }
 0x394   :  { %v2334_v33 = vpop.permute.xlu1 %2333  ;;  %v3860_v14 = vpop.trf.xlu0 }
 0x395   :  { %2423 = vst.msk [vmem:[#allocation2 + $0x38] sm:$0xf] %vm2415_vm3, %v2334_v33  ;;  %v6393_v43 = vcombine.low %v3860_v14, %v3860_v14  ;;  %v6394_v38 = vcombine.high %v3860_v14, %v3860_v14  ;;  %v6512_v14 = vcombine.low %v8346_v16, %v8346_v16  ;;  %v6503_v16 = vcombine.high %v8235_v47, %v8235_v47 }
 0x396   :  { %4740 = vrot.lane.b32.xlu1 %v6443_v62, %s7268_s0  ;;  %v9124_v62 = vld [vmem:[#allocation3_spill] sm:$0xff] }
 0x397   :  { %2355 = vrot.lane.b32.xlu0 %v6256_v49, %s7269_s6  ;;  %4052 = vst.msk [vmem:[#allocation2 + $0xc4] sm:$0xf] %vm642_vm1, %v6393_v43  ;;  %4053 = vst.msk [vmem:[#allocation2 + $0xcc] sm:$0xf] %vm642_vm1, %v6394_v38  ;;  %v6308_v27 = vcombine.high %v9124_v62, %v9124_v62  ;;  %v6446_v38 = vcombine.low %v9115_v31, %v9115_v31  ;;  %v9125_v31 = vld [vmem:[#allocation42_spill] sm:$0xff] }
 0x398   :  { %v2338_v48 = vpop.permute.xlu1 %2337 }
 0x399   :  { %2425 = vst.msk [vmem:[#allocation2 + $0x48] sm:$0xf] %vm2415_vm3, %v2338_v48 }
 0x39a   :  { %3128 = vrot.lane.b32.xlu1 %v6312_v56, %s7270_s7 }
 0x39b   :  { %2359 = vrot.lane.b32.xlu0 %v6258_v36, %s7269_s6  ;;  %v6315_v36 = vcombine.low %v9116_v58, %v9116_v58  ;;  %v9126_v58 = vld [vmem:[#allocation11_spill] sm:$0xff] }
 0x39c   :  { %v2342_v53 = vpop.permute.xlu1 %2341 }
 0x39d   :  { %2427 = vst.msk [vmem:[#allocation2 + $0x58] sm:$0xf] %vm2415_vm3, %v2342_v53  ;;  %v6437_v53 = vcombine.high %v9125_v31, %v9125_v31 }
 0x39e   :  { %5619 = vrot.lane.b32.xlu1 %v6506_v19, %s7269_s6 }
 0x39f   :  { %2363 = vrot.lane.b32.xlu0 %v6260_v1, %s7269_s6 }
 0x3a0   :  { %v2346_v12 = vpop.permute.xlu1 %2345 }
 0x3a1   :  { %2429 = vst.msk [vmem:[#allocation2 + $0x68] sm:$0xf] %vm2415_vm3, %v2346_v12 }
 0x3a2   :  { %5621 = vrot.lane.b32.xlu1 %v6507_v35, %s7269_s6  ;;  %v6510_v35 = vcombine.low %v8334_v24, %v8334_v24  ;;  %v6306_v24 = vcombine.high %v9126_v58, %v9126_v58 }
 0x3a3   :  { %2367 = vrot.lane.b32.xlu0 %v6262_v37, %s7269_s6  ;;  %v6305_v37 = vcombine.low %v9126_v58, %v9126_v58 }
 0x3a4   :  { %v2350_v11 = vpop.permute.xlu1 %2349 }
 0x3a5   :  { %2431 = vst.msk [vmem:[#allocation2 + $0x78] sm:$0xf] %vm2415_vm3, %v2350_v11 }
 0x3a6   :  { %4734 = vrot.lane.b32.xlu1 %v6440_v23, %s7268_s0  ;;  %v6444_v23 = vcombine.low %v9117_v10, %v9117_v10 }
 0x3a7   :  { %2371 = vrot.lane.b32.xlu0 %v6264_v39, %s7269_s6 }
 0x3a8   :  { %v2354_v17 = vpop.permute.xlu1 %2353 }
 0x3a9   :  { %2433 = vst.msk [vmem:[#allocation2 + $0x88] sm:$0xf] %vm2415_vm3, %v2354_v17  ;;  %v6501_v17 = vcombine.high %v8291_v51, %v8291_v51 }
 0x3aa   :  { %4736 = vrot.lane.b32.xlu1 %v6441_v59, %s7268_s0  ;;  %v6508_v59 = vcombine.low %v8321_v46, %v8321_v46  ;;  %v6467_v46 = vcombine.high %v8150_v9, %v8150_v9 }
 0x3ab   :  { %2375 = vrot.lane.b32.xlu0 %v6266_v0, %s7269_s6 }
 0x3ac   :  { %v2358_v13 = vpop.permute.xlu1 %2357 }
 0x3ad   :  { %2435 = vst.msk [vmem:[#allocation2 + $0x98] sm:$0xf] %vm2415_vm3, %v2358_v13 }
 0x3ae   :  { %3124 = vrot.lane.b32.xlu1 %v6310_v25, %s7270_s7  ;;  %v6311_v25 = vcombine.low %v9120_v7, %v9120_v7  ;;  %v9127_v7 = vld [vmem:[#allocation27_spill] sm:$0xff] }
 0x3af   :  { %2379 = vrot.lane.b32.xlu0 %v6268_v52, %s7269_s6 }
 0x3b0   :  { %v2362_v3 = vpop.permute.xlu1 %2361 }
 0x3b1   :  { %2437 = vst.msk [vmem:[#allocation2 + $0xa8] sm:$0xf] %vm2415_vm3, %v2362_v3  ;;  %v1438_v50 = vpop.permute.xlu0 %1437 }
 0x3b2   :  { %1534 = vst.msk [vmem:[#allocation2] sm:$0xf] %vm1533_vm2, %v1438_v50  ;;  %5615 = vrot.lane.b32.xlu1 %v6504_v28, %s7269_s6  ;;  %v6309_v28 = vcombine.low %v9122_v60, %v9122_v60  ;;  %v6336_v60 = vcombine.high %v9127_v7, %v9127_v7 }
 0x3b3   :  { %2416 = vst.msk [vmem:[#allocation2] sm:$0xf] %vm2415_vm3, %v8449_v8  ;;  %3142 = vrot.lane.b32.xlu0 %v6319_v41, %s7270_s7  ;;  %v9123_v8 = vld [vmem:[#allocation44_spill] sm:$0xff]  ;;  %v6335_v41 = vcombine.low %v9127_v7, %v9127_v7 }
 0x3b4   :  { %v2366_v29 = vpop.permute.xlu1 %2365  ;;  %v6439_v57 = vcombine.high %v9123_v8, %v9123_v8 }
 0x3b5   :  { %2439 = vst.msk [vmem:[#allocation2 + $0xb8] sm:$0xf] %vm2415_vm3, %v2366_v29  ;;  %v1446_v15 = vpop.permute.xlu0 %1445 }
 0x3b6   :  { %1538 = vst.msk [vmem:[#allocation2 + $0x20] sm:$0xf] %vm1533_vm2, %v1446_v15  ;;  %5617 = vrot.lane.b32.xlu1 %v6505_v21, %s7269_s6  ;;  %v6438_v21 = vcombine.low %v9123_v8, %v9123_v8  ;;  %v6502_v15 = vcombine.low %v8235_v47, %v8235_v47  ;;  %v6531_v8 = vcombine.high %v8437_v18, %v8437_v18 }
 0x3b7   :  { %2420 = vst.msk [vmem:[#allocation2 + $0x20] sm:$0xf] %vm2415_vm3, %v8475_v22  ;;  %4750 = vrot.lane.b32.xlu0 %v6448_v6, %s7268_s0  ;;  %v6307_v22 = vcombine.low %v9124_v62, %v9124_v62  ;;  %v6465_v47 = vcombine.high %v8145_v5, %v8145_v5 }
 0x3b8   :  { %v2370_v55 = vpop.permute.xlu1 %2369 }
 0x3b9   :  { %2441 = vst.msk [vmem:[#allocation2 + $0xc8] sm:$0xf] %vm2415_vm3, %v2370_v55  ;;  %v1450_v42 = vpop.permute.xlu0 %1449 }
 0x3ba   :  { %1540 = vst.msk [vmem:[#allocation2 + $0x30] sm:$0xf] %vm1533_vm2, %v1450_v42  ;;  %4732 = vrot.lane.b32.xlu1 %v6439_v57, %s7268_s0 }
 0x3bb   :  { %3138 = vrot.lane.b32.xlu0 %v6317_v63, %s7270_s7  ;;  %v6436_v63 = vcombine.low %v9125_v31, %v9125_v31 }
 0x3bc   :  { %v2374_v33 = vpop.permute.xlu1 %2373 }
 0x3bd   :  { %2443 = vst.msk [vmem:[#allocation2 + $0xd8] sm:$0xf] %vm2415_vm3, %v2374_v33  ;;  %v1454_v49 = vpop.permute.xlu0 %1453 }
 0x3be   :  { %1542 = vst.msk [vmem:[#allocation2 + $0x40] sm:$0xf] %vm1533_vm2, %v1454_v49  ;;  %3118 = vrot.lane.b32.xlu1 %v6307_v22, %s7270_s7  ;;  %v6500_v22 = vcombine.low %v8291_v51, %v8291_v51 }
 0x3bf   :  { %5631 = vrot.lane.b32.xlu0 %v6512_v14, %s7269_s6  ;;  %v9128_v14 = vld [vmem:[#allocation20_spill] sm:$0xff] }
 0x3c0   :  { %v2378_v43 = vpop.permute.xlu1 %2377  ;;  %v6333_v49 = vcombine.low %v9128_v14, %v9128_v14  ;;  %v6334_v51 = vcombine.high %v9128_v14, %v9128_v14 }
 0x3c1   :  { %2445 = vst.msk [vmem:[#allocation2 + $0xe8] sm:$0xf] %vm2415_vm3, %v2378_v43  ;;  %v1458_v56 = vpop.permute.xlu0 %1457  ;;  %v6466_v43 = vcombine.low %v8150_v9, %v8150_v9  ;;  %v6529_v9 = vcombine.high %v8424_v44, %v8424_v44 }
 0x3c2   :  { %1544 = vst.msk [vmem:[#allocation2 + $0x50] sm:$0xf] %vm1533_vm2, %v1458_v56  ;;  %3120 = vrot.lane.b32.xlu1 %v6308_v27, %s7270_s7 }
 0x3c3   :  { %4746 = vrot.lane.b32.xlu0 %v6446_v38, %s7268_s0 }
 0x3c4   :  { %v2382_v48 = vpop.permute.xlu1 %2381 }
 0x3c5   :  { %2447 = vst.msk [vmem:[#allocation2 + $0xf8] sm:$0xf] %vm2415_vm3, %v2382_v48  ;;  %v1462_v19 = vpop.permute.xlu0 %1461 }
 0x3c6   :  { %1546 = vst.msk [vmem:[#allocation2 + $0x60] sm:$0xf] %vm1533_vm2, %v1462_v19  ;;  %5613 = vrot.lane.b32.xlu1 %v6503_v16, %s7269_s6  ;;  %v6530_v16 = vcombine.low %v8437_v18, %v8437_v18  ;;  %v6464_v19 = vcombine.low %v8145_v5, %v8145_v5  ;;  %v9129_v18 = vld [vmem:[#allocation51_spill] sm:$0xff]  ;;  %v9130_v5 = vld [vmem:[#allocation38_spill] sm:$0xff] }
 0x3c7   :  { %3134 = vrot.lane.b32.xlu0 %v6315_v36, %s7270_s7  ;;  %v6331_v58 = vcombine.low %v9130_v5, %v9130_v5 }
 0x3c8   :  { %v4755_v1 = vpop.permute.xlu1 %4754 }
 0x3c9   :  { %4836 = vst.msk [vmem:[#allocation2 + $0x74] sm:$0xf] %vm1533_vm2, %v4755_v1  ;;  %v1466_v12 = vpop.permute.xlu0 %1465 }
 0x3ca   :  { %1548 = vst.msk [vmem:[#allocation2 + $0x70] sm:$0xf] %vm1533_vm2, %v1466_v12  ;;  %4728 = vrot.lane.b32.xlu1 %v6437_v53, %s7268_s0  ;;  %v6463_v53 = vcombine.high %v9129_v18, %v9129_v18 }
 0x3cb   :  { %5627 = vrot.lane.b32.xlu0 %v6510_v35, %s7269_s6  ;;  %v6528_v35 = vcombine.low %v8424_v44, %v8424_v44  ;;  %v6332_v44 = vcombine.high %v9130_v5, %v9130_v5 }
 0x3cc   :  { %v4757_v26 = vpop.permute.xlu1 %4756 }
 0x3cd   :  { %4837 = vst.msk [vmem:[#allocation2 + $0x7c] sm:$0xf] %vm1533_vm2, %v4757_v26  ;;  %v1470_v11 = vpop.permute.xlu0 %1469  ;;  %v6462_v26 = vcombine.low %v9129_v18, %v9129_v18 }
 0x3ce   :  { %1550 = vst.msk [vmem:[#allocation2 + $0x80] sm:$0xf] %vm1533_vm2, %v1470_v11  ;;  %3114 = vrot.lane.b32.xlu1 %v6305_v37, %s7270_s7 }
 0x3cf   :  { %4742 = vrot.lane.b32.xlu0 %v6444_v23, %s7268_s0 }
 0x3d0   :  { %v3145_v39 = vpop.permute.xlu1 %3144 }
 0x3d1   :  { %3226 = vst.msk [vmem:[#allocation2 + $0x78] sm:$0xf] %vm3210_vm4, %v3145_v39  ;;  %v1474_v10 = vpop.permute.xlu0 %1473 }
 0x3d2   :  { %1552 = vst.msk [vmem:[#allocation2 + $0x90] sm:$0xf] %vm1533_vm2, %v1474_v10  ;;  %3116 = vrot.lane.b32.xlu1 %v6306_v24, %s7270_s7  ;;  %v6526_v24 = vcombine.low %v8412_v32, %v8412_v32 }
 0x3d3   :  { %5623 = vrot.lane.b32.xlu0 %v6508_v59, %s7269_s6  ;;  %v6527_v59 = vcombine.high %v8412_v32, %v8412_v32  ;;  %v6524_v32 = vcombine.low %v8399_v30, %v8399_v30 }
 0x3d4   :  { %v5636_v0 = vpop.permute.xlu1 %5635 }
 0x3d5   :  { %5717 = vst.msk [vmem:[#allocation2 + $0x74] sm:$0xf] %vm2415_vm3, %v5636_v0  ;;  %v1478_v13 = vpop.permute.xlu0 %1477 }
 0x3d6   :  { %1554 = vst.msk [vmem:[#allocation2 + $0xa0] sm:$0xf] %vm1533_vm2, %v1478_v13  ;;  %5609 = vrot.lane.b32.xlu1 %v6501_v17, %s7269_s6  ;;  %v9131_v17 = vld [vmem:[#allocation50_spill] sm:$0xff] }
 0x3d7   :  { %3126 = vrot.lane.b32.xlu0 %v6311_v25, %s7270_s7  ;;  %v6460_v0 = vcombine.low %v9131_v17, %v9131_v17  ;;  %v6461_v13 = vcombine.high %v9131_v17, %v9131_v17 }
 0x3d8   :  { %v5638_v52 = vpop.permute.xlu1 %5637 }
 0x3d9   :  { %5718 = vst.msk [vmem:[#allocation2 + $0x7c] sm:$0xf] %vm2415_vm3, %v5638_v52  ;;  %v1482_v3 = vpop.permute.xlu0 %1481 }
 0x3da   :  { %1556 = vst.msk [vmem:[#allocation2 + $0xb0] sm:$0xf] %vm1533_vm2, %v1482_v3  ;;  %4788 = vrot.lane.b32.xlu1 %v6467_v46, %s7268_s0 }
 0x3db   :  { %3122 = vrot.lane.b32.xlu0 %v6309_v28, %s7270_s7  ;;  %v9132_v28 = vld [vmem:[#allocation16_spill] sm:$0xff] }
 0x3dc   :  { %v4753_v50 = vpop.permute.xlu1 %4752  ;;  %v6329_v3 = vcombine.low %v9132_v28, %v9132_v28 }
 0x3dd   :  { %4835 = vst.msk [vmem:[#allocation2 + $0x6c] sm:$0xf] %vm1533_vm2, %v4753_v50  ;;  %v1486_v29 = vpop.permute.xlu0 %1485 }
 0x3de   :  { %1558 = vst.msk [vmem:[#allocation2 + $0xc0] sm:$0xf] %vm1533_vm2, %v1486_v29  ;;  %3174 = vrot.lane.b32.xlu1 %v6335_v41, %s7270_s7  ;;  %v6456_v41 = vcombine.low %v8279_v61, %v8279_v61 }
 0x3df   :  { %4730 = vrot.lane.b32.xlu0 %v6438_v21, %s7268_s0  ;;  %v6330_v21 = vcombine.high %v9132_v28, %v9132_v28  ;;  %v6519_v28 = vcombine.high %v8366_v4, %v8366_v4 }
 0x3e0   :  { %v3141_v6 = vpop.permute.xlu1 %3140 }
 0x3e1   :  { %3224 = vst.msk [vmem:[#allocation2 + $0x68] sm:$0xf] %vm3210_vm4, %v3141_v6  ;;  %v1490_v57 = vpop.permute.xlu0 %1489 }
 0x3e2   :  { %1560 = vst.msk [vmem:[#allocation2 + $0xd0] sm:$0xf] %vm1533_vm2, %v1490_v57  ;;  %3176 = vrot.lane.b32.xlu1 %v6336_v60, %s7270_s7  ;;  %v6457_v60 = vcombine.high %v8279_v61, %v8279_v61  ;;  %v6458_v61 = vcombine.low %v8267_v34, %v8267_v34 }
 0x3e3   :  { %5611 = vrot.lane.b32.xlu0 %v6502_v15, %s7269_s6  ;;  %v6525_v15 = vcombine.high %v8399_v30, %v8399_v30 }
 0x3e4   :  { %v5634_v55 = vpop.permute.xlu1 %5633 }
 0x3e5   :  { %5716 = vst.msk [vmem:[#allocation2 + $0x6c] sm:$0xf] %vm2415_vm3, %v5634_v55  ;;  %v1494_v42 = vpop.permute.xlu0 %1493 }
 0x3e6   :  { %1562 = vst.msk [vmem:[#allocation2 + $0xe0] sm:$0xf] %vm1533_vm2, %v1494_v42  ;;  %5669 = vrot.lane.b32.xlu1 %v6531_v8, %s7269_s6  ;;  %v9133_v8 = vld [vmem:[#allocation9_spill] sm:$0xff] }
 0x3e7   :  { %4726 = vrot.lane.b32.xlu0 %v6436_v63, %s7268_s0  ;;  %v6325_v55 = vcombine.low %v9133_v8, %v9133_v8  ;;  %v6326_v30 = vcombine.high %v9133_v8, %v9133_v8 }
 0x3e8   :  { %v4749_v62 = vpop.permute.xlu1 %4748 }
 0x3e9   :  { %4833 = vst.msk [vmem:[#allocation2 + $0x5c] sm:$0xf] %vm1533_vm2, %v4749_v62  ;;  %v1498_v33 = vpop.permute.xlu0 %1497  ;;  %v6459_v62 = vcombine.high %v8267_v34, %v8267_v34  ;;  %v6521_v34 = vcombine.high %v8378_v20, %v8378_v20 }
 0x3ea   :  { %1564 = vst.msk [vmem:[#allocation2 + $0xf0] sm:$0xf] %vm1533_vm2, %v1498_v33  ;;  %4784 = vrot.lane.b32.xlu1 %v6465_v47, %s7268_s0  ;;  %v6520_v33 = vcombine.low %v8378_v20, %v8378_v20  ;;  %v6522_v20 = vcombine.low %v8389_v2, %v8389_v2 }
 0x3eb   :  { %5607 = vrot.lane.b32.xlu0 %v6500_v22, %s7269_s6 }
 0x3ec   :  { %v3137_v27 = vpop.permute.xlu1 %3136 }
 0x3ed   :  { %3222 = vst.msk [vmem:[#allocation2 + $0x58] sm:$0xf] %vm3210_vm4, %v3137_v27  ;;  %v2324_v38 = vpop.permute.xlu0 %2323 }
 0x3ee   :  { %2418 = vst.msk [vmem:[#allocation2 + $0x10] sm:$0xf] %vm2415_vm3, %v2324_v38  ;;  %3170 = vrot.lane.b32.xlu1 %v6333_v49, %s7270_s7  ;;  %v9134_v49 = vld [vmem:[#allocation34_spill] sm:$0xff] }
 0x3ef   :  { %4786 = vrot.lane.b32.xlu0 %v6466_v43, %s7268_s0  ;;  %v6327_v27 = vcombine.low %v9134_v49, %v9134_v49 }
 0x3f0   :  { %v5630_v56 = vpop.permute.xlu1 %5629 }
 0x3f1   :  { %5714 = vst.msk [vmem:[#allocation2 + $0x5c] sm:$0xf] %vm2415_vm3, %v5630_v56  ;;  %v2332_v48 = vpop.permute.xlu0 %2331 }
 0x3f2   :  { %2422 = vst.msk [vmem:[#allocation2 + $0x30] sm:$0xf] %vm2415_vm3, %v2332_v48  ;;  %3172 = vrot.lane.b32.xlu1 %v6334_v51, %s7270_s7  ;;  %v6328_v51 = vcombine.high %v9134_v49, %v9134_v49 }
 0x3f3   :  { %5667 = vrot.lane.b32.xlu0 %v6530_v16, %s7269_s6  ;;  %v6452_v16 = vcombine.low %v8451_v54, %v8451_v54 }
 0x3f4   :  { %v4745_v36 = vpop.permute.xlu1 %4744 }
 0x3f5   :  { %4831 = vst.msk [vmem:[#allocation2 + $0x4c] sm:$0xf] %vm1533_vm2, %v4745_v36  ;;  %v2336_v31 = vpop.permute.xlu0 %2335  ;;  %v6453_v36 = vcombine.high %v8451_v54, %v8451_v54 }
 0x3f6   :  { %2424 = vst.msk [vmem:[#allocation2 + $0x40] sm:$0xf] %vm2415_vm3, %v2336_v31  ;;  %5665 = vrot.lane.b32.xlu1 %v6529_v9, %s7269_s6  ;;  %v6523_v31 = vcombine.high %v8389_v2, %v8389_v2  ;;  %v6454_v2 = vcombine.low %v8301_v40, %v8301_v40 }
 0x3f7   :  { %4782 = vrot.lane.b32.xlu0 %v6464_v19, %s7268_s0 }
 0x3f8   :  { %v3131_v1 = vpop.permute.xlu1 %3130 }
 0x3f9   :  { %3219 = vst.msk [vmem:[#allocation2 + $0x40] sm:$0xf] %vm3210_vm4, %v3131_v1  ;;  %v2340_v12 = vpop.permute.xlu0 %2339 }
 0x3fa   :  { %2426 = vst.msk [vmem:[#allocation2 + $0x50] sm:$0xf] %vm2415_vm3, %v2340_v12  ;;  %4780 = vrot.lane.b32.xlu1 %v6463_v53, %s7268_s0  ;;  %v9135_v53 = vld [vmem:[#allocation6_spill] sm:$0xff] }
 0x3fb   :  { %5663 = vrot.lane.b32.xlu0 %v6528_v35, %s7269_s6  ;;  %v6321_v1 = vcombine.low %v9135_v53, %v9135_v53  ;;  %v7223_v35 = vld [vmem:[#allocation2 + $0x74] ss:$8 sps:$4 sm:$0xff]  }
 0x3fc   :  { %v3133_v37 = vpop.permute.xlu1 %3132  ;;  %6568 = vmatprep.subr.msk.bf16.mxu0 %vm5957_vm5, %v7223_v35 }
 0x3fd   :  { %3220 = vst.msk [vmem:[#allocation2 + $0x48] sm:$0xf] %vm3210_vm4, %v3133_v37  ;;  %v2344_v23 = vpop.permute.xlu0 %2343 }
 0x3fe   :  { %2428 = vst.msk [vmem:[#allocation2 + $0x60] sm:$0xf] %vm2415_vm3, %v2344_v23  ;;  %3166 = vrot.lane.b32.xlu1 %v6331_v58, %s7270_s7  ;;  %v6322_v58 = vcombine.high %v9135_v53, %v9135_v53 }
 0x3ff   :  { %4778 = vrot.lane.b32.xlu0 %v6462_v26, %s7268_s0  ;;  %v6455_v26 = vcombine.high %v8301_v40, %v8301_v40  ;;  %v6517_v40 = vcombine.high %v8463_v45, %v8463_v45 }
 0x400   :  { %v5626_v11 = vpop.permute.xlu1 %5625 }
 0x401   :  { %5712 = vst.msk [vmem:[#allocation2 + $0x4c] sm:$0xf] %vm2415_vm3, %v5626_v11  ;;  %v2348_v39 = vpop.permute.xlu0 %2347 }
 0x402   :  { %2430 = vst.msk [vmem:[#allocation2 + $0x70] sm:$0xf] %vm2415_vm3, %v2348_v39  ;;  %3168 = vrot.lane.b32.xlu1 %v6332_v44, %s7270_s7  ;;  %v6516_v44 = vcombine.low %v8463_v45, %v8463_v45 }
 0x403   :  { %5659 = vrot.lane.b32.xlu0 %v6526_v24, %s7269_s6  ;;  %v9136_v24 = vld [vmem:[#allocation29_spill] sm:$0xff] }
 0x404   :  { %v4739_v10 = vpop.permute.xlu1 %4738  ;;  %v6323_v39 = vcombine.low %v9136_v24, %v9136_v24 }
 0x405   :  { %4828 = vst.msk [vmem:[#allocation2 + $0x34] sm:$0xf] %vm1533_vm2, %v4739_v10  ;;  %v2352_v25 = vpop.permute.xlu0 %2351 }
 0x406   :  { %2432 = vst.msk [vmem:[#allocation2 + $0x80] sm:$0xf] %vm2415_vm3, %v2352_v25  ;;  %5661 = vrot.lane.b32.xlu1 %v6527_v59, %s7269_s6  ;;  %v6324_v25 = vcombine.high %v9136_v24, %v9136_v24  ;;  %v9147_v24 = vld [vmem:[#allocation28_spill] sm:$0xff] }
 0x407   :  { %4774 = vrot.lane.b32.xlu0 %v6460_v0, %s7268_s0 }
 0x408   :  { %v4741_v46 = vpop.permute.xlu1 %4740 }
 0x409   :  { %4829 = vst.msk [vmem:[#allocation2 + $0x3c] sm:$0xf] %vm1533_vm2, %v4741_v46  ;;  %v2356_v52 = vpop.permute.xlu0 %2355  ;;  %v6518_v46 = vcombine.low %v8366_v4, %v8366_v4 }
 0x40a   :  { %2434 = vst.msk [vmem:[#allocation2 + $0x90] sm:$0xf] %vm2415_vm3, %v2356_v52  ;;  %4776 = vrot.lane.b32.xlu1 %v6461_v13, %s7268_s0 }
 0x40b   :  { %5655 = vrot.lane.b32.xlu0 %v6524_v32, %s7269_s6 }
 0x40c   :  { %v3129_v7 = vpop.permute.xlu1 %3128 }
 0x40d   :  { %3218 = vst.msk [vmem:[#allocation2 + $0x38] sm:$0xf] %vm3210_vm4, %v3129_v7  ;;  %v2360_v50 = vpop.permute.xlu0 %2359 }
 0x40e   :  { %2436 = vst.msk [vmem:[#allocation2 + $0xa0] sm:$0xf] %vm2415_vm3, %v2360_v50  ;;  %3162 = vrot.lane.b32.xlu1 %v6329_v3, %s7270_s7 }
 0x40f   :  { %4766 = vrot.lane.b32.xlu0 %v6456_v41, %s7268_s0 }
 0x410   :  { %v5620_v29 = vpop.permute.xlu1 %5619 }
 0x411   :  { %5709 = vst.msk [vmem:[#allocation2 + $0x34] sm:$0xf] %vm2415_vm3, %v5620_v29  ;;  %v2364_v6 = vpop.permute.xlu0 %2363 }
 0x412   :  { %2438 = vst.msk [vmem:[#allocation2 + $0xb0] sm:$0xf] %vm2415_vm3, %v2364_v6  ;;  %3164 = vrot.lane.b32.xlu1 %v6330_v21, %s7270_s7 }
 0x413   :  { %4768 = vrot.lane.b32.xlu0 %v6457_v60, %s7268_s0 }
 0x414   :  { %v5622_v57 = vpop.permute.xlu1 %5621 }
 0x415   :  { %5710 = vst.msk [vmem:[#allocation2 + $0x3c] sm:$0xf] %vm2415_vm3, %v5622_v57  ;;  %v2368_v63 = vpop.permute.xlu0 %2367 }
 0x416   :  { %2440 = vst.msk [vmem:[#allocation2 + $0xc0] sm:$0xf] %vm2415_vm3, %v2368_v63  ;;  %5657 = vrot.lane.b32.xlu1 %v6525_v15, %s7269_s6  ;;  %v7234_v15 = vld [vmem:[#allocation2 + $0x40] ss:$8 sps:$4 sm:$0xff]  }
 0x417   :  { %3154 = vrot.lane.b32.xlu0 %v6325_v55, %s7270_s7 }
 0x418   :  { %v4735_v42 = vpop.permute.xlu1 %4734 }
 0x419   :  { %4826 = vst.msk [vmem:[#allocation2 + $0x24] sm:$0xf] %vm1533_vm2, %v4735_v42  ;;  %v2372_v47 = vpop.permute.xlu0 %2371 }
 0x41a   :  { %2442 = vst.msk [vmem:[#allocation2 + $0xd0] sm:$0xf] %vm2415_vm3, %v2372_v47  ;;  %4770 = vrot.lane.b32.xlu1 %v6458_v61, %s7268_s0 }
 0x41b   :  { %3156 = vrot.lane.b32.xlu0 %v6326_v30, %s7270_s7 }
 0x41c   :  { %v4737_v22 = vpop.permute.xlu1 %4736  ;;  %v7235_v55 = vld [vmem:[#allocation2 + $0x34] ss:$8 sps:$4 sm:$0xff]  }
 0x41d   :  { %4827 = vst.msk [vmem:[#allocation2 + $0x2c] sm:$0xf] %vm1533_vm2, %v4737_v22  ;;  %v2376_v14 = vpop.permute.xlu0 %2375  ;;  %v5746_v42 = vld [vmem:[#allocation2 + $0x38] sm:$0xff] }
 0x41e   :  { %2444 = vst.msk [vmem:[#allocation2 + $0xe0] sm:$0xf] %vm2415_vm3, %v2376_v14  ;;  %4772 = vrot.lane.b32.xlu1 %v6459_v62, %s7268_s0  ;;  %v9138_v14 = vld [vmem:[#allocation23_spill] sm:$0xff] }
 0x41f   :  { %5647 = vrot.lane.b32.xlu0 %v6520_v33, %s7269_s6  ;;  %v9137_v33 = vld [vmem:[#allocation26_spill] sm:$0xff] }
 0x420   :  { %v3125_v43 = vpop.permute.xlu1 %3124  ;;  %v9139_v49 = vpack.c.bf16 %v9137_v33, %v9138_v14 }
 0x421   :  { %3216 = vst.msk [vmem:[#allocation2 + $0x28] sm:$0xf] %vm3210_vm4, %v3125_v43  ;;  %v2380_v38 = vpop.permute.xlu0 %2379 }
 0x422   :  { %2446 = vst.msk [vmem:[#allocation2 + $0xf0] sm:$0xf] %vm2415_vm3, %v2380_v38  ;;  %3158 = vrot.lane.b32.xlu1 %v6327_v27, %s7270_s7 }
 0x423   :  { %5649 = vrot.lane.b32.xlu0 %v6521_v34, %s7269_s6 }
 0x424   :  { %v5616_v56 = vpop.permute.xlu1 %5615 }
 0x425   :  { %5707 = vst.msk [vmem:[#allocation2 + $0x24] sm:$0xf] %vm2415_vm3, %v5616_v56  ;;  %v3143_v48 = vpop.permute.xlu0 %3142  ;;  %v9141_v56 = vld [vmem:[#allocation21_spill] sm:$0xff] }
 0x426   :  { %3225 = vst.msk [vmem:[#allocation2 + $0x70] sm:$0xf] %vm3210_vm4, %v3143_v48  ;;  %3160 = vrot.lane.b32.xlu1 %v6328_v51, %s7270_s7  ;;  %v9140_v51 = vld [vmem:[#allocation24_spill] sm:$0xff] }
 0x427   :  { %4758 = vrot.lane.b32.xlu0 %v6452_v16, %s7268_s0  ;;  %v9142_v16 = vpack.c.bf16 %v9140_v51, %v9141_v56 }
 0x428   :  { %v5618_v9 = vpop.permute.xlu1 %5617 }
 0x429   :  { %5708 = vst.msk [vmem:[#allocation2 + $0x2c] sm:$0xf] %vm2415_vm3, %v5618_v9  ;;  %v4751_v19 = vpop.permute.xlu0 %4750 }
 0x42a   :  { %4834 = vst.msk [vmem:[#allocation2 + $0x64] sm:$0xf] %vm1533_vm2, %v4751_v19  ;;  %5651 = vrot.lane.b32.xlu1 %v6522_v20, %s7269_s6 }
 0x42b   :  { %4760 = vrot.lane.b32.xlu0 %v6453_v36, %s7268_s0 }
 0x42c   :  { %v4733_v18 = vpop.permute.xlu1 %4732 }
 0x42d   :  { %4825 = vst.msk [vmem:[#allocation2 + $0x1c] sm:$0xf] %vm1533_vm2, %v4733_v18  ;;  %v3139_v54 = vpop.permute.xlu0 %3138  ;;  %v7225_v12 = vld [vmem:[#allocation2 + $0x70] ss:$8 sps:$4 sm:$0xff]  }
 0x42e   :  { %3223 = vst.msk [vmem:[#allocation2 + $0x60] sm:$0xf] %vm3210_vm4, %v3139_v54  ;;  %5653 = vrot.lane.b32.xlu1 %v6523_v31, %s7269_s6  ;;  %6013 = vmatpush1.bf16.xpose.msra.mxu0 %v7225_v12 }
 0x42f   :  { %3146 = vrot.lane.b32.xlu0 %v6321_v1, %s7270_s7 }
 0x430   :  { %v3119_v5 = vpop.permute.xlu1 %3118  ;;  %v7237_v62 = vld [vmem:[#allocation2 + $0x24] ss:$8 sps:$4 sm:$0xff]  }
 0x431   :  { %3213 = vst.msk [vmem:[#allocation2 + $0x10] sm:$0xf] %vm3210_vm4, %v3119_v5  ;;  %v5632_v37 = vpop.permute.xlu0 %5631  ;;  %v5744_v38 = vld [vmem:[#allocation2 + $0x28] sm:$0xff]  ;;  %v9144_v5 = vld [vmem:[#allocation30_spill] sm:$0xff] }
 0x432   :  { %5715 = vst.msk [vmem:[#allocation2 + $0x64] sm:$0xf] %vm2415_vm3, %v5632_v37  ;;  %4762 = vrot.lane.b32.xlu1 %v6454_v2, %s7268_s0  ;;  %v9143_v2 = vld [vmem:[#allocation32_spill] sm:$0xff] }
 0x433   :  { %3148 = vrot.lane.b32.xlu0 %v6322_v58, %s7270_s7  ;;  %v9145_v58 = vpack.c.bf16 %v9143_v2, %v9144_v5 }
 0x434   :  { %v3121_v23 = vpop.permute.xlu1 %3120 }
 0x435   :  { %3214 = vst.msk [vmem:[#allocation2 + $0x18] sm:$0xf] %vm3210_vm4, %v3121_v23  ;;  %v4747_v11 = vpop.permute.xlu0 %4746  ;;  %v7228_v0 = vld [vmem:[#allocation2 + $0x60] ss:$8 sps:$4 sm:$0xff]  }
 0x436   :  { %4832 = vst.msk [vmem:[#allocation2 + $0x54] sm:$0xf] %vm1533_vm2, %v4747_v11  ;;  %4764 = vrot.lane.b32.xlu1 %v6455_v26, %s7268_s0  ;;  %v9146_v11 = vld [vmem:[#allocation31_spill] sm:$0xff] }
 0x437   :  { %5639 = vrot.lane.b32.xlu0 %v6516_v44, %s7269_s6 }
 0x438   :  { %v5614_v59 = vpop.permute.xlu1 %5613 }
 0x439   :  { %5706 = vst.msk [vmem:[#allocation2 + $0x1c] sm:$0xf] %vm2415_vm3, %v5614_v59  ;;  %v3135_v10 = vpop.permute.xlu0 %3134  ;;  %v7226_v17 = vld [vmem:[#allocation2 + $0x64] ss:$8 sps:$4 sm:$0xff]  }
 0x43a   :  { %3221 = vst.msk [vmem:[#allocation2 + $0x50] sm:$0xf] %vm3210_vm4, %v3135_v10  ;;  %3150 = vrot.lane.b32.xlu1 %v6323_v39, %s7270_s7  ;;  %6569 = vmatprep.subr.msk.bf16.mxu0 %vm5957_vm5, %v7226_v17  ;;  %v9148_v39 = vpack.c.bf16 %v9146_v11, %v9147_v24 }
 0x43b   :  { %5641 = vrot.lane.b32.xlu0 %v6517_v40, %s7269_s6  ;;  %6015 = vmatpush1.bf16.xpose.msra.mxu0 %v7228_v0  ;;  %v9149_v0 = vld [vmem:[#allocation19_spill] sm:$0xff] }
 0x43c   :  { %v4729_v13 = vpop.permute.xlu1 %4728 }
 0x43d   :  { %4823 = vst.msk [vmem:[#allocation2 + $0xc] sm:$0xf] %vm1533_vm2, %v4729_v13  ;;  %v5628_v45 = vpop.permute.xlu0 %5627 }
 0x43e   :  { %5713 = vst.msk [vmem:[#allocation2 + $0x54] sm:$0xf] %vm2415_vm3, %v5628_v45  ;;  %3152 = vrot.lane.b32.xlu1 %v6324_v25, %s7270_s7  ;;  %v9150_v25 = vld [vmem:[#allocation15_spill] sm:$0xff] }
 0x43f   :  { %v9151_v13 = vpack.c.bf16 %v9149_v0, %v9150_v25 }
 0x440   :  { %v3115_v32 = vpop.permute.xlu1 %3114  ;;  %v5742_v53 = vld [vmem:[#allocation2 + $0x18] sm:$0xff] }
 0x441   :  { %3211 = vst.msk [vmem:[#allocation2] sm:$0xf] %vm3210_vm4, %v3115_v32  ;;  %v4743_v52 = vpop.permute.xlu0 %4742  ;;  %v7231_v50 = vld [vmem:[#allocation2 + $0x50] ss:$8 sps:$4 sm:$0xff]  }
 0x442   :  { %4830 = vst.msk [vmem:[#allocation2 + $0x44] sm:$0xf] %vm1533_vm2, %v4743_v52  ;;  %5643 = vrot.lane.b32.xlu1 %v6518_v46, %s7269_s6  ;;  %v7264_v52 = vld [vmem:[%s8995_s2 + $0x4] ss:$8 sps:$4 sm:$0xff]  }
 0x443   :  { %6584 = vmatprep.mubr.msk.bf16.mxu0 %vm5957_vm5, %v7264_v52 }
 0x444   :  { %v3117_v3 = vpop.permute.xlu1 %3116 }
 0x445   :  { %3212 = vst.msk [vmem:[#allocation2 + $0x8] sm:$0xf] %vm3210_vm4, %v3117_v3  ;;  %v5624_v7 = vpop.permute.xlu0 %5623  ;;  %v7229_v41 = vld [vmem:[#allocation2 + $0x54] ss:$8 sps:$4 sm:$0xff]  }
 0x446   :  { %5711 = vst.msk [vmem:[#allocation2 + $0x44] sm:$0xf] %vm2415_vm3, %v5624_v7  ;;  %5645 = vrot.lane.b32.xlu1 %v6519_v28, %s7269_s6  ;;  %6570 = vmatprep.subr.msk.bf16.mxu0 %vm5957_vm5, %v7229_v41  ;;  %v9152_v3 = vld [vmem:[#allocation17_spill] sm:$0xff] }
 0x447   :  { %6017 = vmatpush1.bf16.xpose.msra.mxu0 %v7231_v50  ;;  %v9153_v7 = vld [vmem:[#allocation13_spill] sm:$0xff] }
 0x448   :  { %v5610_v21 = vpop.permute.xlu1 %5609  ;;  %v9154_v41 = vpack.c.bf16 %v9152_v3, %v9153_v7 }
 0x449   :  { %5704 = vst.msk [vmem:[#allocation2 + $0xc] sm:$0xf] %vm2415_vm3, %v5610_v21  ;;  %v3127_v29 = vpop.permute.xlu0 %3126 }
 0x44a   :  { %3217 = vst.msk [vmem:[#allocation2 + $0x30] sm:$0xf] %vm3210_vm4, %v3127_v29 }
 0x44c   :  { %v4789_v4 = vpop.permute.xlu1 %4788 }
 0x44d   :  { %4853 = vst.msk [vmem:[#allocation2 + $0xfc] sm:$0xf] %vm1533_vm2, %v4789_v4  ;;  %v3123_v60 = vpop.permute.xlu0 %3122  ;;  %v7232_v6 = vld [vmem:[#allocation2 + $0x44] ss:$8 sps:$4 sm:$0xff]  }
 0x44e   :  { %3215 = vst.msk [vmem:[#allocation2 + $0x20] sm:$0xf] %vm3210_vm4, %v3123_v60  ;;  %6571 = vmatprep.subr.msk.bf16.mxu0 %vm5957_vm5, %v7232_v6  ;;  %v9155_v60 = vld [vmem:[#allocation12_spill] sm:$0xff] }
 0x44f   :  { %6019 = vmatpush1.bf16.xpose.msra.mxu0 %v7234_v15  ;;  %v9156_v6 = vld [vmem:[#allocation8_spill] sm:$0xff] }
 0x450   :  { %v3175_v57 = vpop.permute.xlu1 %3174  ;;  %6572 = vmatprep.subr.msk.bf16.mxu0 %vm5957_vm5, %v7235_v55  ;;  %v5740_v44 = vld [vmem:[#allocation2 + $0x8] sm:$0xff]  ;;  %v9157_v15 = vpack.c.bf16 %v9155_v60, %v9156_v6 }
 0x451   :  { %3241 = vst.msk [vmem:[#allocation2 + $0xf0] sm:$0xf] %vm3210_vm4, %v3175_v57  ;;  %v4731_v8 = vpop.permute.xlu0 %4730  ;;  %v5745_v63 = vld [vmem:[#allocation2 + $0x30] sm:$0xff] }
 0x452   :  { %4824 = vst.msk [vmem:[#allocation2 + $0x14] sm:$0xf] %vm1533_vm2, %v4731_v8  ;;  %v6542_v47 = vcombine.low %v5745_v63, %v5746_v42  ;;  %v9159_v42 = vld [vmem:[#allocation7_spill] sm:$0xff] }
 0x454   :  { %v3177_v61 = vpop.permute.xlu1 %3176 }
 0x455   :  { %3242 = vst.msk [vmem:[#allocation2 + $0xf8] sm:$0xf] %vm3210_vm4, %v3177_v61  ;;  %v5612_v30 = vpop.permute.xlu0 %5611  ;;  %v5743_v43 = vld [vmem:[#allocation2 + $0x20] sm:$0xff]  ;;  %v9158_v61 = vld [vmem:[#allocation10_spill] sm:$0xff] }
 0x456   :  { %5705 = vst.msk [vmem:[#allocation2 + $0x14] sm:$0xf] %vm2415_vm3, %v5612_v30  ;;  %v6540_v20 = vcombine.low %v5743_v43, %v5744_v38  ;;  %v9160_v30 = vpack.c.bf16 %v9158_v61, %v9159_v42  ;;  %v5772_v38 = vld [vmem:[%s8996_s3 + $0x8] sm:$0xff] }
 0x457   :  { %6021 = vmatpush1.bf16.xpose.msra.mxu0 %v6542_v47 }
 0x458   :  { %v5670_v22 = vpop.permute.xlu1 %5669  ;;  %6573 = vmatprep.subr.msk.bf16.mxu0 %vm5957_vm5, %v7237_v62 }
 0x459   :  { %5734 = vst.msk [vmem:[#allocation2 + $0xfc] sm:$0xf] %vm2415_vm3, %v5670_v22  ;;  %3820 = vxpose.xlu0.c.b16.start [1/2] (short) (narrow) %v9139_v49, 16  ;;  %v4727_v27 = vpop.permute.xlu0 %4726  ;;  %v7271_v49 = vmov 0  }
 0x45a   :  { %4822 = vst.msk [vmem:[#allocation2 + $0x4] sm:$0xf] %vm1533_vm2, %v4727_v27  ;;  %v5771_v27 = vld [vmem:[%s8996_s3] sm:$0xff] }
 0x45c   :  { %v4785_v34 = vpop.permute.xlu1 %4784 }
 0x45d   :  { %4851 = vst.msk [vmem:[#allocation2 + $0xec] sm:$0xf] %vm1533_vm2, %v4785_v34  ;;  %3821 = vxpose.xlu0.c.b16.end [2/2] (short) (narrow) %v9142_v16, 16  ;;  %v5608_v48 = vpop.permute.xlu0 %5607  ;;  %v7239_v9 = vld [vmem:[#allocation2 + $0x14] ss:$8 sps:$4 sm:$0xff]  }
 0x45e   :  { %5703 = vst.msk [vmem:[#allocation2 + $0x4] sm:$0xf] %vm2415_vm3, %v5608_v48  ;;  %v5741_v31 = vld [vmem:[#allocation2 + $0x10] sm:$0xff] }
 0x45f   :  { %6023 = vmatpush1.bf16.xpose.msra.mxu0 %v6540_v20  ;;  %v6538_v54 = vcombine.low %v5741_v31, %v5742_v53  ;;  %v5773_v20 = vld [vmem:[%s8996_s3 + $0x10] sm:$0xff] }
 0x460   :  { %v3171_v36 = vpop.permute.xlu1 %3170  ;;  %6574 = vmatprep.subr.msk.bf16.mxu0 %vm5957_vm5, %v7239_v9  ;;  %v5770_v28 = vld [vmem:[#allocation2 + $0xf8] sm:$0xff] }
 0x461   :  { %3239 = vst.msk [vmem:[#allocation2 + $0xe0] sm:$0xf] %vm3210_vm4, %v3171_v36  ;;  %v4787_v19 = vpop.permute.xlu0 %4786 }
 0x462   :  { %4852 = vst.msk [vmem:[#allocation2 + $0xf4] sm:$0xf] %vm1533_vm2, %v4787_v19  ;;  %v5774_v19 = vld [vmem:[%s8996_s3 + $0x18] sm:$0xff] }
 0x464   :  { %v3173_v18 = vpop.permute.xlu1 %3172 }
 0x465   :  { %3240 = vst.msk [vmem:[#allocation2 + $0xe8] sm:$0xf] %vm3210_vm4, %v3173_v18  ;;  %v5668_v1 = vpop.permute.xlu0 %5667  ;;  %v7241_v35 = vld [vmem:[#allocation2 + $0x4] ss:$8 sps:$4 sm:$0xff]  }
 0x466   :  { %5733 = vst.msk [vmem:[#allocation2 + $0xf4] sm:$0xf] %vm2415_vm3, %v5668_v1  ;;  %v5739_v26 = vld [vmem:[#allocation2] sm:$0xff]  ;;  %7187 = vset.pattern.permute.xlu0 %v7271_v49 }
 0x467   :  { %6025 = vmatpush1.bf16.xpose.msra.mxu0 %v6538_v54  ;;  %v6536_v40 = vcombine.low %v5739_v26, %v5740_v44 }
 0x468   :  { %v5666_v12 = vpop.permute.xlu1 %5665  ;;  %6575 = vmatprep.subr.msk.bf16.mxu0 %vm5957_vm5, %v7241_v35 }
 0x469   :  { %5732 = vst.msk [vmem:[#allocation2 + $0xec] sm:$0xf] %vm2415_vm3, %v5666_v12  ;;  %3836 = vxpose.xlu1.c.b16.start [1/2] (short) (narrow) %v9145_v58, 16  ;;  %v4783_v37 = vpop.permute.xlu0 %4782 }
 0x46a   :  { %4850 = vst.msk [vmem:[#allocation2 + $0xe4] sm:$0xf] %vm1533_vm2, %v4783_v37 }
 0x46c   :  { %v4781_v23 = vpop.permute.xlu1 %4780 }
 0x46d   :  { %4849 = vst.msk [vmem:[#allocation2 + $0xdc] sm:$0xf] %vm1533_vm2, %v4781_v23  ;;  %3837 = vxpose.xlu1.c.b16.end [2/2] (short) (narrow) %v9148_v39, 16  ;;  %v5664_v59 = vpop.permute.xlu0 %5663  ;;  %v7243_v10 = vld [vmem:[#allocation2 + $0xf4] ss:$8 sps:$4 sm:$0xff]  }
 0x46e   :  { %5731 = vst.msk [vmem:[#allocation2 + $0xe4] sm:$0xf] %vm2415_vm3, %v5664_v59  ;;  %v5769_v46 = vld [vmem:[#allocation2 + $0xf0] sm:$0xff] }
 0x46f   :  { %6027 = vmatpush1.bf16.xpose.msra.mxu0 %v6536_v40  ;;  %v6566_v21 = vcombine.low %v5769_v46, %v5770_v28 }
 0x470   :  { %v3167_v17 = vpop.permute.xlu1 %3166  ;;  %6576 = vmatprep.subr.msk.bf16.mxu0 %vm5957_vm5, %v7243_v10  ;;  %v5768_v63 = vld [vmem:[#allocation2 + $0xe8] sm:$0xff] }
 0x471   :  { %3237 = vst.msk [vmem:[#allocation2 + $0xd0] sm:$0xf] %vm3210_vm4, %v3167_v17  ;;  %3804 = vxpose.xlu1.c.b16.start [1/2] (short) (narrow) %v9151_v13, 16  ;;  %v4779_v45 = vpop.permute.xlu0 %4778 }
 0x472   :  { %4848 = vst.msk [vmem:[#allocation2 + $0xd4] sm:$0xf] %vm1533_vm2, %v4779_v45 }
 0x474   :  { %v3169_v32 = vpop.permute.xlu1 %3168 }
 0x475   :  { %3238 = vst.msk [vmem:[#allocation2 + $0xd8] sm:$0xf] %vm3210_vm4, %v3169_v32  ;;  %3805 = vxpose.xlu1.c.b16.end [2/2] (short) (narrow) %v9154_v41, 16  ;;  %v5660_v50 = vpop.permute.xlu0 %5659  ;;  %v7245_v29 = vld [vmem:[#allocation2 + $0xe4] ss:$8 sps:$4 sm:$0xff]  }
 0x476   :  { %5729 = vst.msk [vmem:[#allocation2 + $0xd4] sm:$0xf] %vm2415_vm3, %v5660_v50  ;;  %v5767_v8 = vld [vmem:[#allocation2 + $0xe0] sm:$0xff] }
 0x477   :  { %6029 = vmatpush2.bf16.xpose.msra.mxu0 %v6566_v21  ;;  %v6564_v62 = vcombine.low %v5767_v8, %v5768_v63 }
 0x478   :  { %v5662_v4 = vpop.permute.xlu1 %5661  ;;  %6577 = vmatprep.subr.msk.bf16.mxu0 %vm5957_vm5, %v7245_v29 }
 0x479   :  { %5730 = vst.msk [vmem:[#allocation2 + $0xdc] sm:$0xf] %vm2415_vm3, %v5662_v4  ;;  %3788 = vxpose.xlu1.c.b16.start [1/2] (short) (narrow) %v9157_v15, 16  ;;  %v4775_v57 = vpop.permute.xlu0 %4774 }
 0x47a   :  { %4846 = vst.msk [vmem:[#allocation2 + $0xc4] sm:$0xf] %vm1533_vm2, %v4775_v57 }
 0x47c   :  { %v4777_v55 = vpop.permute.xlu1 %4776 }
 0x47d   :  { %4847 = vst.msk [vmem:[#allocation2 + $0xcc] sm:$0xf] %vm1533_vm2, %v4777_v55  ;;  %3789 = vxpose.xlu1.c.b16.end [2/2] (short) (narrow) %v9160_v30, 16  ;;  %v5656_v47 = vpop.permute.xlu0 %5655  ;;  %v5765_v51 = vld [vmem:[#allocation2 + $0xd0] sm:$0xff] }
 0x47e   :  { %5727 = vst.msk [vmem:[#allocation2 + $0xc4] sm:$0xf] %vm2415_vm3, %v5656_v47  ;;  %v7262_v47 = vld [vmem:[%s8995_s2] ss:$8 sps:$4 sm:$0xff]  }
 0x47f   :  { %6031 = vmatpush2.bf16.xpose.msra.mxu0 %v6564_v62  ;;  %v7265_v62 = vld [vmem:[%s8995_s2 + $0x14] ss:$8 sps:$4 sm:$0xff]  }
 0x480   :  { %v3163_v22 = vpop.permute.xlu1 %3162  ;;  %v7247_v33 = vld [vmem:[#allocation2 + $0xd4] ss:$8 sps:$4 sm:$0xff]  }
 0x481   :  { %3235 = vst.msk [vmem:[#allocation2 + $0xc0] sm:$0xf] %vm3210_vm4, %v3163_v22  ;;  %v4767_v14 = vpop.permute.xlu0 %4766  ;;  %6578 = vmatprep.subr.msk.bf16.mxu0 %vm5957_vm5, %v7247_v33  ;;  %7186 = vset.pattern.permute.xlu1 %v7271_v49  ;;  %v5766_v43 = vld [vmem:[#allocation2 + $0xd8] sm:$0xff] }
 0x482   :  { %5777 = vperm.xlu1 %7186, %v5771_v27   ;;  %v6562_v16 = vcombine.low %v5765_v51, %v5766_v43  ;;  %v7267_v22 = vld [vmem:[%s8995_s2 + $0x10] ss:$8 sps:$4 sm:$0xff]  }
 0x484   :  { %v3165_v34 = vpop.permute.xlu1 %3164 }
 0x485   :  { %3236 = vst.msk [vmem:[#allocation2 + $0xc8] sm:$0xf] %vm3210_vm4, %v3165_v34  ;;  %v4769_v56 = vpop.permute.xlu0 %4768 }
 0x486   :  { %5782 = vperm.xlu1 %7186, %v5772_v38  }
 0x487   :  { %6033 = vmatpush2.bf16.xpose.msra.mxu0 %v6562_v16 }
 0x488   :  { %v5658_v48 = vpop.permute.xlu1 %5657  ;;  %v5763_v53 = vld [vmem:[#allocation2 + $0xc0] sm:$0xff] }
 0x489   :  { %5728 = vst.msk [vmem:[#allocation2 + $0xcc] sm:$0xf] %vm2415_vm3, %v5658_v48  ;;  %v3155_v9 = vpop.permute.xlu0 %3154 }
 0x48a   :  { %3231 = vst.msk [vmem:[#allocation2 + $0xa0] sm:$0xf] %vm3210_vm4, %v3155_v9  ;;  %5787 = vperm.xlu1 %7186, %v5773_v20  }
 0x48c   :  { %v4771_v36 = vpop.permute.xlu1 %4770 }
 0x48d   :  { %v3157_v31 = vpop.permute.xlu0 %3156 }
 0x48e   :  { %3232 = vst.msk [vmem:[#allocation2 + $0xa8] sm:$0xf] %vm3210_vm4, %v3157_v31  ;;  %5792 = vperm.xlu1 %7186, %v5774_v19  }
 0x490   :  { %v4773_v18 = vpop.permute.xlu1 %4772  ;;  %v5764_v1 = vld [vmem:[#allocation2 + $0xc8] sm:$0xff] }
 0x491   :  { %v7249_v54 = vld [vmem:[#allocation2 + $0xc4] ss:$8 sps:$4 sm:$0xff]   ;;  %v5648_v35 = vpop.permute.xlu0 %5647  ;;  %v6560_v12 = vcombine.low %v5763_v53, %v5764_v1 }
 0x492   :  { %6579 = vmatprep.subr.msk.bf16.mxu0 %vm5957_vm5, %v7249_v54 }
 0x493   :  { %6035 = vmatpush2.bf16.xpose.msra.mxu0 %v6560_v12 }
 0x494   :  { %v3159_v2 = vpop.permute.xlu1 %3158 }
 0x495   :  { %3233 = vst.msk [vmem:[#allocation2 + $0xb0] sm:$0xf] %vm3210_vm4, %v3159_v2  ;;  %v5650_v5 = vpop.permute.xlu0 %5649  ;;  %v7255_v55 = vld [vmem:[#allocation2 + $0xa0] ss:$8 sps:$4 sm:$0xff]  }
 0x498   :  { %v3161_v58 = vpop.permute.xlu1 %3160 }
 0x499   :  { %3234 = vst.msk [vmem:[#allocation2 + $0xb8] sm:$0xf] %vm3210_vm4, %v3161_v58  ;;  %v4759_v37 = vpop.permute.xlu0 %4758 }
 0x49c   :  { %v5652_v26 = vpop.permute.xlu1 %5651 }
 0x49d   :  { %v4761_v23 = vpop.permute.xlu0 %4760 }
 0x4a0   :  { %v5654_v44 = vpop.permute.xlu1 %5653 }
 0x4a1   :  { %v3147_v11 = vpop.permute.xlu0 %3146 }
 0x4a2   :  { %3227 = vst.msk [vmem:[#allocation2 + $0x80] sm:$0xf] %vm3210_vm4, %v3147_v11 }
 0x4a4   :  { %v4763_v24 = vpop.permute.xlu1 %4762 }
 0x4a5   :  { %v3149_v39 = vpop.permute.xlu0 %3148 }
 0x4a6   :  { %3228 = vst.msk [vmem:[#allocation2 + $0x88] sm:$0xf] %vm3210_vm4, %v3149_v39 }
 0x4a8   :  { %v4765_v59 = vpop.permute.xlu1 %4764 }
 0x4a9   :  { %v5640_v17 = vpop.permute.xlu0 %5639 }
 0x4ac   :  { %v3151_v40 = vpop.permute.xlu1 %3150 }
 0x4ad   :  { %3229 = vst.msk [vmem:[#allocation2 + $0x90] sm:$0xf] %vm3210_vm4, %v3151_v40  ;;  %v5642_v0 = vpop.permute.xlu0 %5641  ;;  %v7261_v30 = vld [vmem:[#allocation2 + $0x80] ss:$8 sps:$4 sm:$0xff]  }
 0x4b0   :  { %v3153_v10 = vpop.permute.xlu1 %3152 }
 0x4b1   :  { %3230 = vst.msk [vmem:[#allocation2 + $0x98] sm:$0xf] %vm3210_vm4, %v3153_v10 }
 0x4b4   :  { %v5644_v46 = vpop.permute.xlu1 %5643 }
 0x4b8   :  { %v5646_v32 = vpop.permute.xlu1 %5645  ;;  %v7258_v61 = vld [vmem:[#allocation2 + $0x90] ss:$8 sps:$4 sm:$0xff]  }
 0x4bb   :  { %v3828_v25 = vpop.trf.xlu0 }
 0x4bc   :  { %v6389_v13 = vcombine.low %v3828_v25, %v3828_v25  ;;  %v6390_v45 = vcombine.high %v3828_v25, %v3828_v25 }
 0x4be   :  { %4048 = vst.msk [vmem:[#allocation2 + $0xa4] sm:$0xf] %vm642_vm1, %v6389_v13  ;;  %4049 = vst.msk [vmem:[#allocation2 + $0xac] sm:$0xf] %vm642_vm1, %v6390_v45 }
 0x4bf   :  { %4842 = vst.msk [vmem:[#allocation2 + $0xa4] sm:$0xf] %vm1533_vm2, %v4767_v14  ;;  %4843 = vst.msk [vmem:[#allocation2 + $0xac] sm:$0xf] %vm1533_vm2, %v4769_v56 }
 0x4c0   :  { %5723 = vst.msk [vmem:[#allocation2 + $0xa4] sm:$0xf] %vm2415_vm3, %v5648_v35  ;;  %5724 = vst.msk [vmem:[#allocation2 + $0xac] sm:$0xf] %vm2415_vm3, %v5650_v5 }
 0x4c7   :  { %v7253_v6 = vld [vmem:[#allocation2 + $0xa4] ss:$8 sps:$4 sm:$0xff]  }
 0x4cb   :  { %v3844_v52 = vpop.trf.xlu1 }
 0x4cc   :  { %v6391_v28 = vcombine.low %v3844_v52, %v3844_v52  ;;  %v6392_v3 = vcombine.high %v3844_v52, %v3844_v52 }
 0x4ce   :  { %4050 = vst.msk [vmem:[#allocation2 + $0xb4] sm:$0xf] %vm642_vm1, %v6391_v28  ;;  %4051 = vst.msk [vmem:[#allocation2 + $0xbc] sm:$0xf] %vm642_vm1, %v6392_v3 }
 0x4cf   :  { %4844 = vst.msk [vmem:[#allocation2 + $0xb4] sm:$0xf] %vm1533_vm2, %v4771_v36  ;;  %4845 = vst.msk [vmem:[#allocation2 + $0xbc] sm:$0xf] %vm1533_vm2, %v4773_v18 }
 0x4d0   :  { %5725 = vst.msk [vmem:[#allocation2 + $0xb4] sm:$0xf] %vm2415_vm3, %v5652_v26  ;;  %5726 = vst.msk [vmem:[#allocation2 + $0xbc] sm:$0xf] %vm2415_vm3, %v5654_v44 }
 0x4d3   :  { %v3812_v7 = vpop.trf.xlu1 }
 0x4d4   :  { %v6387_v41 = vcombine.low %v3812_v7, %v3812_v7  ;;  %v6388_v50 = vcombine.high %v3812_v7, %v3812_v7 }
 0x4d6   :  { %4046 = vst.msk [vmem:[#allocation2 + $0x94] sm:$0xf] %vm642_vm1, %v6387_v41  ;;  %4047 = vst.msk [vmem:[#allocation2 + $0x9c] sm:$0xf] %vm642_vm1, %v6388_v50 }
 0x4d7   :  { %4840 = vst.msk [vmem:[#allocation2 + $0x94] sm:$0xf] %vm1533_vm2, %v4763_v24  ;;  %4841 = vst.msk [vmem:[#allocation2 + $0x9c] sm:$0xf] %vm1533_vm2, %v4765_v59  ;;  %v5761_v21 = vld [vmem:[#allocation2 + $0xb0] sm:$0xff]  ;;  %v5762_v29 = vld [vmem:[#allocation2 + $0xb8] sm:$0xff] }
 0x4d8   :  { %v7251_v4 = vld [vmem:[#allocation2 + $0xb4] ss:$8 sps:$4 sm:$0xff]   ;;  %5721 = vst.msk [vmem:[#allocation2 + $0x94] sm:$0xf] %vm2415_vm3, %v5644_v46  ;;  %5722 = vst.msk [vmem:[#allocation2 + $0x9c] sm:$0xf] %vm2415_vm3, %v5646_v32  ;;  %v6558_v60 = vcombine.low %v5761_v21, %v5762_v29 }
 0x4d9   :  { %6580 = vmatprep.subr.msk.bf16.mxu0 %vm5957_vm5, %v7251_v4 }
 0x4da   :  { %6037 = vmatpush2.bf16.xpose.msra.mxu0 %v6558_v60 }
 0x4db   :  { %v3796_v15 = vpop.trf.xlu1  ;;  %6581 = vmatprep.subr.msk.bf16.mxu0 %vm5957_vm5, %v7253_v6 }
 0x4dc   :  { %v6385_v57 = vcombine.low %v3796_v15, %v3796_v15  ;;  %v6386_v8 = vcombine.high %v3796_v15, %v3796_v15 }
 0x4de   :  { %4044 = vst.msk [vmem:[#allocation2 + $0x84] sm:$0xf] %vm642_vm1, %v6385_v57  ;;  %4045 = vst.msk [vmem:[#allocation2 + $0x8c] sm:$0xf] %vm642_vm1, %v6386_v8 }
 0x4df   :  { %4838 = vst.msk [vmem:[#allocation2 + $0x84] sm:$0xf] %vm1533_vm2, %v4759_v37  ;;  %4839 = vst.msk [vmem:[#allocation2 + $0x8c] sm:$0xf] %vm1533_vm2, %v4761_v23  ;;  %v7256_v63 = vld [vmem:[#allocation2 + $0x94] ss:$8 sps:$4 sm:$0xff]  }
 0x4e0   :  { %5719 = vst.msk [vmem:[#allocation2 + $0x84] sm:$0xf] %vm2415_vm3, %v5640_v17  ;;  %5720 = vst.msk [vmem:[#allocation2 + $0x8c] sm:$0xf] %vm2415_vm3, %v5642_v0 }
 0x4e2   :  { %6039 = vmatpush2.bf16.xpose.msra.mxu0 %v7255_v55 }
 0x4e3   :  { %6582 = vmatprep.subr.msk.bf16.mxu0 %vm5957_vm5, %v7256_v63 }
 0x4e7   :  { %v7259_v42 = vld [vmem:[#allocation2 + $0x84] ss:$8 sps:$4 sm:$0xff]  }
 0x4ea   :  { %6041 = vmatpush2.bf16.xpose.msra.mxu0 %v7258_v61 }
 0x4eb   :  { %6583 = vmatprep.subr.msk.bf16.mxu0 %vm5957_vm5, %v7259_v42 }
 0x4f2   :  { %6043 = vmatpush2.bf16.xpose.msra.mxu0 %v7261_v30 }
 0x4f9   :  { %6045 = vmatmul.mubr.bf16.vlgmr.msra.gmra.mxu0 %v7262_v47 }
 0x4fa   :  { %6585 = vmatprep.mubr.msk.bf16.mxu0 %vm5957_vm5, %v7265_v62 }
 0x4fd   :  { %v5778_v33 = vpop.permute.xlu1 %5777 }
 0x501   :  { %6055 = vmatmul.mubr.bf16.gmra.mxu0 %v7267_v22  ;;  %v5783_v14 = vpop.permute.xlu1 %5782 }
 0x505   :  { %v5788_v56 = vpop.permute.xlu1 %5787 }
 0x509   :  { %v5793_v31 = vpop.permute.xlu1 %5792 }
 0x5b9   :  { %v6046_v49 = vpop.f32.mrf.mxu0 }
 0x5ba   :  { %v6047_v27 = vadd.f32 %v6046_v49, %v5778_v33 }
 0x5bb   :  { %v6048_v43 = vpop.f32.mrf.mxu0 }
 0x5bc   :  { %6065 = vst [vmem:[%s8997_s4] sm:$0xff] %v6047_v27  ;;  %v6049_v34 = vadd.f32 %v6048_v43, %v5778_v33 }
 0x5bd   :  { %v6050_v38 = vpop.f32.mrf.mxu0 }
 0x5be   :  { %6066 = vst [vmem:[%s8997_s4 + $0x8] sm:$0xff] %v6049_v34  ;;  %v6051_v51 = vadd.f32 %v6050_v38, %v5783_v14 }
 0x5bf   :  { %v6052_v16 = vpop.f32.mrf.mxu0 }
 0x5c0   :  { %6067 = vst [vmem:[%s8997_s4 + $0x10] sm:$0xff] %v6051_v51  ;;  %v6053_v48 = vadd.f32 %v6052_v16, %v5783_v14 }
 0x5c1   :  { %v6056_v20 = vpop.f32.mrf.mxu0 }
 0x5c2   :  { %6068 = vst [vmem:[%s8997_s4 + $0x18] sm:$0xff] %v6053_v48  ;;  %v6057_v9 = vadd.f32 %v6056_v20, %v5788_v56 }
 0x5c3   :  { %v6058_v36 = vpop.f32.mrf.mxu0 }
 0x5c4   :  { %6069 = vst [vmem:[%s8997_s4 + $0x20] sm:$0xff] %v6057_v9  ;;  %v6059_v19 = vadd.f32 %v6058_v36, %v5788_v56 }
 0x5c5   :  { %v6060_v18 = vpop.f32.mrf.mxu0 }
 0x5c6   :  { %6070 = vst [vmem:[%s8997_s4 + $0x28] sm:$0xff] %v6059_v19  ;;  %v6061_v53 = vadd.f32 %v6060_v18, %v5793_v31 }
 0x5c7   :  { %v6062_v1 = vpop.f32.mrf.mxu0 }
 0x5c8   :  { %6071 = vst [vmem:[%s8997_s4 + $0x30] sm:$0xff] %v6061_v53  ;;  %v6063_v54 = vadd.f32 %v6062_v1, %v5793_v31 }
 0x5ca   :  { %6072 = vst [vmem:[%s8997_s4 + $0x38] sm:$0xff] %v6063_v54 }

</bundles_post_ra>
